<compile_context>
chip_gen: v7x
topology: tpu7x:2x2x1
jax: 0.10.0
libtpu: 0.0.40
codegen_flags: <defaults>
</compile_context>

<pallas_src>
import functools

import jax
import jax.numpy as jnp
from jax.experimental import pallas as pl
from jax.experimental.pallas import tpu as pltpu

LEAKY_SLOPE = 0.01                    # nn.LeakyReLU() default
TM_MAX = 512                          # max rows per M tile
TK_MAX = 512                          # K tile when weights are too big to keep resident
MAX_RESIDENT_B = 2 * 1024 * 1024      # keep whole weight resident if <= 2 MiB (bf16)


def _round_up(x, m):
    return (x + m - 1) // m * m


# ----------------------------------------------------------------------------
# Pallas kernel: K-accumulated matmul + bias + optional skip-add + LeakyReLU
# ----------------------------------------------------------------------------
def _fused_mm_kernel(*refs, act, has_skip):
    if has_skip:
        a_ref, b_ref, bias_ref, skip_ref, o_ref, acc_ref = refs
    else:
        a_ref, b_ref, bias_ref, o_ref, acc_ref = refs
        skip_ref = None

    @pl.when(pl.program_id(1) == 0)
    def _init():
        acc_ref[...] = jnp.zeros_like(acc_ref)

    acc_ref[...] += jnp.dot(a_ref[...], b_ref[...],
                            preferred_element_type=jnp.float32)

    @pl.when(pl.program_id(1) == pl.num_programs(1) - 1)
    def _finalize():
        out = acc_ref[...] + bias_ref[...]
        if has_skip:
            out = out + skip_ref[...].astype(jnp.float32)
        if act:
            out = jnp.where(out >= 0, out, LEAKY_SLOPE * out)
        o_ref[...] = out.astype(o_ref.dtype)


def fused_matmul(A, B, bias, skip=None, *, act=False):
    """bf16 out = leakyrelu?((A @ B) + bias (+ skip)); bf16 MXU, f32 accumulate."""
    M, K = A.shape
    _, N = B.shape
    has_skip = skip is not None

    # M tiling: large tiles for HBM roofline, but keep >=2 M-steps when M is big
    # enough so the "parallel" axis still shards across v7x's 2 TensorCores.
    tm = min(TM_MAX, _round_up(M, 16))
    if M >= 256 and _round_up(M, tm) == tm:
        tm = _round_up((M + 1) // 2, 16)
    Mp = _round_up(M, tm)

    # Lane-dense (x128) output columns -> unmasked vector stores.
    Np = _round_up(max(N, 128), 128)

    # K: keep the whole weight resident when small; otherwise tile K (last,
    # "arbitrary") so the resident block stays tiny on v7x's 64 MiB VMEM.
    tk = K if K * Np * 2 <= MAX_RESIDENT_B else TK_MAX
    Kp = _round_up(K, tk)
    nk = Kp // tk

    Ap = jnp.pad(A.astype(jnp.bfloat16), ((0, Mp - M), (0, Kp - K)))
    Bp = jnp.pad(B.astype(jnp.bfloat16), ((0, Kp - K), (0, Np - N)))
    cp = jnp.pad(bias.astype(jnp.float32).reshape(1, N), ((0, 0), (0, Np - N)))

    operands = [Ap, Bp, cp]
    in_specs = [
        pl.BlockSpec((tm, tk), lambda i, k: (i, k)),    # patches / activations
        pl.BlockSpec((tk, Np), lambda i, k: (k, 0)),    # scale-folded weights
        pl.BlockSpec((1, Np), lambda i, k: (0, 0)),     # per-channel bias
    ]
    if has_skip:
        kp = jnp.pad(skip.astype(jnp.bfloat16), ((0, Mp - M), (0, Np - N)))
        operands.append(kp)
        in_specs.append(pl.BlockSpec((tm, Np), lambda i, k: (i, 0)))

    bytes_accessed = (Mp * Kp * 2 + (Mp // tm) * Kp * Np * 2 + Np * 4
                      + Mp * Np * 2 * (2 if has_skip else 1))
    cost = pl.CostEstimate(flops=2 * Mp * Kp * Np, transcendentals=0,
                           bytes_accessed=bytes_accessed)

    out = pl.pallas_call(
        functools.partial(_fused_mm_kernel, act=act, has_skip=has_skip),
        out_shape=jax.ShapeDtypeStruct((Mp, Np), jnp.bfloat16),
        grid_spec=pltpu.PrefetchScalarGridSpec(
            num_scalar_prefetch=0,
            grid=(Mp // tm, nk),                        # M parallel, K arbitrary (last)
            in_specs=in_specs,
            out_specs=pl.BlockSpec((tm, Np), lambda i, k: (i, 0)),
            scratch_shapes=[pltpu.VMEM((tm, Np), jnp.float32)],
        ),
        compiler_params=pltpu.CompilerParams(
            dimension_semantics=("parallel", "arbitrary"),
            vmem_limit_bytes=48 * 1024 * 1024,
        ),
        cost_estimate=cost,
    )(*operands)
    return out[:M, :N]


# ----------------------------------------------------------------------------
# Conv glue (im2col in bf16), phase-decomposed conv-transpose, maxpool
# ----------------------------------------------------------------------------
def _im2col(x, kh, kw, stride, pad):
    N, H, W, C = x.shape
    xp = jnp.pad(x, ((0, 0), (pad, pad), (pad, pad), (0, 0)))
    Ho = (H + 2 * pad - kh) // stride + 1
    Wo = (W + 2 * pad - kw) // stride + 1
    rows = []
    for i in range(kh):
        cols = []
        for j in range(kw):
            cols.append(xp[:, i:i + stride * (Ho - 1) + 1:stride,
                            j:j + stride * (Wo - 1) + 1:stride, :])
        rows.append(jnp.stack(cols, axis=3))      # N,Ho,Wo,kw,C
    patches = jnp.stack(rows, axis=3)             # N,Ho,Wo,kh,kw,C
    return patches.reshape(N * Ho * Wo, kh * kw * C), (N, Ho, Wo)


def conv_bn_act(x, p, *, stride, pad, act, skip=None):
    w = p['w']                                    # (kh,kw,Cin,Cout) f32
    kh, kw, cin, cout = w.shape
    patches, (N, Ho, Wo) = _im2col(x.astype(jnp.bfloat16), kh, kw, stride, pad)
    # eval-mode BN: fold per-channel scale into the weight columns (exact);
    # the bias stays as the f32 epilogue constant inside the kernel.
    w2d = w.reshape(kh * kw * cin, cout) * p['scale'][None, :]
    skip2d = None if skip is None else skip.reshape(N * Ho * Wo, cout)
    out = fused_matmul(patches, w2d, p['bias'], skip2d, act=act)
    return out.reshape(N, Ho, Wo, cout)


def conv_transpose(x, p, *, stride=2, pad=1, out_pad=1):
    # ConvTranspose2d(k=3, stride=2, padding=1, output_padding=1) lowered as a
    # stride^2 sub-pixel (phase) decomposition: 4 small matmuls on the
    # UNdilated input instead of one conv over a 75%-zeros dilated tensor.
    w, b = p['w'], p['b']                         # (3,3,Cin,Cout), (Cout,)
    kh, kw, cin, cout = w.shape
    assert (kh, kw, stride, pad, out_pad) == (3, 3, 2, 1, 1)
    N, H, W, _ = x.shape
    xb = x.astype(jnp.bfloat16)
    xp = jnp.pad(xb, ((0, 0), (0, 1), (0, 1), (0, 0)))    # high-side halo
    x00 = xp[:, :H, :W, :]          # x[i,   j  ]
    x01 = xp[:, :H, 1:W + 1, :]     # x[i,   j+1]
    x10 = xp[:, 1:H + 1, :W, :]     # x[i+1, j  ]
    x11 = xp[:, 1:H + 1, 1:W + 1, :]  # x[i+1, j+1]
    M = N * H * W

    def phase_mm(parts, taps):
        A = jnp.concatenate([q.reshape(M, cin) for q in parts], axis=-1)
        B = jnp.concatenate([w[i, j].reshape(cin, cout) for (i, j) in taps], axis=0)
        return fused_matmul(A, B, b, None, act=False).reshape(N, H, W, cout)

    # out[2i  ,2j  ] = x[i,j]*W[1,1]
    # out[2i  ,2j+1] = x[i,j]*W[1,0] + x[i,j+1]*W[1,2]
    # out[2i+1,2j  ] = x[i,j]*W[0,1] + x[i+1,j]*W[2,1]
    # out[2i+1,2j+1] = x[i,j]*W[0,0] + x[i,j+1]*W[0,2] + x[i+1,j]*W[2,0] + x[i+1,j+1]*W[2,2]
    p00 = phase_mm([x00], [(1, 1)])
    p01 = phase_mm([x00, x01], [(1, 0), (1, 2)])
    p10 = phase_mm([x00, x10], [(0, 1), (2, 1)])
    p11 = phase_mm([x00, x01, x10, x11], [(0, 0), (0, 2), (2, 0), (2, 2)])

    out = jnp.stack([jnp.stack([p00, p01], axis=3),
                     jnp.stack([p10, p11], axis=3)], axis=2)   # N,H,2,W,2,C
    return out.reshape(N, 2 * H, 2 * W, cout)


def maxpool(x, s):
    N, H, W, C = x.shape
    Ho, Wo = H // s, W // s
    return x[:, :Ho * s, :Wo * s, :].reshape(N, Ho, s, Wo, s, C).max(axis=(2, 4))


# ----------------------------------------------------------------------------
# Deterministic parameter construction (mirrors the PyTorch __init__ shapes)
# ----------------------------------------------------------------------------
class ParamGen:
    def __init__(self, seed=0):
        self.key = jax.random.PRNGKey(seed)

    def normal(self, shape, scale=0.1):
        self.key, sub = jax.random.split(self.key)
        return scale * jax.random.normal(sub, shape, jnp.float32)

    def conv_bn(self, cin, cout, k):
        # Conv2d(bias=False) weight + eval-mode BatchNorm folded to scale/bias.
        w = self.normal((k, k, cin, cout), scale=1.0 / (k * (cin ** 0.5)))
        gamma = 1.0 + self.normal((cout,))
        beta = self.normal((cout,))
        mean = self.normal((cout,))
        var = 1.0 + jnp.abs(self.normal((cout,)))
        scale = gamma / jnp.sqrt(var + 1e-5)
        bias = beta - mean * scale
        return {'w': w, 'scale': scale, 'bias': bias}

    def conv_transpose(self, cin, cout, k=3):
        w = self.normal((k, k, cin, cout), scale=1.0 / (k * (cin ** 0.5)))
        b = self.normal((cout,))
        return {'w': w, 'b': b}


def make_basic_block(pg, cin, cout, stride):
    return {'stride': stride,
            'c1': pg.conv_bn(cin, cout, 3),
            'c2': pg.conv_bn(cout, cout, 3)}


def basic_block_fwd(p, x, skip=None):
    if skip is None:
        skip = x
    out = conv_bn_act(x, p['c1'], stride=p['stride'], pad=1, act=True)
    # conv2 + bn2 + residual add + LeakyReLU fused in the kernel epilogue
    out = conv_bn_act(out, p['c2'], stride=1, pad=1, act=True, skip=skip)
    return out


def make_tree(pg, levels, cin, cout, stride=1, level_root=False,
              root_in=0, root_k=1, root_skip=False):
    p = {'levels': levels, 'level_root': level_root, 'stride': stride,
         'root_skip': root_skip, 'root_k': root_k}
    if root_in == 0:
        root_in = 2 * cout
    if level_root:
        root_in += cin
    if levels == 1:
        p['root'] = pg.conv_bn(root_in, cout, root_k)
        p['tree1'] = make_basic_block(pg, cin, cout, stride)
        p['tree2'] = make_basic_block(pg, cout, cout, 1)
    else:
        p['tree1'] = make_tree(pg, levels - 1, cin, cout, stride,
                               root_in=0, root_k=root_k, root_skip=root_skip)
        p['tree2'] = make_tree(pg, levels - 1, cout, cout, 1,
                               root_in=root_in + cout, root_k=root_k,
                               root_skip=root_skip)
    p['downsample'] = stride > 1
    p['ccc'] = pg.conv_bn(cin, cout, 1) if cin != cout else None
    return p


def tree_fwd(p, x, skip=None, children=None):
    if children is None:
        children = []
    bottom = maxpool(x, p['stride']) if p['downsample'] else x
    if p['ccc'] is not None:
        skip = conv_bn_act(bottom, p['ccc'], stride=1, pad=0, act=False)
    else:
        skip = bottom
    if p['level_root']:
        children.append(bottom)
    if p['levels'] == 1:
        x1 = basic_block_fwd(p['tree1'], x, skip)
        x2 = basic_block_fwd(p['tree2'], x1)
        cat = jnp.concatenate([x2, x1] + children, axis=-1)   # torch.cat(dim=1)
        root_skip = x2 if p['root_skip'] else None
        x = conv_bn_act(cat, p['root'], stride=1, pad=p['root_k'] // 2,
                        act=True, skip=root_skip)
    else:
        x1 = tree_fwd(p['tree1'], x, skip)
        children.append(x1)
        x = tree_fwd(p['tree2'], x1, children=children)
    return x


def make_updla_unit(pg, repeat, cin, cout):
    convs = []
    for _ in range(repeat):
        convs.append(pg.conv_transpose(cin, cout, 3))
        cin = cout
    return convs


def updla_unit_fwd(convs, x):
    for c in convs:
        x = conv_transpose(x, c, stride=2, pad=1, out_pad=1)
    return x


def make_updla(pg, channels):
    channels = list(reversed(channels))
    rep_full = len(channels) - 1
    units = []
    for i in range(len(channels) - 1):
        units.append(make_updla_unit(pg, rep_full - i,
                                     channels[i], channels[i + 1]))
    return {'units': units}


def updla_fwd(p, xs):
    xs = list(reversed(xs))
    x = None
    x_temp = None
    for i, unit in enumerate(p['units']):
        if x_temp is not None:
            x = x + x_temp            # mirrors reference (immediately overwritten)
        x = updla_unit_fwd(unit, xs[i])
        x_temp = x
    x = x + x_temp                    # mirrors reference: 2 * last-unit output
    return x


def make_dla(levels, channels, root_skip=False, seed=0):
    pg = ParamGen(seed)
    p = {}
    p['input_block'] = pg.conv_bn(3, channels[0], 7)
    p['stage0'] = pg.conv_bn(channels[0], channels[0], 3)
    p['stage1'] = pg.conv_bn(channels[0], channels[1], 3)
    p['stage2'] = make_tree(pg, levels[0], channels[1], channels[2], 2,
                            level_root=False, root_skip=root_skip)
    p['stage3'] = make_tree(pg, levels[1], channels[2], channels[3], 2,
                            level_root=True, root_skip=root_skip)
    p['stage4'] = make_tree(pg, levels[2], channels[3], channels[4], 2,
                            level_root=True, root_skip=root_skip)
    p['stage5'] = make_tree(pg, levels[3], channels[4], channels[5], 2,
                            level_root=True, root_skip=root_skip)
    p['last'] = make_updla(pg, channels[-4:])
    return p


def dla_forward(p, x_nchw):
    x = jnp.transpose(x_nchw, (0, 2, 3, 1)).astype(jnp.bfloat16)  # NCHW f32 -> NHWC bf16
    y = []
    x = conv_bn_act(x, p['input_block'], stride=1, pad=3, act=True)
    x = conv_bn_act(x, p['stage0'], stride=1, pad=1, act=True)
    y.append(x)
    x = conv_bn_act(x, p['stage1'], stride=2, pad=1, act=True)
    y.append(x)
    for name in ('stage2', 'stage3', 'stage4', 'stage5'):
        x = tree_fwd(p[name], x)
        y.append(x)
    x = updla_fwd(p['last'], y)
    return jnp.transpose(x, (0, 3, 1, 2)).astype(jnp.float32)     # NHWC -> NCHW f32


if __name__ == "__main__":
    levels = [1, 2, 1, 1]
    channels = [4, 8, 8, 16, 16, 16]
    params = make_dla(levels, channels, root_skip=False, seed=0)

    key = jax.random.PRNGKey(0)
    x = jax.random.normal(key, (2, 3, 32, 32), jnp.float32)   # NCHW like PyTorch

    forward = jax.jit(lambda inp: dla_forward(params, inp))   # params baked as constants
    out = jax.block_until_ready(forward(x))
    assert out.shape == (2, channels[-4], 32 // 4, 32 // 4), out.shape
    assert bool(jnp.all(jnp.isfinite(out)))
    print("KERNEL_OK")
</pallas_src>

<mosaic_0001>
module attributes {stable_mosaic.version = 11 : i64} {
  func.func @_fused_mm_kernel(%arg0: i32, %arg1: i32, %arg2: memref<512x147xbf16, #tpu.memory_space<vmem>>, %arg3: memref<147x128xbf16, #tpu.memory_space<vmem>>, %arg4: memref<1x128xf32, #tpu.memory_space<vmem>>, %arg5: memref<512x128xbf16, #tpu.memory_space<vmem>>, %arg6: memref<512x128xf32, #tpu.memory_space<vmem>>) attributes {dimension_semantics = [#tpu.dimension_semantics<parallel>, #tpu.dimension_semantics<arbitrary>], iteration_bounds = array<i64: 4, 1>, scalar_prefetch = 0 : i64, scratch_operands = 1 : i64, tpu.core_type = #tpu.core_type<tc>, window_params = [{transform_indices = @transform_0, window_bounds = array<i64: 512, 147>}, {transform_indices = @transform_1, window_bounds = array<i64: 147, 128>}, {pipeline_mode = #tpu.pipeline_mode<synchronous>, transform_indices = @transform_2, window_bounds = array<i64: 1, 128>}, {transform_indices = @transform_3, window_bounds = array<i64: 512, 128>}]} {
    %c0_i32 = arith.constant 0 : i32
    %0 = arith.cmpi eq, %arg1, %c0_i32 : i32
    %1 = arith.extui %0 : i1 to i32
    %c0_i32_0 = arith.constant 0 : i32
    %2 = arith.cmpi ne, %1, %c0_i32_0 : i32
    scf.if %2 {
      %cst_10 = arith.constant 0.000000e+00 : f32
      %12 = vector.broadcast %cst_10 : f32 to vector<512x128xf32>
      %c0_11 = arith.constant 0 : index
      %c0_12 = arith.constant 0 : index
      %13 = vector.load %arg6[%c0_11, %c0_12] : memref<512x128xf32, #tpu.memory_space<vmem>>, vector<512x128xf32>
      tpu.vector_store %arg6[%c0_11, %c0_12], %12 {strides = array<i32>} : memref<512x128xf32, #tpu.memory_space<vmem>>, vector<512x128xf32>,
    } else {
    }
    %c0 = arith.constant 0 : index
    %c0_1 = arith.constant 0 : index
    %3 = vector.load %arg6[%c0, %c0_1] : memref<512x128xf32, #tpu.memory_space<vmem>>, vector<512x128xf32>
    %c0_2 = arith.constant 0 : index
    %c0_3 = arith.constant 0 : index
    %4 = vector.load %arg2[%c0_2, %c0_3] : memref<512x147xbf16, #tpu.memory_space<vmem>>, vector<512x147xbf16>
    %c0_4 = arith.constant 0 : index
    %c0_5 = arith.constant 0 : index
    %5 = vector.load %arg3[%c0_4, %c0_5] : memref<147x128xbf16, #tpu.memory_space<vmem>>, vector<147x128xbf16>
    %cst = arith.constant dense<0.000000e+00> : vector<512x128xf32>
    %6 = tpu.matmul %4, %5, %cst {dimension_numbers = #tpu.dot_dimension_numbers<[1], [0], [0], [1], [0, 0, 1, 1], [], []>} : vector<512x147xbf16>, vector<147x128xbf16>, vector<512x128xf32> -> vector<512x128xf32>
    %7 = arith.addf %3, %6 : vector<512x128xf32>
    %c0_6 = arith.constant 0 : index
    %c0_7 = arith.constant 0 : index
    %8 = vector.load %arg6[%c0_6, %c0_7] : memref<512x128xf32, #tpu.memory_space<vmem>>, vector<512x128xf32>
    tpu.vector_store %arg6[%c0_6, %c0_7], %7 {strides = array<i32>} : memref<512x128xf32, #tpu.memory_space<vmem>>, vector<512x128xf32>,
    %c0_i32_8 = arith.constant 0 : i32
    %9 = arith.cmpi eq, %arg1, %c0_i32_8 : i32
    %10 = arith.extui %9 : i1 to i32
    %c0_i32_9 = arith.constant 0 : i32
    %11 = arith.cmpi ne, %10, %c0_i32_9 : i32
    scf.if %11 {
      %c0_10 = arith.constant 0 : index
      %c0_11 = arith.constant 0 : index
      %12 = vector.load %arg6[%c0_10, %c0_11] : memref<512x128xf32, #tpu.memory_space<vmem>>, vector<512x128xf32>
      %c0_12 = arith.constant 0 : index
      %c0_13 = arith.constant 0 : index
      %13 = vector.load %arg4[%c0_12, %c0_13] : memref<1x128xf32, #tpu.memory_space<vmem>>, vector<1x128xf32>
      %14 = vector.broadcast %13 : vector<1x128xf32> to vector<512x128xf32>
      %15 = arith.addf %12, %14 : vector<512x128xf32>
      %cst_14 = arith.constant 0.000000e+00 : f32
      %16 = vector.broadcast %cst_14 : f32 to vector<512x128xf32>
      %17 = arith.cmpf oge, %15, %16 : vector<512x128xf32>
      %cst_15 = arith.constant 0.00999999977 : f32
      %18 = vector.broadcast %cst_15 : f32 to vector<512x128xf32>
      %19 = arith.mulf %18, %15 : vector<512x128xf32>
      %20 = arith.select %17, %15, %19 : vector<512x128xi1>, vector<512x128xf32>
      %21 = arith.truncf %20 : vector<512x128xf32> to vector<512x128xbf16>
      %c0_16 = arith.constant 0 : index
      %c0_17 = arith.constant 0 : index
      %22 = vector.load %arg5[%c0_16, %c0_17] : memref<512x128xbf16, #tpu.memory_space<vmem>>, vector<512x128xbf16>
      tpu.vector_store %arg5[%c0_16, %c0_17], %21 {strides = array<i32>} : memref<512x128xbf16, #tpu.memory_space<vmem>>, vector<512x128xbf16>,
    } else {
    }
    return
  }
  func.func @transform_0(%arg0: i32, %arg1: i32) -> (i32, i32) {
    %c0_i32 = arith.constant 0 : i32
    return %arg0, %arg1 : i32, i32
  }
  func.func @transform_1(%arg0: i32, %arg1: i32) -> (i32, i32) {
    %c0_i32 = arith.constant 0 : i32
    %c0_i32_0 = arith.constant 0 : i32
    return %arg1, %c0_i32 : i32, i32
  }
  func.func @transform_2(%arg0: i32, %arg1: i32) -> (i32, i32) {
    %c0_i32 = arith.constant 0 : i32
    %c0_i32_0 = arith.constant 0 : i32
    %c0_i32_1 = arith.constant 0 : i32
    return %c0_i32, %c0_i32_0 : i32, i32
  }
  func.func @transform_3(%arg0: i32, %arg1: i32) -> (i32, i32) {
    %c0_i32 = arith.constant 0 : i32
    %c0_i32_0 = arith.constant 0 : i32
    return %arg0, %c0_i32 : i32, i32
  }
}

module attributes {stable_mosaic.version = 11 : i64} {
  func.func @_fused_mm_kernel(%arg0: i32, %arg1: i32, %arg2: memref<512x36xbf16, #tpu.memory_space<vmem>>, %arg3: memref<36x128xbf16, #tpu.memory_space<vmem>>, %arg4: memref<1x128xf32, #tpu.memory_space<vmem>>, %arg5: memref<512x128xbf16, #tpu.memory_space<vmem>>, %arg6: memref<512x128xf32, #tpu.memory_space<vmem>>) attributes {dimension_semantics = [#tpu.dimension_semantics<parallel>, #tpu.dimension_semantics<arbitrary>], iteration_bounds = array<i64: 4, 1>, scalar_prefetch = 0 : i64, scratch_operands = 1 : i64, tpu.core_type = #tpu.core_type<tc>, window_params = [{transform_indices = @transform_0, window_bounds = array<i64: 512, 36>}, {transform_indices = @transform_1, window_bounds = array<i64: 36, 128>}, {pipeline_mode = #tpu.pipeline_mode<synchronous>, transform_indices = @transform_2, window_bounds = array<i64: 1, 128>}, {transform_indices = @transform_3, window_bounds = array<i64: 512, 128>}]} {
    %c0_i32 = arith.constant 0 : i32
    %0 = arith.cmpi eq, %arg1, %c0_i32 : i32
    %1 = arith.extui %0 : i1 to i32
    %c0_i32_0 = arith.constant 0 : i32
    %2 = arith.cmpi ne, %1, %c0_i32_0 : i32
    scf.if %2 {
      %cst_10 = arith.constant 0.000000e+00 : f32
      %12 = vector.broadcast %cst_10 : f32 to vector<512x128xf32>
      %c0_11 = arith.constant 0 : index
      %c0_12 = arith.constant 0 : index
      %13 = vector.load %arg6[%c0_11, %c0_12] : memref<512x128xf32, #tpu.memory_space<vmem>>, vector<512x128xf32>
      tpu.vector_store %arg6[%c0_11, %c0_12], %12 {strides = array<i32>} : memref<512x128xf32, #tpu.memory_space<vmem>>, vector<512x128xf32>,
    } else {
    }
    %c0 = arith.constant 0 : index
    %c0_1 = arith.constant 0 : index
    %3 = vector.load %arg6[%c0, %c0_1] : memref<512x128xf32, #tpu.memory_space<vmem>>, vector<512x128xf32>
    %c0_2 = arith.constant 0 : index
    %c0_3 = arith.constant 0 : index
    %4 = vector.load %arg2[%c0_2, %c0_3] : memref<512x36xbf16, #tpu.memory_space<vmem>>, vector<512x36xbf16>
    %c0_4 = arith.constant 0 : index
    %c0_5 = arith.constant 0 : index
    %5 = vector.load %arg3[%c0_4, %c0_5] : memref<36x128xbf16, #tpu.memory_space<vmem>>, vector<36x128xbf16>
    %cst = arith.constant dense<0.000000e+00> : vector<512x128xf32>
    %6 = tpu.matmul %4, %5, %cst {dimension_numbers = #tpu.dot_dimension_numbers<[1], [0], [0], [1], [0, 0, 1, 1], [], []>} : vector<512x36xbf16>, vector<36x128xbf16>, vector<512x128xf32> -> vector<512x128xf32>
    %7 = arith.addf %3, %6 : vector<512x128xf32>
    %c0_6 = arith.constant 0 : index
    %c0_7 = arith.constant 0 : index
    %8 = vector.load %arg6[%c0_6, %c0_7] : memref<512x128xf32, #tpu.memory_space<vmem>>, vector<512x128xf32>
    tpu.vector_store %arg6[%c0_6, %c0_7], %7 {strides = array<i32>} : memref<512x128xf32, #tpu.memory_space<vmem>>, vector<512x128xf32>,
    %c0_i32_8 = arith.constant 0 : i32
    %9 = arith.cmpi eq, %arg1, %c0_i32_8 : i32
    %10 = arith.extui %9 : i1 to i32
    %c0_i32_9 = arith.constant 0 : i32
    %11 = arith.cmpi ne, %10, %c0_i32_9 : i32
    scf.if %11 {
      %c0_10 = arith.constant 0 : index
      %c0_11 = arith.constant 0 : index
      %12 = vector.load %arg6[%c0_10, %c0_11] : memref<512x128xf32, #tpu.memory_space<vmem>>, vector<512x128xf32>
      %c0_12 = arith.constant 0 : index
      %c0_13 = arith.constant 0 : index
      %13 = vector.load %arg4[%c0_12, %c0_13] : memref<1x128xf32, #tpu.memory_space<vmem>>, vector<1x128xf32>
      %14 = vector.broadcast %13 : vector<1x128xf32> to vector<512x128xf32>
      %15 = arith.addf %12, %14 : vector<512x128xf32>
      %cst_14 = arith.constant 0.000000e+00 : f32
      %16 = vector.broadcast %cst_14 : f32 to vector<512x128xf32>
      %17 = arith.cmpf oge, %15, %16 : vector<512x128xf32>
      %cst_15 = arith.constant 0.00999999977 : f32
      %18 = vector.broadcast %cst_15 : f32 to vector<512x128xf32>
      %19 = arith.mulf %18, %15 : vector<512x128xf32>
      %20 = arith.select %17, %15, %19 : vector<512x128xi1>, vector<512x128xf32>
      %21 = arith.truncf %20 : vector<512x128xf32> to vector<512x128xbf16>
      %c0_16 = arith.constant 0 : index
      %c0_17 = arith.constant 0 : index
      %22 = vector.load %arg5[%c0_16, %c0_17] : memref<512x128xbf16, #tpu.memory_space<vmem>>, vector<512x128xbf16>
      tpu.vector_store %arg5[%c0_16, %c0_17], %21 {strides = array<i32>} : memref<512x128xbf16, #tpu.memory_space<vmem>>, vector<512x128xbf16>,
    } else {
    }
    return
  }
  func.func @transform_0(%arg0: i32, %arg1: i32) -> (i32, i32) {
    %c0_i32 = arith.constant 0 : i32
    return %arg0, %arg1 : i32, i32
  }
  func.func @transform_1(%arg0: i32, %arg1: i32) -> (i32, i32) {
    %c0_i32 = arith.constant 0 : i32
    %c0_i32_0 = arith.constant 0 : i32
    return %arg1, %c0_i32 : i32, i32
  }
  func.func @transform_2(%arg0: i32, %arg1: i32) -> (i32, i32) {
    %c0_i32 = arith.constant 0 : i32
    %c0_i32_0 = arith.constant 0 : i32
    %c0_i32_1 = arith.constant 0 : i32
    return %c0_i32, %c0_i32_0 : i32, i32
  }
  func.func @transform_3(%arg0: i32, %arg1: i32) -> (i32, i32) {
    %c0_i32 = arith.constant 0 : i32
    %c0_i32_0 = arith.constant 0 : i32
    return %arg0, %c0_i32 : i32, i32
  }
}

module attributes {stable_mosaic.version = 11 : i64} {
  func.func @_fused_mm_kernel(%arg0: i32, %arg1: i32, %arg2: memref<256x36xbf16, #tpu.memory_space<vmem>>, %arg3: memref<36x128xbf16, #tpu.memory_space<vmem>>, %arg4: memref<1x128xf32, #tpu.memory_space<vmem>>, %arg5: memref<256x128xbf16, #tpu.memory_space<vmem>>, %arg6: memref<256x128xf32, #tpu.memory_space<vmem>>) attributes {dimension_semantics = [#tpu.dimension_semantics<parallel>, #tpu.dimension_semantics<arbitrary>], iteration_bounds = array<i64: 2, 1>, scalar_prefetch = 0 : i64, scratch_operands = 1 : i64, tpu.core_type = #tpu.core_type<tc>, window_params = [{transform_indices = @transform_0, window_bounds = array<i64: 256, 36>}, {transform_indices = @transform_1, window_bounds = array<i64: 36, 128>}, {pipeline_mode = #tpu.pipeline_mode<synchronous>, transform_indices = @transform_2, window_bounds = array<i64: 1, 128>}, {transform_indices = @transform_3, window_bounds = array<i64: 256, 128>}]} {
    %c0_i32 = arith.constant 0 : i32
    %0 = arith.cmpi eq, %arg1, %c0_i32 : i32
    %1 = arith.extui %0 : i1 to i32
    %c0_i32_0 = arith.constant 0 : i32
    %2 = arith.cmpi ne, %1, %c0_i32_0 : i32
    scf.if %2 {
      %cst_10 = arith.constant 0.000000e+00 : f32
      %12 = vector.broadcast %cst_10 : f32 to vector<256x128xf32>
      %c0_11 = arith.constant 0 : index
      %c0_12 = arith.constant 0 : index
      %13 = vector.load %arg6[%c0_11, %c0_12] : memref<256x128xf32, #tpu.memory_space<vmem>>, vector<256x128xf32>
      tpu.vector_store %arg6[%c0_11, %c0_12], %12 {strides = array<i32>} : memref<256x128xf32, #tpu.memory_space<vmem>>, vector<256x128xf32>,
    } else {
    }
    %c0 = arith.constant 0 : index
    %c0_1 = arith.constant 0 : index
    %3 = vector.load %arg6[%c0, %c0_1] : memref<256x128xf32, #tpu.memory_space<vmem>>, vector<256x128xf32>
    %c0_2 = arith.constant 0 : index
    %c0_3 = arith.constant 0 : index
    %4 = vector.load %arg2[%c0_2, %c0_3] : memref<256x36xbf16, #tpu.memory_space<vmem>>, vector<256x36xbf16>
    %c0_4 = arith.constant 0 : index
    %c0_5 = arith.constant 0 : index
    %5 = vector.load %arg3[%c0_4, %c0_5] : memref<36x128xbf16, #tpu.memory_space<vmem>>, vector<36x128xbf16>
    %cst = arith.constant dense<0.000000e+00> : vector<256x128xf32>
    %6 = tpu.matmul %4, %5, %cst {dimension_numbers = #tpu.dot_dimension_numbers<[1], [0], [0], [1], [0, 0, 1, 1], [], []>} : vector<256x36xbf16>, vector<36x128xbf16>, vector<256x128xf32> -> vector<256x128xf32>
    %7 = arith.addf %3, %6 : vector<256x128xf32>
    %c0_6 = arith.constant 0 : index
    %c0_7 = arith.constant 0 : index
    %8 = vector.load %arg6[%c0_6, %c0_7] : memref<256x128xf32, #tpu.memory_space<vmem>>, vector<256x128xf32>
    tpu.vector_store %arg6[%c0_6, %c0_7], %7 {strides = array<i32>} : memref<256x128xf32, #tpu.memory_space<vmem>>, vector<256x128xf32>,
    %c0_i32_8 = arith.constant 0 : i32
    %9 = arith.cmpi eq, %arg1, %c0_i32_8 : i32
    %10 = arith.extui %9 : i1 to i32
    %c0_i32_9 = arith.constant 0 : i32
    %11 = arith.cmpi ne, %10, %c0_i32_9 : i32
    scf.if %11 {
      %c0_10 = arith.constant 0 : index
      %c0_11 = arith.constant 0 : index
      %12 = vector.load %arg6[%c0_10, %c0_11] : memref<256x128xf32, #tpu.memory_space<vmem>>, vector<256x128xf32>
      %c0_12 = arith.constant 0 : index
      %c0_13 = arith.constant 0 : index
      %13 = vector.load %arg4[%c0_12, %c0_13] : memref<1x128xf32, #tpu.memory_space<vmem>>, vector<1x128xf32>
      %14 = vector.broadcast %13 : vector<1x128xf32> to vector<256x128xf32>
      %15 = arith.addf %12, %14 : vector<256x128xf32>
      %cst_14 = arith.constant 0.000000e+00 : f32
      %16 = vector.broadcast %cst_14 : f32 to vector<256x128xf32>
      %17 = arith.cmpf oge, %15, %16 : vector<256x128xf32>
      %cst_15 = arith.constant 0.00999999977 : f32
      %18 = vector.broadcast %cst_15 : f32 to vector<256x128xf32>
      %19 = arith.mulf %18, %15 : vector<256x128xf32>
      %20 = arith.select %17, %15, %19 : vector<256x128xi1>, vector<256x128xf32>
      %21 = arith.truncf %20 : vector<256x128xf32> to vector<256x128xbf16>
      %c0_16 = arith.constant 0 : index
      %c0_17 = arith.constant 0 : index
      %22 = vector.load %arg5[%c0_16, %c0_17] : memref<256x128xbf16, #tpu.memory_space<vmem>>, vector<256x128xbf16>
      tpu.vector_store %arg5[%c0_16, %c0_17], %21 {strides = array<i32>} : memref<256x128xbf16, #tpu.memory_space<vmem>>, vector<256x128xbf16>,
    } else {
    }
    return
  }
  func.func @transform_0(%arg0: i32, %arg1: i32) -> (i32, i32) {
    %c0_i32 = arith.constant 0 : i32
    return %arg0, %arg1 : i32, i32
  }
  func.func @transform_1(%arg0: i32, %arg1: i32) -> (i32, i32) {
    %c0_i32 = arith.constant 0 : i32
    %c0_i32_0 = arith.constant 0 : i32
    return %arg1, %c0_i32 : i32, i32
  }
  func.func @transform_2(%arg0: i32, %arg1: i32) -> (i32, i32) {
    %c0_i32 = arith.constant 0 : i32
    %c0_i32_0 = arith.constant 0 : i32
    %c0_i32_1 = arith.constant 0 : i32
    return %c0_i32, %c0_i32_0 : i32, i32
  }
  func.func @transform_3(%arg0: i32, %arg1: i32) -> (i32, i32) {
    %c0_i32 = arith.constant 0 : i32
    %c0_i32_0 = arith.constant 0 : i32
    return %arg0, %c0_i32 : i32, i32
  }
}

module attributes {stable_mosaic.version = 11 : i64} {
  func.func @_fused_mm_kernel(%arg0: i32, %arg1: i32, %arg2: memref<128x72xbf16, #tpu.memory_space<vmem>>, %arg3: memref<72x128xbf16, #tpu.memory_space<vmem>>, %arg4: memref<1x128xf32, #tpu.memory_space<vmem>>, %arg5: memref<128x128xbf16, #tpu.memory_space<vmem>>, %arg6: memref<128x128xf32, #tpu.memory_space<vmem>>) attributes {dimension_semantics = [#tpu.dimension_semantics<parallel>, #tpu.dimension_semantics<arbitrary>], iteration_bounds = array<i64: 1, 1>, scalar_prefetch = 0 : i64, scratch_operands = 1 : i64, tpu.core_type = #tpu.core_type<tc>, window_params = [{transform_indices = @transform_0, window_bounds = array<i64: 128, 72>}, {transform_indices = @transform_1, window_bounds = array<i64: 72, 128>}, {pipeline_mode = #tpu.pipeline_mode<synchronous>, transform_indices = @transform_2, window_bounds = array<i64: 1, 128>}, {transform_indices = @transform_3, window_bounds = array<i64: 128, 128>}]} {
    %c0_i32 = arith.constant 0 : i32
    %0 = arith.cmpi eq, %arg1, %c0_i32 : i32
    %1 = arith.extui %0 : i1 to i32
    %c0_i32_0 = arith.constant 0 : i32
    %2 = arith.cmpi ne, %1, %c0_i32_0 : i32
    scf.if %2 {
      %cst_10 = arith.constant 0.000000e+00 : f32
      %12 = vector.broadcast %cst_10 : f32 to vector<128x128xf32>
      %c0_11 = arith.constant 0 : index
      %c0_12 = arith.constant 0 : index
      %13 = vector.load %arg6[%c0_11, %c0_12] : memref<128x128xf32, #tpu.memory_space<vmem>>, vector<128x128xf32>
      tpu.vector_store %arg6[%c0_11, %c0_12], %12 {strides = array<i32>} : memref<128x128xf32, #tpu.memory_space<vmem>>, vector<128x128xf32>,
    } else {
    }
    %c0 = arith.constant 0 : index
    %c0_1 = arith.constant 0 : index
    %3 = vector.load %arg6[%c0, %c0_1] : memref<128x128xf32, #tpu.memory_space<vmem>>, vector<128x128xf32>
    %c0_2 = arith.constant 0 : index
    %c0_3 = arith.constant 0 : index
    %4 = vector.load %arg2[%c0_2, %c0_3] : memref<128x72xbf16, #tpu.memory_space<vmem>>, vector<128x72xbf16>
    %c0_4 = arith.constant 0 : index
    %c0_5 = arith.constant 0 : index
    %5 = vector.load %arg3[%c0_4, %c0_5] : memref<72x128xbf16, #tpu.memory_space<vmem>>, vector<72x128xbf16>
    %cst = arith.constant dense<0.000000e+00> : vector<128x128xf32>
    %6 = tpu.matmul %4, %5, %cst {dimension_numbers = #tpu.dot_dimension_numbers<[1], [0], [0], [1], [0, 0, 1, 1], [], []>} : vector<128x72xbf16>, vector<72x128xbf16>, vector<128x128xf32> -> vector<128x128xf32>
    %7 = arith.addf %3, %6 : vector<128x128xf32>
    %c0_6 = arith.constant 0 : index
    %c0_7 = arith.constant 0 : index
    %8 = vector.load %arg6[%c0_6, %c0_7] : memref<128x128xf32, #tpu.memory_space<vmem>>, vector<128x128xf32>
    tpu.vector_store %arg6[%c0_6, %c0_7], %7 {strides = array<i32>} : memref<128x128xf32, #tpu.memory_space<vmem>>, vector<128x128xf32>,
    %c0_i32_8 = arith.constant 0 : i32
    %9 = arith.cmpi eq, %arg1, %c0_i32_8 : i32
    %10 = arith.extui %9 : i1 to i32
    %c0_i32_9 = arith.constant 0 : i32
    %11 = arith.cmpi ne, %10, %c0_i32_9 : i32
    scf.if %11 {
      %c0_10 = arith.constant 0 : index
      %c0_11 = arith.constant 0 : index
      %12 = vector.load %arg6[%c0_10, %c0_11] : memref<128x128xf32, #tpu.memory_space<vmem>>, vector<128x128xf32>
      %c0_12 = arith.constant 0 : index
      %c0_13 = arith.constant 0 : index
      %13 = vector.load %arg4[%c0_12, %c0_13] : memref<1x128xf32, #tpu.memory_space<vmem>>, vector<1x128xf32>
      %14 = vector.broadcast %13 : vector<1x128xf32> to vector<128x128xf32>
      %15 = arith.addf %12, %14 : vector<128x128xf32>
      %cst_14 = arith.constant 0.000000e+00 : f32
      %16 = vector.broadcast %cst_14 : f32 to vector<128x128xf32>
      %17 = arith.cmpf oge, %15, %16 : vector<128x128xf32>
      %cst_15 = arith.constant 0.00999999977 : f32
      %18 = vector.broadcast %cst_15 : f32 to vector<128x128xf32>
      %19 = arith.mulf %18, %15 : vector<128x128xf32>
      %20 = arith.select %17, %15, %19 : vector<128x128xi1>, vector<128x128xf32>
      %21 = arith.truncf %20 : vector<128x128xf32> to vector<128x128xbf16>
      %c0_16 = arith.constant 0 : index
      %c0_17 = arith.constant 0 : index
      %22 = vector.load %arg5[%c0_16, %c0_17] : memref<128x128xbf16, #tpu.memory_space<vmem>>, vector<128x128xbf16>
      tpu.vector_store %arg5[%c0_16, %c0_17], %21 {strides = array<i32>} : memref<128x128xbf16, #tpu.memory_space<vmem>>, vector<128x128xbf16>,
    } else {
    }
    return
  }
  func.func @transform_0(%arg0: i32, %arg1: i32) -> (i32, i32) {
    %c0_i32 = arith.constant 0 : i32
    return %arg0, %arg1 : i32, i32
  }
  func.func @transform_1(%arg0: i32, %arg1: i32) -> (i32, i32) {
    %c0_i32 = arith.constant 0 : i32
    %c0_i32_0 = arith.constant 0 : i32
    return %arg1, %c0_i32 : i32, i32
  }
  func.func @transform_2(%arg0: i32, %arg1: i32) -> (i32, i32) {
    %c0_i32 = arith.constant 0 : i32
    %c0_i32_0 = arith.constant 0 : i32
    %c0_i32_1 = arith.constant 0 : i32
    return %c0_i32, %c0_i32_0 : i32, i32
  }
  func.func @transform_3(%arg0: i32, %arg1: i32) -> (i32, i32) {
    %c0_i32 = arith.constant 0 : i32
    %c0_i32_0 = arith.constant 0 : i32
    return %arg0, %c0_i32 : i32, i32
  }
}

module attributes {stable_mosaic.version = 11 : i64} {
  func.func @_fused_mm_kernel(%arg0: i32, %arg1: i32, %arg2: memref<128x72xbf16, #tpu.memory_space<vmem>>, %arg3: memref<72x128xbf16, #tpu.memory_space<vmem>>, %arg4: memref<1x128xf32, #tpu.memory_space<vmem>>, %arg5: memref<128x128xbf16, #tpu.memory_space<vmem>>, %arg6: memref<128x128xbf16, #tpu.memory_space<vmem>>, %arg7: memref<128x128xf32, #tpu.memory_space<vmem>>) attributes {dimension_semantics = [#tpu.dimension_semantics<parallel>, #tpu.dimension_semantics<arbitrary>], iteration_bounds = array<i64: 1, 1>, scalar_prefetch = 0 : i64, scratch_operands = 1 : i64, tpu.core_type = #tpu.core_type<tc>, window_params = [{transform_indices = @transform_0, window_bounds = array<i64: 128, 72>}, {transform_indices = @transform_1, window_bounds = array<i64: 72, 128>}, {pipeline_mode = #tpu.pipeline_mode<synchronous>, transform_indices = @transform_2, window_bounds = array<i64: 1, 128>}, {transform_indices = @transform_3, window_bounds = array<i64: 128, 128>}, {transform_indices = @transform_4, window_bounds = array<i64: 128, 128>}]} {
    %c0_i32 = arith.constant 0 : i32
    %0 = arith.cmpi eq, %arg1, %c0_i32 : i32
    %1 = arith.extui %0 : i1 to i32
    %c0_i32_0 = arith.constant 0 : i32
    %2 = arith.cmpi ne, %1, %c0_i32_0 : i32
    scf.if %2 {
      %cst_10 = arith.constant 0.000000e+00 : f32
      %12 = vector.broadcast %cst_10 : f32 to vector<128x128xf32>
      %c0_11 = arith.constant 0 : index
      %c0_12 = arith.constant 0 : index
      %13 = vector.load %arg7[%c0_11, %c0_12] : memref<128x128xf32, #tpu.memory_space<vmem>>, vector<128x128xf32>
      tpu.vector_store %arg7[%c0_11, %c0_12], %12 {strides = array<i32>} : memref<128x128xf32, #tpu.memory_space<vmem>>, vector<128x128xf32>,
    } else {
    }
    %c0 = arith.constant 0 : index
    %c0_1 = arith.constant 0 : index
    %3 = vector.load %arg7[%c0, %c0_1] : memref<128x128xf32, #tpu.memory_space<vmem>>, vector<128x128xf32>
    %c0_2 = arith.constant 0 : index
    %c0_3 = arith.constant 0 : index
    %4 = vector.load %arg2[%c0_2, %c0_3] : memref<128x72xbf16, #tpu.memory_space<vmem>>, vector<128x72xbf16>
    %c0_4 = arith.constant 0 : index
    %c0_5 = arith.constant 0 : index
    %5 = vector.load %arg3[%c0_4, %c0_5] : memref<72x128xbf16, #tpu.memory_space<vmem>>, vector<72x128xbf16>
    %cst = arith.constant dense<0.000000e+00> : vector<128x128xf32>
    %6 = tpu.matmul %4, %5, %cst {dimension_numbers = #tpu.dot_dimension_numbers<[1], [0], [0], [1], [0, 0, 1, 1], [], []>} : vector<128x72xbf16>, vector<72x128xbf16>, vector<128x128xf32> -> vector<128x128xf32>
    %7 = arith.addf %3, %6 : vector<128x128xf32>
    %c0_6 = arith.constant 0 : index
    %c0_7 = arith.constant 0 : index
    %8 = vector.load %arg7[%c0_6, %c0_7] : memref<128x128xf32, #tpu.memory_space<vmem>>, vector<128x128xf32>
    tpu.vector_store %arg7[%c0_6, %c0_7], %7 {strides = array<i32>} : memref<128x128xf32, #tpu.memory_space<vmem>>, vector<128x128xf32>,
    %c0_i32_8 = arith.constant 0 : i32
    %9 = arith.cmpi eq, %arg1, %c0_i32_8 : i32
    %10 = arith.extui %9 : i1 to i32
    %c0_i32_9 = arith.constant 0 : i32
    %11 = arith.cmpi ne, %10, %c0_i32_9 : i32
    scf.if %11 {
      %c0_10 = arith.constant 0 : index
      %c0_11 = arith.constant 0 : index
      %12 = vector.load %arg7[%c0_10, %c0_11] : memref<128x128xf32, #tpu.memory_space<vmem>>, vector<128x128xf32>
      %c0_12 = arith.constant 0 : index
      %c0_13 = arith.constant 0 : index
      %13 = vector.load %arg4[%c0_12, %c0_13] : memref<1x128xf32, #tpu.memory_space<vmem>>, vector<1x128xf32>
      %14 = vector.broadcast %13 : vector<1x128xf32> to vector<128x128xf32>
      %15 = arith.addf %12, %14 : vector<128x128xf32>
      %c0_14 = arith.constant 0 : index
      %c0_15 = arith.constant 0 : index
      %16 = vector.load %arg5[%c0_14, %c0_15] : memref<128x128xbf16, #tpu.memory_space<vmem>>, vector<128x128xbf16>
      %17 = arith.extf %16 : vector<128x128xbf16> to vector<128x128xf32>
      %18 = arith.addf %15, %17 : vector<128x128xf32>
      %cst_16 = arith.constant 0.000000e+00 : f32
      %19 = vector.broadcast %cst_16 : f32 to vector<128x128xf32>
      %20 = arith.cmpf oge, %18, %19 : vector<128x128xf32>
      %cst_17 = arith.constant 0.00999999977 : f32
      %21 = vector.broadcast %cst_17 : f32 to vector<128x128xf32>
      %22 = arith.mulf %21, %18 : vector<128x128xf32>
      %23 = arith.select %20, %18, %22 : vector<128x128xi1>, vector<128x128xf32>
      %24 = arith.truncf %23 : vector<128x128xf32> to vector<128x128xbf16>
      %c0_18 = arith.constant 0 : index
      %c0_19 = arith.constant 0 : index
      %25 = vector.load %arg6[%c0_18, %c0_19] : memref<128x128xbf16, #tpu.memory_space<vmem>>, vector<128x128xbf16>
      tpu.vector_store %arg6[%c0_18, %c0_19], %24 {strides = array<i32>} : memref<128x128xbf16, #tpu.memory_space<vmem>>, vector<128x128xbf16>,
    } else {
    }
    return
  }
  func.func @transform_0(%arg0: i32, %arg1: i32) -> (i32, i32) {
    %c0_i32 = arith.constant 0 : i32
    return %arg0, %arg1 : i32, i32
  }
  func.func @transform_1(%arg0: i32, %arg1: i32) -> (i32, i32) {
    %c0_i32 = arith.constant 0 : i32
    %c0_i32_0 = arith.constant 0 : i32
    return %arg1, %c0_i32 : i32, i32
  }
  func.func @transform_2(%arg0: i32, %arg1: i32) -> (i32, i32) {
    %c0_i32 = arith.constant 0 : i32
    %c0_i32_0 = arith.constant 0 : i32
    %c0_i32_1 = arith.constant 0 : i32
    return %c0_i32, %c0_i32_0 : i32, i32
  }
  func.func @transform_3(%arg0: i32, %arg1: i32) -> (i32, i32) {
    %c0_i32 = arith.constant 0 : i32
    %c0_i32_0 = arith.constant 0 : i32
    return %arg0, %c0_i32 : i32, i32
  }
  func.func @transform_4(%arg0: i32, %arg1: i32) -> (i32, i32) {
    %c0_i32 = arith.constant 0 : i32
    %c0_i32_0 = arith.constant 0 : i32
    return %arg0, %c0_i32 : i32, i32
  }
}

module attributes {stable_mosaic.version = 11 : i64} {
  func.func @_fused_mm_kernel(%arg0: i32, %arg1: i32, %arg2: memref<128x16xbf16, #tpu.memory_space<vmem>>, %arg3: memref<16x128xbf16, #tpu.memory_space<vmem>>, %arg4: memref<1x128xf32, #tpu.memory_space<vmem>>, %arg5: memref<128x128xbf16, #tpu.memory_space<vmem>>, %arg6: memref<128x128xf32, #tpu.memory_space<vmem>>) attributes {dimension_semantics = [#tpu.dimension_semantics<parallel>, #tpu.dimension_semantics<arbitrary>], iteration_bounds = array<i64: 1, 1>, scalar_prefetch = 0 : i64, scratch_operands = 1 : i64, tpu.core_type = #tpu.core_type<tc>, window_params = [{transform_indices = @transform_0, window_bounds = array<i64: 128, 16>}, {transform_indices = @transform_1, window_bounds = array<i64: 16, 128>}, {pipeline_mode = #tpu.pipeline_mode<synchronous>, transform_indices = @transform_2, window_bounds = array<i64: 1, 128>}, {transform_indices = @transform_3, window_bounds = array<i64: 128, 128>}]} {
    %c0_i32 = arith.constant 0 : i32
    %0 = arith.cmpi eq, %arg1, %c0_i32 : i32
    %1 = arith.extui %0 : i1 to i32
    %c0_i32_0 = arith.constant 0 : i32
    %2 = arith.cmpi ne, %1, %c0_i32_0 : i32
    scf.if %2 {
      %cst_10 = arith.constant 0.000000e+00 : f32
      %12 = vector.broadcast %cst_10 : f32 to vector<128x128xf32>
      %c0_11 = arith.constant 0 : index
      %c0_12 = arith.constant 0 : index
      %13 = vector.load %arg6[%c0_11, %c0_12] : memref<128x128xf32, #tpu.memory_space<vmem>>, vector<128x128xf32>
      tpu.vector_store %arg6[%c0_11, %c0_12], %12 {strides = array<i32>} : memref<128x128xf32, #tpu.memory_space<vmem>>, vector<128x128xf32>,
    } else {
    }
    %c0 = arith.constant 0 : index
    %c0_1 = arith.constant 0 : index
    %3 = vector.load %arg6[%c0, %c0_1] : memref<128x128xf32, #tpu.memory_space<vmem>>, vector<128x128xf32>
    %c0_2 = arith.constant 0 : index
    %c0_3 = arith.constant 0 : index
    %4 = vector.load %arg2[%c0_2, %c0_3] : memref<128x16xbf16, #tpu.memory_space<vmem>>, vector<128x16xbf16>
    %c0_4 = arith.constant 0 : index
    %c0_5 = arith.constant 0 : index
    %5 = vector.load %arg3[%c0_4, %c0_5] : memref<16x128xbf16, #tpu.memory_space<vmem>>, vector<16x128xbf16>
    %cst = arith.constant dense<0.000000e+00> : vector<128x128xf32>
    %6 = tpu.matmul %4, %5, %cst {dimension_numbers = #tpu.dot_dimension_numbers<[1], [0], [0], [1], [0, 0, 1, 1], [], []>} : vector<128x16xbf16>, vector<16x128xbf16>, vector<128x128xf32> -> vector<128x128xf32>
    %7 = arith.addf %3, %6 : vector<128x128xf32>
    %c0_6 = arith.constant 0 : index
    %c0_7 = arith.constant 0 : index
    %8 = vector.load %arg6[%c0_6, %c0_7] : memref<128x128xf32, #tpu.memory_space<vmem>>, vector<128x128xf32>
    tpu.vector_store %arg6[%c0_6, %c0_7], %7 {strides = array<i32>} : memref<128x128xf32, #tpu.memory_space<vmem>>, vector<128x128xf32>,
    %c0_i32_8 = arith.constant 0 : i32
    %9 = arith.cmpi eq, %arg1, %c0_i32_8 : i32
    %10 = arith.extui %9 : i1 to i32
    %c0_i32_9 = arith.constant 0 : i32
    %11 = arith.cmpi ne, %10, %c0_i32_9 : i32
    scf.if %11 {
      %c0_10 = arith.constant 0 : index
      %c0_11 = arith.constant 0 : index
      %12 = vector.load %arg6[%c0_10, %c0_11] : memref<128x128xf32, #tpu.memory_space<vmem>>, vector<128x128xf32>
      %c0_12 = arith.constant 0 : index
      %c0_13 = arith.constant 0 : index
      %13 = vector.load %arg4[%c0_12, %c0_13] : memref<1x128xf32, #tpu.memory_space<vmem>>, vector<1x128xf32>
      %14 = vector.broadcast %13 : vector<1x128xf32> to vector<128x128xf32>
      %15 = arith.addf %12, %14 : vector<128x128xf32>
      %cst_14 = arith.constant 0.000000e+00 : f32
      %16 = vector.broadcast %cst_14 : f32 to vector<128x128xf32>
      %17 = arith.cmpf oge, %15, %16 : vector<128x128xf32>
      %cst_15 = arith.constant 0.00999999977 : f32
      %18 = vector.broadcast %cst_15 : f32 to vector<128x128xf32>
      %19 = arith.mulf %18, %15 : vector<128x128xf32>
      %20 = arith.select %17, %15, %19 : vector<128x128xi1>, vector<128x128xf32>
      %21 = arith.truncf %20 : vector<128x128xf32> to vector<128x128xbf16>
      %c0_16 = arith.constant 0 : index
      %c0_17 = arith.constant 0 : index
      %22 = vector.load %arg5[%c0_16, %c0_17] : memref<128x128xbf16, #tpu.memory_space<vmem>>, vector<128x128xbf16>
      tpu.vector_store %arg5[%c0_16, %c0_17], %21 {strides = array<i32>} : memref<128x128xbf16, #tpu.memory_space<vmem>>, vector<128x128xbf16>,
    } else {
    }
    return
  }
  func.func @transform_0(%arg0: i32, %arg1: i32) -> (i32, i32) {
    %c0_i32 = arith.constant 0 : i32
    return %arg0, %arg1 : i32, i32
  }
  func.func @transform_1(%arg0: i32, %arg1: i32) -> (i32, i32) {
    %c0_i32 = arith.constant 0 : i32
    %c0_i32_0 = arith.constant 0 : i32
    return %arg1, %c0_i32 : i32, i32
  }
  func.func @transform_2(%arg0: i32, %arg1: i32) -> (i32, i32) {
    %c0_i32 = arith.constant 0 : i32
    %c0_i32_0 = arith.constant 0 : i32
    %c0_i32_1 = arith.constant 0 : i32
    return %c0_i32, %c0_i32_0 : i32, i32
  }
  func.func @transform_3(%arg0: i32, %arg1: i32) -> (i32, i32) {
    %c0_i32 = arith.constant 0 : i32
    %c0_i32_0 = arith.constant 0 : i32
    return %arg0, %c0_i32 : i32, i32
  }
}

module attributes {stable_mosaic.version = 11 : i64} {
  func.func @_fused_mm_kernel(%arg0: i32, %arg1: i32, %arg2: memref<32x8xbf16, #tpu.memory_space<vmem>>, %arg3: memref<8x128xbf16, #tpu.memory_space<vmem>>, %arg4: memref<1x128xf32, #tpu.memory_space<vmem>>, %arg5: memref<32x128xbf16, #tpu.memory_space<vmem>>, %arg6: memref<32x128xf32, #tpu.memory_space<vmem>>) attributes {dimension_semantics = [#tpu.dimension_semantics<parallel>, #tpu.dimension_semantics<arbitrary>], iteration_bounds = array<i64: 1, 1>, scalar_prefetch = 0 : i64, scratch_operands = 1 : i64, tpu.core_type = #tpu.core_type<tc>, window_params = [{transform_indices = @transform_0, window_bounds = array<i64: 32, 8>}, {transform_indices = @transform_1, window_bounds = array<i64: 8, 128>}, {pipeline_mode = #tpu.pipeline_mode<synchronous>, transform_indices = @transform_2, window_bounds = array<i64: 1, 128>}, {transform_indices = @transform_3, window_bounds = array<i64: 32, 128>}]} {
    %c0_i32 = arith.constant 0 : i32
    %0 = arith.cmpi eq, %arg1, %c0_i32 : i32
    %1 = arith.extui %0 : i1 to i32
    %c0_i32_0 = arith.constant 0 : i32
    %2 = arith.cmpi ne, %1, %c0_i32_0 : i32
    scf.if %2 {
      %cst_10 = arith.constant 0.000000e+00 : f32
      %12 = vector.broadcast %cst_10 : f32 to vector<32x128xf32>
      %c0_11 = arith.constant 0 : index
      %c0_12 = arith.constant 0 : index
      %13 = vector.load %arg6[%c0_11, %c0_12] : memref<32x128xf32, #tpu.memory_space<vmem>>, vector<32x128xf32>
      tpu.vector_store %arg6[%c0_11, %c0_12], %12 {strides = array<i32>} : memref<32x128xf32, #tpu.memory_space<vmem>>, vector<32x128xf32>,
    } else {
    }
    %c0 = arith.constant 0 : index
    %c0_1 = arith.constant 0 : index
    %3 = vector.load %arg6[%c0, %c0_1] : memref<32x128xf32, #tpu.memory_space<vmem>>, vector<32x128xf32>
    %c0_2 = arith.constant 0 : index
    %c0_3 = arith.constant 0 : index
    %4 = vector.load %arg2[%c0_2, %c0_3] : memref<32x8xbf16, #tpu.memory_space<vmem>>, vector<32x8xbf16>
    %c0_4 = arith.constant 0 : index
    %c0_5 = arith.constant 0 : index
    %5 = vector.load %arg3[%c0_4, %c0_5] : memref<8x128xbf16, #tpu.memory_space<vmem>>, vector<8x128xbf16>
    %cst = arith.constant dense<0.000000e+00> : vector<32x128xf32>
    %6 = tpu.matmul %4, %5, %cst {dimension_numbers = #tpu.dot_dimension_numbers<[1], [0], [0], [1], [0, 0, 1, 1], [], []>} : vector<32x8xbf16>, vector<8x128xbf16>, vector<32x128xf32> -> vector<32x128xf32>
    %7 = arith.addf %3, %6 : vector<32x128xf32>
    %c0_6 = arith.constant 0 : index
    %c0_7 = arith.constant 0 : index
    %8 = vector.load %arg6[%c0_6, %c0_7] : memref<32x128xf32, #tpu.memory_space<vmem>>, vector<32x128xf32>
    tpu.vector_store %arg6[%c0_6, %c0_7], %7 {strides = array<i32>} : memref<32x128xf32, #tpu.memory_space<vmem>>, vector<32x128xf32>,
    %c0_i32_8 = arith.constant 0 : i32
    %9 = arith.cmpi eq, %arg1, %c0_i32_8 : i32
    %10 = arith.extui %9 : i1 to i32
    %c0_i32_9 = arith.constant 0 : i32
    %11 = arith.cmpi ne, %10, %c0_i32_9 : i32
    scf.if %11 {
      %c0_10 = arith.constant 0 : index
      %c0_11 = arith.constant 0 : index
      %12 = vector.load %arg6[%c0_10, %c0_11] : memref<32x128xf32, #tpu.memory_space<vmem>>, vector<32x128xf32>
      %c0_12 = arith.constant 0 : index
      %c0_13 = arith.constant 0 : index
      %13 = vector.load %arg4[%c0_12, %c0_13] : memref<1x128xf32, #tpu.memory_space<vmem>>, vector<1x128xf32>
      %14 = vector.broadcast %13 : vector<1x128xf32> to vector<32x128xf32>
      %15 = arith.addf %12, %14 : vector<32x128xf32>
      %16 = arith.truncf %15 : vector<32x128xf32> to vector<32x128xbf16>
      %c0_14 = arith.constant 0 : index
      %c0_15 = arith.constant 0 : index
      %17 = vector.load %arg5[%c0_14, %c0_15] : memref<32x128xbf16, #tpu.memory_space<vmem>>, vector<32x128xbf16>
      tpu.vector_store %arg5[%c0_14, %c0_15], %16 {strides = array<i32>} : memref<32x128xbf16, #tpu.memory_space<vmem>>, vector<32x128xbf16>,
    } else {
    }
    return
  }
  func.func @transform_0(%arg0: i32, %arg1: i32) -> (i32, i32) {
    %c0_i32 = arith.constant 0 : i32
    return %arg0, %arg1 : i32, i32
  }
  func.func @transform_1(%arg0: i32, %arg1: i32) -> (i32, i32) {
    %c0_i32 = arith.constant 0 : i32
    %c0_i32_0 = arith.constant 0 : i32
    return %arg1, %c0_i32 : i32, i32
  }
  func.func @transform_2(%arg0: i32, %arg1: i32) -> (i32, i32) {
    %c0_i32 = arith.constant 0 : i32
    %c0_i32_0 = arith.constant 0 : i32
    %c0_i32_1 = arith.constant 0 : i32
    return %c0_i32, %c0_i32_0 : i32, i32
  }
  func.func @transform_3(%arg0: i32, %arg1: i32) -> (i32, i32) {
    %c0_i32 = arith.constant 0 : i32
    %c0_i32_0 = arith.constant 0 : i32
    return %arg0, %c0_i32 : i32, i32
  }
}

module attributes {stable_mosaic.version = 11 : i64} {
  func.func @_fused_mm_kernel(%arg0: i32, %arg1: i32, %arg2: memref<32x72xbf16, #tpu.memory_space<vmem>>, %arg3: memref<72x128xbf16, #tpu.memory_space<vmem>>, %arg4: memref<1x128xf32, #tpu.memory_space<vmem>>, %arg5: memref<32x128xbf16, #tpu.memory_space<vmem>>, %arg6: memref<32x128xf32, #tpu.memory_space<vmem>>) attributes {dimension_semantics = [#tpu.dimension_semantics<parallel>, #tpu.dimension_semantics<arbitrary>], iteration_bounds = array<i64: 1, 1>, scalar_prefetch = 0 : i64, scratch_operands = 1 : i64, tpu.core_type = #tpu.core_type<tc>, window_params = [{transform_indices = @transform_0, window_bounds = array<i64: 32, 72>}, {transform_indices = @transform_1, window_bounds = array<i64: 72, 128>}, {pipeline_mode = #tpu.pipeline_mode<synchronous>, transform_indices = @transform_2, window_bounds = array<i64: 1, 128>}, {transform_indices = @transform_3, window_bounds = array<i64: 32, 128>}]} {
    %c0_i32 = arith.constant 0 : i32
    %0 = arith.cmpi eq, %arg1, %c0_i32 : i32
    %1 = arith.extui %0 : i1 to i32
    %c0_i32_0 = arith.constant 0 : i32
    %2 = arith.cmpi ne, %1, %c0_i32_0 : i32
    scf.if %2 {
      %cst_10 = arith.constant 0.000000e+00 : f32
      %12 = vector.broadcast %cst_10 : f32 to vector<32x128xf32>
      %c0_11 = arith.constant 0 : index
      %c0_12 = arith.constant 0 : index
      %13 = vector.load %arg6[%c0_11, %c0_12] : memref<32x128xf32, #tpu.memory_space<vmem>>, vector<32x128xf32>
      tpu.vector_store %arg6[%c0_11, %c0_12], %12 {strides = array<i32>} : memref<32x128xf32, #tpu.memory_space<vmem>>, vector<32x128xf32>,
    } else {
    }
    %c0 = arith.constant 0 : index
    %c0_1 = arith.constant 0 : index
    %3 = vector.load %arg6[%c0, %c0_1] : memref<32x128xf32, #tpu.memory_space<vmem>>, vector<32x128xf32>
    %c0_2 = arith.constant 0 : index
    %c0_3 = arith.constant 0 : index
    %4 = vector.load %arg2[%c0_2, %c0_3] : memref<32x72xbf16, #tpu.memory_space<vmem>>, vector<32x72xbf16>
    %c0_4 = arith.constant 0 : index
    %c0_5 = arith.constant 0 : index
    %5 = vector.load %arg3[%c0_4, %c0_5] : memref<72x128xbf16, #tpu.memory_space<vmem>>, vector<72x128xbf16>
    %cst = arith.constant dense<0.000000e+00> : vector<32x128xf32>
    %6 = tpu.matmul %4, %5, %cst {dimension_numbers = #tpu.dot_dimension_numbers<[1], [0], [0], [1], [0, 0, 1, 1], [], []>} : vector<32x72xbf16>, vector<72x128xbf16>, vector<32x128xf32> -> vector<32x128xf32>
    %7 = arith.addf %3, %6 : vector<32x128xf32>
    %c0_6 = arith.constant 0 : index
    %c0_7 = arith.constant 0 : index
    %8 = vector.load %arg6[%c0_6, %c0_7] : memref<32x128xf32, #tpu.memory_space<vmem>>, vector<32x128xf32>
    tpu.vector_store %arg6[%c0_6, %c0_7], %7 {strides = array<i32>} : memref<32x128xf32, #tpu.memory_space<vmem>>, vector<32x128xf32>,
    %c0_i32_8 = arith.constant 0 : i32
    %9 = arith.cmpi eq, %arg1, %c0_i32_8 : i32
    %10 = arith.extui %9 : i1 to i32
    %c0_i32_9 = arith.constant 0 : i32
    %11 = arith.cmpi ne, %10, %c0_i32_9 : i32
    scf.if %11 {
      %c0_10 = arith.constant 0 : index
      %c0_11 = arith.constant 0 : index
      %12 = vector.load %arg6[%c0_10, %c0_11] : memref<32x128xf32, #tpu.memory_space<vmem>>, vector<32x128xf32>
      %c0_12 = arith.constant 0 : index
      %c0_13 = arith.constant 0 : index
      %13 = vector.load %arg4[%c0_12, %c0_13] : memref<1x128xf32, #tpu.memory_space<vmem>>, vector<1x128xf32>
      %14 = vector.broadcast %13 : vector<1x128xf32> to vector<32x128xf32>
      %15 = arith.addf %12, %14 : vector<32x128xf32>
      %cst_14 = arith.constant 0.000000e+00 : f32
      %16 = vector.broadcast %cst_14 : f32 to vector<32x128xf32>
      %17 = arith.cmpf oge, %15, %16 : vector<32x128xf32>
      %cst_15 = arith.constant 0.00999999977 : f32
      %18 = vector.broadcast %cst_15 : f32 to vector<32x128xf32>
      %19 = arith.mulf %18, %15 : vector<32x128xf32>
      %20 = arith.select %17, %15, %19 : vector<32x128xi1>, vector<32x128xf32>
      %21 = arith.truncf %20 : vector<32x128xf32> to vector<32x128xbf16>
      %c0_16 = arith.constant 0 : index
      %c0_17 = arith.constant 0 : index
      %22 = vector.load %arg5[%c0_16, %c0_17] : memref<32x128xbf16, #tpu.memory_space<vmem>>, vector<32x128xbf16>
      tpu.vector_store %arg5[%c0_16, %c0_17], %21 {strides = array<i32>} : memref<32x128xbf16, #tpu.memory_space<vmem>>, vector<32x128xbf16>,
    } else {
    }
    return
  }
  func.func @transform_0(%arg0: i32, %arg1: i32) -> (i32, i32) {
    %c0_i32 = arith.constant 0 : i32
    return %arg0, %arg1 : i32, i32
  }
  func.func @transform_1(%arg0: i32, %arg1: i32) -> (i32, i32) {
    %c0_i32 = arith.constant 0 : i32
    %c0_i32_0 = arith.constant 0 : i32
    return %arg1, %c0_i32 : i32, i32
  }
  func.func @transform_2(%arg0: i32, %arg1: i32) -> (i32, i32) {
    %c0_i32 = arith.constant 0 : i32
    %c0_i32_0 = arith.constant 0 : i32
    %c0_i32_1 = arith.constant 0 : i32
    return %c0_i32, %c0_i32_0 : i32, i32
  }
  func.func @transform_3(%arg0: i32, %arg1: i32) -> (i32, i32) {
    %c0_i32 = arith.constant 0 : i32
    %c0_i32_0 = arith.constant 0 : i32
    return %arg0, %c0_i32 : i32, i32
  }
}

module attributes {stable_mosaic.version = 11 : i64} {
  func.func @_fused_mm_kernel(%arg0: i32, %arg1: i32, %arg2: memref<32x144xbf16, #tpu.memory_space<vmem>>, %arg3: memref<144x128xbf16, #tpu.memory_space<vmem>>, %arg4: memref<1x128xf32, #tpu.memory_space<vmem>>, %arg5: memref<32x128xbf16, #tpu.memory_space<vmem>>, %arg6: memref<32x128xbf16, #tpu.memory_space<vmem>>, %arg7: memref<32x128xf32, #tpu.memory_space<vmem>>) attributes {dimension_semantics = [#tpu.dimension_semantics<parallel>, #tpu.dimension_semantics<arbitrary>], iteration_bounds = array<i64: 1, 1>, scalar_prefetch = 0 : i64, scratch_operands = 1 : i64, tpu.core_type = #tpu.core_type<tc>, window_params = [{transform_indices = @transform_0, window_bounds = array<i64: 32, 144>}, {transform_indices = @transform_1, window_bounds = array<i64: 144, 128>}, {pipeline_mode = #tpu.pipeline_mode<synchronous>, transform_indices = @transform_2, window_bounds = array<i64: 1, 128>}, {transform_indices = @transform_3, window_bounds = array<i64: 32, 128>}, {transform_indices = @transform_4, window_bounds = array<i64: 32, 128>}]} {
    %c0_i32 = arith.constant 0 : i32
    %0 = arith.cmpi eq, %arg1, %c0_i32 : i32
    %1 = arith.extui %0 : i1 to i32
    %c0_i32_0 = arith.constant 0 : i32
    %2 = arith.cmpi ne, %1, %c0_i32_0 : i32
    scf.if %2 {
      %cst_10 = arith.constant 0.000000e+00 : f32
      %12 = vector.broadcast %cst_10 : f32 to vector<32x128xf32>
      %c0_11 = arith.constant 0 : index
      %c0_12 = arith.constant 0 : index
      %13 = vector.load %arg7[%c0_11, %c0_12] : memref<32x128xf32, #tpu.memory_space<vmem>>, vector<32x128xf32>
      tpu.vector_store %arg7[%c0_11, %c0_12], %12 {strides = array<i32>} : memref<32x128xf32, #tpu.memory_space<vmem>>, vector<32x128xf32>,
    } else {
    }
    %c0 = arith.constant 0 : index
    %c0_1 = arith.constant 0 : index
    %3 = vector.load %arg7[%c0, %c0_1] : memref<32x128xf32, #tpu.memory_space<vmem>>, vector<32x128xf32>
    %c0_2 = arith.constant 0 : index
    %c0_3 = arith.constant 0 : index
    %4 = vector.load %arg2[%c0_2, %c0_3] : memref<32x144xbf16, #tpu.memory_space<vmem>>, vector<32x144xbf16>
    %c0_4 = arith.constant 0 : index
    %c0_5 = arith.constant 0 : index
    %5 = vector.load %arg3[%c0_4, %c0_5] : memref<144x128xbf16, #tpu.memory_space<vmem>>, vector<144x128xbf16>
    %cst = arith.constant dense<0.000000e+00> : vector<32x128xf32>
    %6 = tpu.matmul %4, %5, %cst {dimension_numbers = #tpu.dot_dimension_numbers<[1], [0], [0], [1], [0, 0, 1, 1], [], []>} : vector<32x144xbf16>, vector<144x128xbf16>, vector<32x128xf32> -> vector<32x128xf32>
    %7 = arith.addf %3, %6 : vector<32x128xf32>
    %c0_6 = arith.constant 0 : index
    %c0_7 = arith.constant 0 : index
    %8 = vector.load %arg7[%c0_6, %c0_7] : memref<32x128xf32, #tpu.memory_space<vmem>>, vector<32x128xf32>
    tpu.vector_store %arg7[%c0_6, %c0_7], %7 {strides = array<i32>} : memref<32x128xf32, #tpu.memory_space<vmem>>, vector<32x128xf32>,
    %c0_i32_8 = arith.constant 0 : i32
    %9 = arith.cmpi eq, %arg1, %c0_i32_8 : i32
    %10 = arith.extui %9 : i1 to i32
    %c0_i32_9 = arith.constant 0 : i32
    %11 = arith.cmpi ne, %10, %c0_i32_9 : i32
    scf.if %11 {
      %c0_10 = arith.constant 0 : index
      %c0_11 = arith.constant 0 : index
      %12 = vector.load %arg7[%c0_10, %c0_11] : memref<32x128xf32, #tpu.memory_space<vmem>>, vector<32x128xf32>
      %c0_12 = arith.constant 0 : index
      %c0_13 = arith.constant 0 : index
      %13 = vector.load %arg4[%c0_12, %c0_13] : memref<1x128xf32, #tpu.memory_space<vmem>>, vector<1x128xf32>
      %14 = vector.broadcast %13 : vector<1x128xf32> to vector<32x128xf32>
      %15 = arith.addf %12, %14 : vector<32x128xf32>
      %c0_14 = arith.constant 0 : index
      %c0_15 = arith.constant 0 : index
      %16 = vector.load %arg5[%c0_14, %c0_15] : memref<32x128xbf16, #tpu.memory_space<vmem>>, vector<32x128xbf16>
      %17 = arith.extf %16 : vector<32x128xbf16> to vector<32x128xf32>
      %18 = arith.addf %15, %17 : vector<32x128xf32>
      %cst_16 = arith.constant 0.000000e+00 : f32
      %19 = vector.broadcast %cst_16 : f32 to vector<32x128xf32>
      %20 = arith.cmpf oge, %18, %19 : vector<32x128xf32>
      %cst_17 = arith.constant 0.00999999977 : f32
      %21 = vector.broadcast %cst_17 : f32 to vector<32x128xf32>
      %22 = arith.mulf %21, %18 : vector<32x128xf32>
      %23 = arith.select %20, %18, %22 : vector<32x128xi1>, vector<32x128xf32>
      %24 = arith.truncf %23 : vector<32x128xf32> to vector<32x128xbf16>
      %c0_18 = arith.constant 0 : index
      %c0_19 = arith.constant 0 : index
      %25 = vector.load %arg6[%c0_18, %c0_19] : memref<32x128xbf16, #tpu.memory_space<vmem>>, vector<32x128xbf16>
      tpu.vector_store %arg6[%c0_18, %c0_19], %24 {strides = array<i32>} : memref<32x128xbf16, #tpu.memory_space<vmem>>, vector<32x128xbf16>,
    } else {
    }
    return
  }
  func.func @transform_0(%arg0: i32, %arg1: i32) -> (i32, i32) {
    %c0_i32 = arith.constant 0 : i32
    return %arg0, %arg1 : i32, i32
  }
  func.func @transform_1(%arg0: i32, %arg1: i32) -> (i32, i32) {
    %c0_i32 = arith.constant 0 : i32
    %c0_i32_0 = arith.constant 0 : i32
    return %arg1, %c0_i32 : i32, i32
  }
  func.func @transform_2(%arg0: i32, %arg1: i32) -> (i32, i32) {
    %c0_i32 = arith.constant 0 : i32
    %c0_i32_0 = arith.constant 0 : i32
    %c0_i32_1 = arith.constant 0 : i32
    return %c0_i32, %c0_i32_0 : i32, i32
  }
  func.func @transform_3(%arg0: i32, %arg1: i32) -> (i32, i32) {
    %c0_i32 = arith.constant 0 : i32
    %c0_i32_0 = arith.constant 0 : i32
    return %arg0, %c0_i32 : i32, i32
  }
  func.func @transform_4(%arg0: i32, %arg1: i32) -> (i32, i32) {
    %c0_i32 = arith.constant 0 : i32
    %c0_i32_0 = arith.constant 0 : i32
    return %arg0, %c0_i32 : i32, i32
  }
}

module attributes {stable_mosaic.version = 11 : i64} {
  func.func @_fused_mm_kernel(%arg0: i32, %arg1: i32, %arg2: memref<32x144xbf16, #tpu.memory_space<vmem>>, %arg3: memref<144x128xbf16, #tpu.memory_space<vmem>>, %arg4: memref<1x128xf32, #tpu.memory_space<vmem>>, %arg5: memref<32x128xbf16, #tpu.memory_space<vmem>>, %arg6: memref<32x128xf32, #tpu.memory_space<vmem>>) attributes {dimension_semantics = [#tpu.dimension_semantics<parallel>, #tpu.dimension_semantics<arbitrary>], iteration_bounds = array<i64: 1, 1>, scalar_prefetch = 0 : i64, scratch_operands = 1 : i64, tpu.core_type = #tpu.core_type<tc>, window_params = [{transform_indices = @transform_0, window_bounds = array<i64: 32, 144>}, {transform_indices = @transform_1, window_bounds = array<i64: 144, 128>}, {pipeline_mode = #tpu.pipeline_mode<synchronous>, transform_indices = @transform_2, window_bounds = array<i64: 1, 128>}, {transform_indices = @transform_3, window_bounds = array<i64: 32, 128>}]} {
    %c0_i32 = arith.constant 0 : i32
    %0 = arith.cmpi eq, %arg1, %c0_i32 : i32
    %1 = arith.extui %0 : i1 to i32
    %c0_i32_0 = arith.constant 0 : i32
    %2 = arith.cmpi ne, %1, %c0_i32_0 : i32
    scf.if %2 {
      %cst_10 = arith.constant 0.000000e+00 : f32
      %12 = vector.broadcast %cst_10 : f32 to vector<32x128xf32>
      %c0_11 = arith.constant 0 : index
      %c0_12 = arith.constant 0 : index
      %13 = vector.load %arg6[%c0_11, %c0_12] : memref<32x128xf32, #tpu.memory_space<vmem>>, vector<32x128xf32>
      tpu.vector_store %arg6[%c0_11, %c0_12], %12 {strides = array<i32>} : memref<32x128xf32, #tpu.memory_space<vmem>>, vector<32x128xf32>,
    } else {
    }
    %c0 = arith.constant 0 : index
    %c0_1 = arith.constant 0 : index
    %3 = vector.load %arg6[%c0, %c0_1] : memref<32x128xf32, #tpu.memory_space<vmem>>, vector<32x128xf32>
    %c0_2 = arith.constant 0 : index
    %c0_3 = arith.constant 0 : index
    %4 = vector.load %arg2[%c0_2, %c0_3] : memref<32x144xbf16, #tpu.memory_space<vmem>>, vector<32x144xbf16>
    %c0_4 = arith.constant 0 : index
    %c0_5 = arith.constant 0 : index
    %5 = vector.load %arg3[%c0_4, %c0_5] : memref<144x128xbf16, #tpu.memory_space<vmem>>, vector<144x128xbf16>
    %cst = arith.constant dense<0.000000e+00> : vector<32x128xf32>
    %6 = tpu.matmul %4, %5, %cst {dimension_numbers = #tpu.dot_dimension_numbers<[1], [0], [0], [1], [0, 0, 1, 1], [], []>} : vector<32x144xbf16>, vector<144x128xbf16>, vector<32x128xf32> -> vector<32x128xf32>
    %7 = arith.addf %3, %6 : vector<32x128xf32>
    %c0_6 = arith.constant 0 : index
    %c0_7 = arith.constant 0 : index
    %8 = vector.load %arg6[%c0_6, %c0_7] : memref<32x128xf32, #tpu.memory_space<vmem>>, vector<32x128xf32>
    tpu.vector_store %arg6[%c0_6, %c0_7], %7 {strides = array<i32>} : memref<32x128xf32, #tpu.memory_space<vmem>>, vector<32x128xf32>,
    %c0_i32_8 = arith.constant 0 : i32
    %9 = arith.cmpi eq, %arg1, %c0_i32_8 : i32
    %10 = arith.extui %9 : i1 to i32
    %c0_i32_9 = arith.constant 0 : i32
    %11 = arith.cmpi ne, %10, %c0_i32_9 : i32
    scf.if %11 {
      %c0_10 = arith.constant 0 : index
      %c0_11 = arith.constant 0 : index
      %12 = vector.load %arg6[%c0_10, %c0_11] : memref<32x128xf32, #tpu.memory_space<vmem>>, vector<32x128xf32>
      %c0_12 = arith.constant 0 : index
      %c0_13 = arith.constant 0 : index
      %13 = vector.load %arg4[%c0_12, %c0_13] : memref<1x128xf32, #tpu.memory_space<vmem>>, vector<1x128xf32>
      %14 = vector.broadcast %13 : vector<1x128xf32> to vector<32x128xf32>
      %15 = arith.addf %12, %14 : vector<32x128xf32>
      %cst_14 = arith.constant 0.000000e+00 : f32
      %16 = vector.broadcast %cst_14 : f32 to vector<32x128xf32>
      %17 = arith.cmpf oge, %15, %16 : vector<32x128xf32>
      %cst_15 = arith.constant 0.00999999977 : f32
      %18 = vector.broadcast %cst_15 : f32 to vector<32x128xf32>
      %19 = arith.mulf %18, %15 : vector<32x128xf32>
      %20 = arith.select %17, %15, %19 : vector<32x128xi1>, vector<32x128xf32>
      %21 = arith.truncf %20 : vector<32x128xf32> to vector<32x128xbf16>
      %c0_16 = arith.constant 0 : index
      %c0_17 = arith.constant 0 : index
      %22 = vector.load %arg5[%c0_16, %c0_17] : memref<32x128xbf16, #tpu.memory_space<vmem>>, vector<32x128xbf16>
      tpu.vector_store %arg5[%c0_16, %c0_17], %21 {strides = array<i32>} : memref<32x128xbf16, #tpu.memory_space<vmem>>, vector<32x128xbf16>,
    } else {
    }
    return
  }
  func.func @transform_0(%arg0: i32, %arg1: i32) -> (i32, i32) {
    %c0_i32 = arith.constant 0 : i32
    return %arg0, %arg1 : i32, i32
  }
  func.func @transform_1(%arg0: i32, %arg1: i32) -> (i32, i32) {
    %c0_i32 = arith.constant 0 : i32
    %c0_i32_0 = arith.constant 0 : i32
    return %arg1, %c0_i32 : i32, i32
  }
  func.func @transform_2(%arg0: i32, %arg1: i32) -> (i32, i32) {
    %c0_i32 = arith.constant 0 : i32
    %c0_i32_0 = arith.constant 0 : i32
    %c0_i32_1 = arith.constant 0 : i32
    return %c0_i32, %c0_i32_0 : i32, i32
  }
  func.func @transform_3(%arg0: i32, %arg1: i32) -> (i32, i32) {
    %c0_i32 = arith.constant 0 : i32
    %c0_i32_0 = arith.constant 0 : i32
    return %arg0, %c0_i32 : i32, i32
  }
}

module attributes {stable_mosaic.version = 11 : i64} {
  func.func @_fused_mm_kernel(%arg0: i32, %arg1: i32, %arg2: memref<32x32xbf16, #tpu.memory_space<vmem>>, %arg3: memref<32x128xbf16, #tpu.memory_space<vmem>>, %arg4: memref<1x128xf32, #tpu.memory_space<vmem>>, %arg5: memref<32x128xbf16, #tpu.memory_space<vmem>>, %arg6: memref<32x128xf32, #tpu.memory_space<vmem>>) attributes {dimension_semantics = [#tpu.dimension_semantics<parallel>, #tpu.dimension_semantics<arbitrary>], iteration_bounds = array<i64: 1, 1>, scalar_prefetch = 0 : i64, scratch_operands = 1 : i64, tpu.core_type = #tpu.core_type<tc>, window_params = [{transform_indices = @transform_0, window_bounds = array<i64: 32, 32>}, {transform_indices = @transform_1, window_bounds = array<i64: 32, 128>}, {pipeline_mode = #tpu.pipeline_mode<synchronous>, transform_indices = @transform_2, window_bounds = array<i64: 1, 128>}, {transform_indices = @transform_3, window_bounds = array<i64: 32, 128>}]} {
    %c0_i32 = arith.constant 0 : i32
    %0 = arith.cmpi eq, %arg1, %c0_i32 : i32
    %1 = arith.extui %0 : i1 to i32
    %c0_i32_0 = arith.constant 0 : i32
    %2 = arith.cmpi ne, %1, %c0_i32_0 : i32
    scf.if %2 {
      %cst_10 = arith.constant 0.000000e+00 : f32
      %12 = vector.broadcast %cst_10 : f32 to vector<32x128xf32>
      %c0_11 = arith.constant 0 : index
      %c0_12 = arith.constant 0 : index
      %13 = vector.load %arg6[%c0_11, %c0_12] : memref<32x128xf32, #tpu.memory_space<vmem>>, vector<32x128xf32>
      tpu.vector_store %arg6[%c0_11, %c0_12], %12 {strides = array<i32>} : memref<32x128xf32, #tpu.memory_space<vmem>>, vector<32x128xf32>,
    } else {
    }
    %c0 = arith.constant 0 : index
    %c0_1 = arith.constant 0 : index
    %3 = vector.load %arg6[%c0, %c0_1] : memref<32x128xf32, #tpu.memory_space<vmem>>, vector<32x128xf32>
    %c0_2 = arith.constant 0 : index
    %c0_3 = arith.constant 0 : index
    %4 = vector.load %arg2[%c0_2, %c0_3] : memref<32x32xbf16, #tpu.memory_space<vmem>>, vector<32x32xbf16>
    %c0_4 = arith.constant 0 : index
    %c0_5 = arith.constant 0 : index
    %5 = vector.load %arg3[%c0_4, %c0_5] : memref<32x128xbf16, #tpu.memory_space<vmem>>, vector<32x128xbf16>
    %cst = arith.constant dense<0.000000e+00> : vector<32x128xf32>
    %6 = tpu.matmul %4, %5, %cst {dimension_numbers = #tpu.dot_dimension_numbers<[1], [0], [0], [1], [0, 0, 1, 1], [], []>} : vector<32x32xbf16>, vector<32x128xbf16>, vector<32x128xf32> -> vector<32x128xf32>
    %7 = arith.addf %3, %6 : vector<32x128xf32>
    %c0_6 = arith.constant 0 : index
    %c0_7 = arith.constant 0 : index
    %8 = vector.load %arg6[%c0_6, %c0_7] : memref<32x128xf32, #tpu.memory_space<vmem>>, vector<32x128xf32>
    tpu.vector_store %arg6[%c0_6, %c0_7], %7 {strides = array<i32>} : memref<32x128xf32, #tpu.memory_space<vmem>>, vector<32x128xf32>,
    %c0_i32_8 = arith.constant 0 : i32
    %9 = arith.cmpi eq, %arg1, %c0_i32_8 : i32
    %10 = arith.extui %9 : i1 to i32
    %c0_i32_9 = arith.constant 0 : i32
    %11 = arith.cmpi ne, %10, %c0_i32_9 : i32
    scf.if %11 {
      %c0_10 = arith.constant 0 : index
      %c0_11 = arith.constant 0 : index
      %12 = vector.load %arg6[%c0_10, %c0_11] : memref<32x128xf32, #tpu.memory_space<vmem>>, vector<32x128xf32>
      %c0_12 = arith.constant 0 : index
      %c0_13 = arith.constant 0 : index
      %13 = vector.load %arg4[%c0_12, %c0_13] : memref<1x128xf32, #tpu.memory_space<vmem>>, vector<1x128xf32>
      %14 = vector.broadcast %13 : vector<1x128xf32> to vector<32x128xf32>
      %15 = arith.addf %12, %14 : vector<32x128xf32>
      %cst_14 = arith.constant 0.000000e+00 : f32
      %16 = vector.broadcast %cst_14 : f32 to vector<32x128xf32>
      %17 = arith.cmpf oge, %15, %16 : vector<32x128xf32>
      %cst_15 = arith.constant 0.00999999977 : f32
      %18 = vector.broadcast %cst_15 : f32 to vector<32x128xf32>
      %19 = arith.mulf %18, %15 : vector<32x128xf32>
      %20 = arith.select %17, %15, %19 : vector<32x128xi1>, vector<32x128xf32>
      %21 = arith.truncf %20 : vector<32x128xf32> to vector<32x128xbf16>
      %c0_16 = arith.constant 0 : index
      %c0_17 = arith.constant 0 : index
      %22 = vector.load %arg5[%c0_16, %c0_17] : memref<32x128xbf16, #tpu.memory_space<vmem>>, vector<32x128xbf16>
      tpu.vector_store %arg5[%c0_16, %c0_17], %21 {strides = array<i32>} : memref<32x128xbf16, #tpu.memory_space<vmem>>, vector<32x128xbf16>,
    } else {
    }
    return
  }
  func.func @transform_0(%arg0: i32, %arg1: i32) -> (i32, i32) {
    %c0_i32 = arith.constant 0 : i32
    return %arg0, %arg1 : i32, i32
  }
  func.func @transform_1(%arg0: i32, %arg1: i32) -> (i32, i32) {
    %c0_i32 = arith.constant 0 : i32
    %c0_i32_0 = arith.constant 0 : i32
    return %arg1, %c0_i32 : i32, i32
  }
  func.func @transform_2(%arg0: i32, %arg1: i32) -> (i32, i32) {
    %c0_i32 = arith.constant 0 : i32
    %c0_i32_0 = arith.constant 0 : i32
    %c0_i32_1 = arith.constant 0 : i32
    return %c0_i32, %c0_i32_0 : i32, i32
  }
  func.func @transform_3(%arg0: i32, %arg1: i32) -> (i32, i32) {
    %c0_i32 = arith.constant 0 : i32
    %c0_i32_0 = arith.constant 0 : i32
    return %arg0, %c0_i32 : i32, i32
  }
}

module attributes {stable_mosaic.version = 11 : i64} {
  func.func @_fused_mm_kernel(%arg0: i32, %arg1: i32, %arg2: memref<32x56xbf16, #tpu.memory_space<vmem>>, %arg3: memref<56x128xbf16, #tpu.memory_space<vmem>>, %arg4: memref<1x128xf32, #tpu.memory_space<vmem>>, %arg5: memref<32x128xbf16, #tpu.memory_space<vmem>>, %arg6: memref<32x128xf32, #tpu.memory_space<vmem>>) attributes {dimension_semantics = [#tpu.dimension_semantics<parallel>, #tpu.dimension_semantics<arbitrary>], iteration_bounds = array<i64: 1, 1>, scalar_prefetch = 0 : i64, scratch_operands = 1 : i64, tpu.core_type = #tpu.core_type<tc>, window_params = [{transform_indices = @transform_0, window_bounds = array<i64: 32, 56>}, {transform_indices = @transform_1, window_bounds = array<i64: 56, 128>}, {pipeline_mode = #tpu.pipeline_mode<synchronous>, transform_indices = @transform_2, window_bounds = array<i64: 1, 128>}, {transform_indices = @transform_3, window_bounds = array<i64: 32, 128>}]} {
    %c0_i32 = arith.constant 0 : i32
    %0 = arith.cmpi eq, %arg1, %c0_i32 : i32
    %1 = arith.extui %0 : i1 to i32
    %c0_i32_0 = arith.constant 0 : i32
    %2 = arith.cmpi ne, %1, %c0_i32_0 : i32
    scf.if %2 {
      %cst_10 = arith.constant 0.000000e+00 : f32
      %12 = vector.broadcast %cst_10 : f32 to vector<32x128xf32>
      %c0_11 = arith.constant 0 : index
      %c0_12 = arith.constant 0 : index
      %13 = vector.load %arg6[%c0_11, %c0_12] : memref<32x128xf32, #tpu.memory_space<vmem>>, vector<32x128xf32>
      tpu.vector_store %arg6[%c0_11, %c0_12], %12 {strides = array<i32>} : memref<32x128xf32, #tpu.memory_space<vmem>>, vector<32x128xf32>,
    } else {
    }
    %c0 = arith.constant 0 : index
    %c0_1 = arith.constant 0 : index
    %3 = vector.load %arg6[%c0, %c0_1] : memref<32x128xf32, #tpu.memory_space<vmem>>, vector<32x128xf32>
    %c0_2 = arith.constant 0 : index
    %c0_3 = arith.constant 0 : index
    %4 = vector.load %arg2[%c0_2, %c0_3] : memref<32x56xbf16, #tpu.memory_space<vmem>>, vector<32x56xbf16>
    %c0_4 = arith.constant 0 : index
    %c0_5 = arith.constant 0 : index
    %5 = vector.load %arg3[%c0_4, %c0_5] : memref<56x128xbf16, #tpu.memory_space<vmem>>, vector<56x128xbf16>
    %cst = arith.constant dense<0.000000e+00> : vector<32x128xf32>
    %6 = tpu.matmul %4, %5, %cst {dimension_numbers = #tpu.dot_dimension_numbers<[1], [0], [0], [1], [0, 0, 1, 1], [], []>} : vector<32x56xbf16>, vector<56x128xbf16>, vector<32x128xf32> -> vector<32x128xf32>
    %7 = arith.addf %3, %6 : vector<32x128xf32>
    %c0_6 = arith.constant 0 : index
    %c0_7 = arith.constant 0 : index
    %8 = vector.load %arg6[%c0_6, %c0_7] : memref<32x128xf32, #tpu.memory_space<vmem>>, vector<32x128xf32>
    tpu.vector_store %arg6[%c0_6, %c0_7], %7 {strides = array<i32>} : memref<32x128xf32, #tpu.memory_space<vmem>>, vector<32x128xf32>,
    %c0_i32_8 = arith.constant 0 : i32
    %9 = arith.cmpi eq, %arg1, %c0_i32_8 : i32
    %10 = arith.extui %9 : i1 to i32
    %c0_i32_9 = arith.constant 0 : i32
    %11 = arith.cmpi ne, %10, %c0_i32_9 : i32
    scf.if %11 {
      %c0_10 = arith.constant 0 : index
      %c0_11 = arith.constant 0 : index
      %12 = vector.load %arg6[%c0_10, %c0_11] : memref<32x128xf32, #tpu.memory_space<vmem>>, vector<32x128xf32>
      %c0_12 = arith.constant 0 : index
      %c0_13 = arith.constant 0 : index
      %13 = vector.load %arg4[%c0_12, %c0_13] : memref<1x128xf32, #tpu.memory_space<vmem>>, vector<1x128xf32>
      %14 = vector.broadcast %13 : vector<1x128xf32> to vector<32x128xf32>
      %15 = arith.addf %12, %14 : vector<32x128xf32>
      %cst_14 = arith.constant 0.000000e+00 : f32
      %16 = vector.broadcast %cst_14 : f32 to vector<32x128xf32>
      %17 = arith.cmpf oge, %15, %16 : vector<32x128xf32>
      %cst_15 = arith.constant 0.00999999977 : f32
      %18 = vector.broadcast %cst_15 : f32 to vector<32x128xf32>
      %19 = arith.mulf %18, %15 : vector<32x128xf32>
      %20 = arith.select %17, %15, %19 : vector<32x128xi1>, vector<32x128xf32>
      %21 = arith.truncf %20 : vector<32x128xf32> to vector<32x128xbf16>
      %c0_16 = arith.constant 0 : index
      %c0_17 = arith.constant 0 : index
      %22 = vector.load %arg5[%c0_16, %c0_17] : memref<32x128xbf16, #tpu.memory_space<vmem>>, vector<32x128xbf16>
      tpu.vector_store %arg5[%c0_16, %c0_17], %21 {strides = array<i32>} : memref<32x128xbf16, #tpu.memory_space<vmem>>, vector<32x128xbf16>,
    } else {
    }
    return
  }
  func.func @transform_0(%arg0: i32, %arg1: i32) -> (i32, i32) {
    %c0_i32 = arith.constant 0 : i32
    return %arg0, %arg1 : i32, i32
  }
  func.func @transform_1(%arg0: i32, %arg1: i32) -> (i32, i32) {
    %c0_i32 = arith.constant 0 : i32
    %c0_i32_0 = arith.constant 0 : i32
    return %arg1, %c0_i32 : i32, i32
  }
  func.func @transform_2(%arg0: i32, %arg1: i32) -> (i32, i32) {
    %c0_i32 = arith.constant 0 : i32
    %c0_i32_0 = arith.constant 0 : i32
    %c0_i32_1 = arith.constant 0 : i32
    return %c0_i32, %c0_i32_0 : i32, i32
  }
  func.func @transform_3(%arg0: i32, %arg1: i32) -> (i32, i32) {
    %c0_i32 = arith.constant 0 : i32
    %c0_i32_0 = arith.constant 0 : i32
    return %arg0, %c0_i32 : i32, i32
  }
}

module attributes {stable_mosaic.version = 11 : i64} {
  func.func @_fused_mm_kernel(%arg0: i32, %arg1: i32, %arg2: memref<32x16xbf16, #tpu.memory_space<vmem>>, %arg3: memref<16x128xbf16, #tpu.memory_space<vmem>>, %arg4: memref<1x128xf32, #tpu.memory_space<vmem>>, %arg5: memref<32x128xbf16, #tpu.memory_space<vmem>>, %arg6: memref<32x128xf32, #tpu.memory_space<vmem>>) attributes {dimension_semantics = [#tpu.dimension_semantics<parallel>, #tpu.dimension_semantics<arbitrary>], iteration_bounds = array<i64: 1, 1>, scalar_prefetch = 0 : i64, scratch_operands = 1 : i64, tpu.core_type = #tpu.core_type<tc>, window_params = [{transform_indices = @transform_0, window_bounds = array<i64: 32, 16>}, {transform_indices = @transform_1, window_bounds = array<i64: 16, 128>}, {pipeline_mode = #tpu.pipeline_mode<synchronous>, transform_indices = @transform_2, window_bounds = array<i64: 1, 128>}, {transform_indices = @transform_3, window_bounds = array<i64: 32, 128>}]} {
    %c0_i32 = arith.constant 0 : i32
    %0 = arith.cmpi eq, %arg1, %c0_i32 : i32
    %1 = arith.extui %0 : i1 to i32
    %c0_i32_0 = arith.constant 0 : i32
    %2 = arith.cmpi ne, %1, %c0_i32_0 : i32
    scf.if %2 {
      %cst_10 = arith.constant 0.000000e+00 : f32
      %12 = vector.broadcast %cst_10 : f32 to vector<32x128xf32>
      %c0_11 = arith.constant 0 : index
      %c0_12 = arith.constant 0 : index
      %13 = vector.load %arg6[%c0_11, %c0_12] : memref<32x128xf32, #tpu.memory_space<vmem>>, vector<32x128xf32>
      tpu.vector_store %arg6[%c0_11, %c0_12], %12 {strides = array<i32>} : memref<32x128xf32, #tpu.memory_space<vmem>>, vector<32x128xf32>,
    } else {
    }
    %c0 = arith.constant 0 : index
    %c0_1 = arith.constant 0 : index
    %3 = vector.load %arg6[%c0, %c0_1] : memref<32x128xf32, #tpu.memory_space<vmem>>, vector<32x128xf32>
    %c0_2 = arith.constant 0 : index
    %c0_3 = arith.constant 0 : index
    %4 = vector.load %arg2[%c0_2, %c0_3] : memref<32x16xbf16, #tpu.memory_space<vmem>>, vector<32x16xbf16>
    %c0_4 = arith.constant 0 : index
    %c0_5 = arith.constant 0 : index
    %5 = vector.load %arg3[%c0_4, %c0_5] : memref<16x128xbf16, #tpu.memory_space<vmem>>, vector<16x128xbf16>
    %cst = arith.constant dense<0.000000e+00> : vector<32x128xf32>
    %6 = tpu.matmul %4, %5, %cst {dimension_numbers = #tpu.dot_dimension_numbers<[1], [0], [0], [1], [0, 0, 1, 1], [], []>} : vector<32x16xbf16>, vector<16x128xbf16>, vector<32x128xf32> -> vector<32x128xf32>
    %7 = arith.addf %3, %6 : vector<32x128xf32>
    %c0_6 = arith.constant 0 : index
    %c0_7 = arith.constant 0 : index
    %8 = vector.load %arg6[%c0_6, %c0_7] : memref<32x128xf32, #tpu.memory_space<vmem>>, vector<32x128xf32>
    tpu.vector_store %arg6[%c0_6, %c0_7], %7 {strides = array<i32>} : memref<32x128xf32, #tpu.memory_space<vmem>>, vector<32x128xf32>,
    %c0_i32_8 = arith.constant 0 : i32
    %9 = arith.cmpi eq, %arg1, %c0_i32_8 : i32
    %10 = arith.extui %9 : i1 to i32
    %c0_i32_9 = arith.constant 0 : i32
    %11 = arith.cmpi ne, %10, %c0_i32_9 : i32
    scf.if %11 {
      %c0_10 = arith.constant 0 : index
      %c0_11 = arith.constant 0 : index
      %12 = vector.load %arg6[%c0_10, %c0_11] : memref<32x128xf32, #tpu.memory_space<vmem>>, vector<32x128xf32>
      %c0_12 = arith.constant 0 : index
      %c0_13 = arith.constant 0 : index
      %13 = vector.load %arg4[%c0_12, %c0_13] : memref<1x128xf32, #tpu.memory_space<vmem>>, vector<1x128xf32>
      %14 = vector.broadcast %13 : vector<1x128xf32> to vector<32x128xf32>
      %15 = arith.addf %12, %14 : vector<32x128xf32>
      %16 = arith.truncf %15 : vector<32x128xf32> to vector<32x128xbf16>
      %c0_14 = arith.constant 0 : index
      %c0_15 = arith.constant 0 : index
      %17 = vector.load %arg5[%c0_14, %c0_15] : memref<32x128xbf16, #tpu.memory_space<vmem>>, vector<32x128xbf16>
      tpu.vector_store %arg5[%c0_14, %c0_15], %16 {strides = array<i32>} : memref<32x128xbf16, #tpu.memory_space<vmem>>, vector<32x128xbf16>,
    } else {
    }
    return
  }
  func.func @transform_0(%arg0: i32, %arg1: i32) -> (i32, i32) {
    %c0_i32 = arith.constant 0 : i32
    return %arg0, %arg1 : i32, i32
  }
  func.func @transform_1(%arg0: i32, %arg1: i32) -> (i32, i32) {
    %c0_i32 = arith.constant 0 : i32
    %c0_i32_0 = arith.constant 0 : i32
    return %arg1, %c0_i32 : i32, i32
  }
  func.func @transform_2(%arg0: i32, %arg1: i32) -> (i32, i32) {
    %c0_i32 = arith.constant 0 : i32
    %c0_i32_0 = arith.constant 0 : i32
    %c0_i32_1 = arith.constant 0 : i32
    return %c0_i32, %c0_i32_0 : i32, i32
  }
  func.func @transform_3(%arg0: i32, %arg1: i32) -> (i32, i32) {
    %c0_i32 = arith.constant 0 : i32
    %c0_i32_0 = arith.constant 0 : i32
    return %arg0, %c0_i32 : i32, i32
  }
}

module attributes {stable_mosaic.version = 11 : i64} {
  func.func @_fused_mm_kernel(%arg0: i32, %arg1: i32, %arg2: memref<32x32xbf16, #tpu.memory_space<vmem>>, %arg3: memref<32x128xbf16, #tpu.memory_space<vmem>>, %arg4: memref<1x128xf32, #tpu.memory_space<vmem>>, %arg5: memref<32x128xbf16, #tpu.memory_space<vmem>>, %arg6: memref<32x128xf32, #tpu.memory_space<vmem>>) attributes {dimension_semantics = [#tpu.dimension_semantics<parallel>, #tpu.dimension_semantics<arbitrary>], iteration_bounds = array<i64: 1, 1>, scalar_prefetch = 0 : i64, scratch_operands = 1 : i64, tpu.core_type = #tpu.core_type<tc>, window_params = [{transform_indices = @transform_0, window_bounds = array<i64: 32, 32>}, {transform_indices = @transform_1, window_bounds = array<i64: 32, 128>}, {pipeline_mode = #tpu.pipeline_mode<synchronous>, transform_indices = @transform_2, window_bounds = array<i64: 1, 128>}, {transform_indices = @transform_3, window_bounds = array<i64: 32, 128>}]} {
    %c0_i32 = arith.constant 0 : i32
    %0 = arith.cmpi eq, %arg1, %c0_i32 : i32
    %1 = arith.extui %0 : i1 to i32
    %c0_i32_0 = arith.constant 0 : i32
    %2 = arith.cmpi ne, %1, %c0_i32_0 : i32
    scf.if %2 {
      %cst_10 = arith.constant 0.000000e+00 : f32
      %12 = vector.broadcast %cst_10 : f32 to vector<32x128xf32>
      %c0_11 = arith.constant 0 : index
      %c0_12 = arith.constant 0 : index
      %13 = vector.load %arg6[%c0_11, %c0_12] : memref<32x128xf32, #tpu.memory_space<vmem>>, vector<32x128xf32>
      tpu.vector_store %arg6[%c0_11, %c0_12], %12 {strides = array<i32>} : memref<32x128xf32, #tpu.memory_space<vmem>>, vector<32x128xf32>,
    } else {
    }
    %c0 = arith.constant 0 : index
    %c0_1 = arith.constant 0 : index
    %3 = vector.load %arg6[%c0, %c0_1] : memref<32x128xf32, #tpu.memory_space<vmem>>, vector<32x128xf32>
    %c0_2 = arith.constant 0 : index
    %c0_3 = arith.constant 0 : index
    %4 = vector.load %arg2[%c0_2, %c0_3] : memref<32x32xbf16, #tpu.memory_space<vmem>>, vector<32x32xbf16>
    %c0_4 = arith.constant 0 : index
    %c0_5 = arith.constant 0 : index
    %5 = vector.load %arg3[%c0_4, %c0_5] : memref<32x128xbf16, #tpu.memory_space<vmem>>, vector<32x128xbf16>
    %cst = arith.constant dense<0.000000e+00> : vector<32x128xf32>
    %6 = tpu.matmul %4, %5, %cst {dimension_numbers = #tpu.dot_dimension_numbers<[1], [0], [0], [1], [0, 0, 1, 1], [], []>} : vector<32x32xbf16>, vector<32x128xbf16>, vector<32x128xf32> -> vector<32x128xf32>
    %7 = arith.addf %3, %6 : vector<32x128xf32>
    %c0_6 = arith.constant 0 : index
    %c0_7 = arith.constant 0 : index
    %8 = vector.load %arg6[%c0_6, %c0_7] : memref<32x128xf32, #tpu.memory_space<vmem>>, vector<32x128xf32>
    tpu.vector_store %arg6[%c0_6, %c0_7], %7 {strides = array<i32>} : memref<32x128xf32, #tpu.memory_space<vmem>>, vector<32x128xf32>,
    %c0_i32_8 = arith.constant 0 : i32
    %9 = arith.cmpi eq, %arg1, %c0_i32_8 : i32
    %10 = arith.extui %9 : i1 to i32
    %c0_i32_9 = arith.constant 0 : i32
    %11 = arith.cmpi ne, %10, %c0_i32_9 : i32
    scf.if %11 {
      %c0_10 = arith.constant 0 : index
      %c0_11 = arith.constant 0 : index
      %12 = vector.load %arg6[%c0_10, %c0_11] : memref<32x128xf32, #tpu.memory_space<vmem>>, vector<32x128xf32>
      %c0_12 = arith.constant 0 : index
      %c0_13 = arith.constant 0 : index
      %13 = vector.load %arg4[%c0_12, %c0_13] : memref<1x128xf32, #tpu.memory_space<vmem>>, vector<1x128xf32>
      %14 = vector.broadcast %13 : vector<1x128xf32> to vector<32x128xf32>
      %15 = arith.addf %12, %14 : vector<32x128xf32>
      %16 = arith.truncf %15 : vector<32x128xf32> to vector<32x128xbf16>
      %c0_14 = arith.constant 0 : index
      %c0_15 = arith.constant 0 : index
      %17 = vector.load %arg5[%c0_14, %c0_15] : memref<32x128xbf16, #tpu.memory_space<vmem>>, vector<32x128xbf16>
      tpu.vector_store %arg5[%c0_14, %c0_15], %16 {strides = array<i32>} : memref<32x128xbf16, #tpu.memory_space<vmem>>, vector<32x128xbf16>,
    } else {
    }
    return
  }
  func.func @transform_0(%arg0: i32, %arg1: i32) -> (i32, i32) {
    %c0_i32 = arith.constant 0 : i32
    return %arg0, %arg1 : i32, i32
  }
  func.func @transform_1(%arg0: i32, %arg1: i32) -> (i32, i32) {
    %c0_i32 = arith.constant 0 : i32
    %c0_i32_0 = arith.constant 0 : i32
    return %arg1, %c0_i32 : i32, i32
  }
  func.func @transform_2(%arg0: i32, %arg1: i32) -> (i32, i32) {
    %c0_i32 = arith.constant 0 : i32
    %c0_i32_0 = arith.constant 0 : i32
    %c0_i32_1 = arith.constant 0 : i32
    return %c0_i32, %c0_i32_0 : i32, i32
  }
  func.func @transform_3(%arg0: i32, %arg1: i32) -> (i32, i32) {
    %c0_i32 = arith.constant 0 : i32
    %c0_i32_0 = arith.constant 0 : i32
    return %arg0, %c0_i32 : i32, i32
  }
}

module attributes {stable_mosaic.version = 11 : i64} {
  func.func @_fused_mm_kernel(%arg0: i32, %arg1: i32, %arg2: memref<32x64xbf16, #tpu.memory_space<vmem>>, %arg3: memref<64x128xbf16, #tpu.memory_space<vmem>>, %arg4: memref<1x128xf32, #tpu.memory_space<vmem>>, %arg5: memref<32x128xbf16, #tpu.memory_space<vmem>>, %arg6: memref<32x128xf32, #tpu.memory_space<vmem>>) attributes {dimension_semantics = [#tpu.dimension_semantics<parallel>, #tpu.dimension_semantics<arbitrary>], iteration_bounds = array<i64: 1, 1>, scalar_prefetch = 0 : i64, scratch_operands = 1 : i64, tpu.core_type = #tpu.core_type<tc>, window_params = [{transform_indices = @transform_0, window_bounds = array<i64: 32, 64>}, {transform_indices = @transform_1, window_bounds = array<i64: 64, 128>}, {pipeline_mode = #tpu.pipeline_mode<synchronous>, transform_indices = @transform_2, window_bounds = array<i64: 1, 128>}, {transform_indices = @transform_3, window_bounds = array<i64: 32, 128>}]} {
    %c0_i32 = arith.constant 0 : i32
    %0 = arith.cmpi eq, %arg1, %c0_i32 : i32
    %1 = arith.extui %0 : i1 to i32
    %c0_i32_0 = arith.constant 0 : i32
    %2 = arith.cmpi ne, %1, %c0_i32_0 : i32
    scf.if %2 {
      %cst_10 = arith.constant 0.000000e+00 : f32
      %12 = vector.broadcast %cst_10 : f32 to vector<32x128xf32>
      %c0_11 = arith.constant 0 : index
      %c0_12 = arith.constant 0 : index
      %13 = vector.load %arg6[%c0_11, %c0_12] : memref<32x128xf32, #tpu.memory_space<vmem>>, vector<32x128xf32>
      tpu.vector_store %arg6[%c0_11, %c0_12], %12 {strides = array<i32>} : memref<32x128xf32, #tpu.memory_space<vmem>>, vector<32x128xf32>,
    } else {
    }
    %c0 = arith.constant 0 : index
    %c0_1 = arith.constant 0 : index
    %3 = vector.load %arg6[%c0, %c0_1] : memref<32x128xf32, #tpu.memory_space<vmem>>, vector<32x128xf32>
    %c0_2 = arith.constant 0 : index
    %c0_3 = arith.constant 0 : index
    %4 = vector.load %arg2[%c0_2, %c0_3] : memref<32x64xbf16, #tpu.memory_space<vmem>>, vector<32x64xbf16>
    %c0_4 = arith.constant 0 : index
    %c0_5 = arith.constant 0 : index
    %5 = vector.load %arg3[%c0_4, %c0_5] : memref<64x128xbf16, #tpu.memory_space<vmem>>, vector<64x128xbf16>
    %cst = arith.constant dense<0.000000e+00> : vector<32x128xf32>
    %6 = tpu.matmul %4, %5, %cst {dimension_numbers = #tpu.dot_dimension_numbers<[1], [0], [0], [1], [0, 0, 1, 1], [], []>} : vector<32x64xbf16>, vector<64x128xbf16>, vector<32x128xf32> -> vector<32x128xf32>
    %7 = arith.addf %3, %6 : vector<32x128xf32>
    %c0_6 = arith.constant 0 : index
    %c0_7 = arith.constant 0 : index
    %8 = vector.load %arg6[%c0_6, %c0_7] : memref<32x128xf32, #tpu.memory_space<vmem>>, vector<32x128xf32>
    tpu.vector_store %arg6[%c0_6, %c0_7], %7 {strides = array<i32>} : memref<32x128xf32, #tpu.memory_space<vmem>>, vector<32x128xf32>,
    %c0_i32_8 = arith.constant 0 : i32
    %9 = arith.cmpi eq, %arg1, %c0_i32_8 : i32
    %10 = arith.extui %9 : i1 to i32
    %c0_i32_9 = arith.constant 0 : i32
    %11 = arith.cmpi ne, %10, %c0_i32_9 : i32
    scf.if %11 {
      %c0_10 = arith.constant 0 : index
      %c0_11 = arith.constant 0 : index
      %12 = vector.load %arg6[%c0_10, %c0_11] : memref<32x128xf32, #tpu.memory_space<vmem>>, vector<32x128xf32>
      %c0_12 = arith.constant 0 : index
      %c0_13 = arith.constant 0 : index
      %13 = vector.load %arg4[%c0_12, %c0_13] : memref<1x128xf32, #tpu.memory_space<vmem>>, vector<1x128xf32>
      %14 = vector.broadcast %13 : vector<1x128xf32> to vector<32x128xf32>
      %15 = arith.addf %12, %14 : vector<32x128xf32>
      %16 = arith.truncf %15 : vector<32x128xf32> to vector<32x128xbf16>
      %c0_14 = arith.constant 0 : index
      %c0_15 = arith.constant 0 : index
      %17 = vector.load %arg5[%c0_14, %c0_15] : memref<32x128xbf16, #tpu.memory_space<vmem>>, vector<32x128xbf16>
      tpu.vector_store %arg5[%c0_14, %c0_15], %16 {strides = array<i32>} : memref<32x128xbf16, #tpu.memory_space<vmem>>, vector<32x128xbf16>,
    } else {
    }
    return
  }
  func.func @transform_0(%arg0: i32, %arg1: i32) -> (i32, i32) {
    %c0_i32 = arith.constant 0 : i32
    return %arg0, %arg1 : i32, i32
  }
  func.func @transform_1(%arg0: i32, %arg1: i32) -> (i32, i32) {
    %c0_i32 = arith.constant 0 : i32
    %c0_i32_0 = arith.constant 0 : i32
    return %arg1, %c0_i32 : i32, i32
  }
  func.func @transform_2(%arg0: i32, %arg1: i32) -> (i32, i32) {
    %c0_i32 = arith.constant 0 : i32
    %c0_i32_0 = arith.constant 0 : i32
    %c0_i32_1 = arith.constant 0 : i32
    return %c0_i32, %c0_i32_0 : i32, i32
  }
  func.func @transform_3(%arg0: i32, %arg1: i32) -> (i32, i32) {
    %c0_i32 = arith.constant 0 : i32
    %c0_i32_0 = arith.constant 0 : i32
    return %arg0, %c0_i32 : i32, i32
  }
}

</mosaic_0001>

<bundles_post_ra>
// kernel: _lambda_.23
= control target key start
LH: loop header
LB: loop body
LE: loop exit
PB: predicated region body
PF: predicated region fallthrough
CT: control target
= control target key end

     0   :  { %s2683_s12 = smov 0   ;;  %s2685_s13 = smov 0   ;;  %s2951_s0 = inlined_call_operand.vmem [shape: bf16[2048,147], index: 0, kind: input, shape index: {}]   ;;  %s2952_s1 = inlined_call_operand.vmem [shape: bf16[147,128], index: 1, kind: input, shape index: {}]   ;;  %s2953_s2 = inlined_call_operand.vmem [shape: f32[1,128], index: 2, kind: input, shape index: {}]   ;;  %s2954_s3 = inlined_call_operand.vmem [shape: bf16[2048,128], index: 3, kind: output, shape index: {}]  }
   0x1   :  { %s2687_s14 = smov 0  }
   0x2 LB: > { %s25_s15 = sadd.s32 1, %s2655_s13  ;;  %p2050_p0 = scmp.ge.s32.totalorder %s2659_s14, 1  ;;  %s2659_s14 = sphi %s2687_s14, %s13_s14   ;;  %s2655_s13 = sphi %s2685_s13, %s2956_s13   ;;  %s2651_s12 = sphi %s2683_s12, %s2955_s12  }
   0x3   : > { %p27_p1 = scmp.ge.s32.totalorder %s25_s15, 4  ;;  %p169_p2 = scmp.lt.s32.totalorder %s2659_s14, 5 }
   0x5   : > { %s2958_s15 = smov (%p27_p1, %s25_s15), 0  ;;  %p170_p3 = pnand %p2050_p0, %p169_p2 }
   0x6   : > { %v2531_v0 = vld [vmem:[%s2952_s1] sm:$0xff] (!%p170_p3)   ;;  %v2661_v1 = vmov (!%p170_p3), 0   ;;  %v2532_v2 = vld [vmem:[%s2952_s1 + $0x8] sm:$0xff] (!%p170_p3)   ;;  %v2533_v3 = vld [vmem:[%s2952_s1 + $0x10] sm:$0xff] (!%p170_p3)   ;;  %s2051_s22 = sshll.u32 (!%p170_p3), %s2651_s12, 6  ;;  %vm788_vm0 = vcmask (!%p170_p3), 154624  }
   0x7   : > { %173 = sbr.rel (%p170_p3) target bundleno = 389 (0x185), region = 32  ;;  %892 = vmatprep.subr.bf16.mxu0 (!%p170_p3), %v2661_v1  ;;  %2485 = vmatprep.subr.bf16.mxu1 (!%p170_p3), %v2661_v1  ;;  %p205_p4 = scmp.lt.s32.totalorder (!%p170_p3), %s2051_s22, 255  ;;  %v2534_v4 = vld [vmem:[%s2952_s1 + $0x18] sm:$0xff] (!%p170_p3)   ;;  %v2535_v5 = vld [vmem:[%s2952_s1 + $0x20] sm:$0xff] (!%p170_p3)   ;;  %v2536_v8 = vld [vmem:[%s2952_s1 + $0x28] sm:$0xff] (!%p170_p3)   ;;  %vm885_vm1 = vcmask (!%p170_p3), 1040384  }
   0x8   : > { %893 = vmatpush1.bf16.msra.mxu0 (!%p170_p3), %v2531_v0  ;;  %2495 = vmatpush1.bf16.msra.mxu1 (!%p170_p3), %v2531_v0  ;;  %v2537_v9 = vld [vmem:[%s2952_s1 + $0x30] sm:$0xff] (!%p170_p3)   ;;  %v2538_v10 = vld [vmem:[%s2952_s1 + $0x38] sm:$0xff] (!%p170_p3)   ;;  %vm886_vm2 = vcmask (!%p170_p3), 1041408   ;;  %v2662_v11 = vmov (!%p170_p3), 65535   ;;  %v2539_v13 = vld [vmem:[%s2952_s1 + $0x40] sm:$0xff] (!%p170_p3)  }
   0x9   : > { %894 = vmatprep.subr.bf16.mxu0 (!%p170_p3), %v2661_v1  ;;  %2486 = vmatprep.subr.bf16.mxu1 (!%p170_p3), %v2661_v1  ;;  %v887_v12 = vsel (!%p170_p3), %vm885_vm1, 4294967295, %v2662_v11  ;;  %v2540_v14 = vld [vmem:[%s2952_s1 + $0x48] ss:$0 sps:$4 sm:$0x33] (!%p170_p3)  }
   0xa   : > { %v888_v15 = vsel (!%p170_p3), %vm886_vm2, %v887_v12, 0 }
   0xb   : > { %v890_v16 = vand.u32 (!%p170_p3), %v2540_v14, %v888_v15  ;;  %v2838_v15 = vld [vmem:[%s2953_s2] ss:$0 sm:$0xff] (!%p170_p3) }
   0xc   : > { %895 = vmatpush1.bf16.msra.mxu0 (!%p170_p3), %v2532_v2  ;;  %2496 = vmatpush1.bf16.msra.mxu1 (!%p170_p3), %v2532_v2 }
   0xd   : > { %896 = vmatprep.subr.bf16.mxu0 (!%p170_p3), %v2661_v1  ;;  %2487 = vmatprep.subr.bf16.mxu1 (!%p170_p3), %v2661_v1 }
   0xe   : > { %s2960_s22 = smov (!%p205_p4, %s2051_s22), 255 }
   0xf   : > { %s2229_s25 = sshll.u32 %s2960_s22, 3  ;;  %s2055_s19 = sshll.u32 %s2960_s22, 2 }
  0x10   : > { %897 = vmatpush1.bf16.msra.mxu0 %v2533_v3  ;;  %2497 = vmatpush1.bf16.msra.mxu1 %v2533_v3  ;;  %s2719_s28 = scalar_lea.vmem %s2951_s0, %s2229_s25  ;;  %s2848_s23 = scalar_lea.vmem %s2954_s3, %s2055_s19 }
  0x11   : > { %898 = vmatprep.subr.bf16.mxu0 %v2661_v1  ;;  %2488 = vmatprep.subr.bf16.mxu1 %v2661_v1  ;;  %v2543_v6 = vld [vmem:[%s2719_s28 + $0x4] ss:$8 sps:$4 sm:$0xff]   ;;  %v2541_v17 = vld [vmem:[%s2719_s28] ss:$8 sps:$4 sm:$0xff]   ;;  %v2547_v19 = vld [vmem:[%s2719_s28 + $0x14] ss:$8 sps:$4 sm:$0xff]  }
  0x12   : > { %v2546_v7 = vld [vmem:[%s2719_s28 + $0x104] ss:$8 sps:$4 sm:$0xff]   ;;  %2130 = vmatprep.mubr.msk.bf16.mxu0 %vm788_vm0, %v2543_v6  ;;  %v2544_v18 = vld [vmem:[%s2719_s28 + $0x100] ss:$8 sps:$4 sm:$0xff]   ;;  %v2549_v20 = vld [vmem:[%s2719_s28 + $0x114] ss:$8 sps:$4 sm:$0xff]  }
  0x13   : > { %2146 = vmatprep.mubr.msk.bf16.mxu1 %vm788_vm0, %v2546_v7  ;;  %v2551_v21 = vld [vmem:[%s2719_s28 + $0x10] ss:$8 sps:$4 sm:$0xff]   ;;  %v2553_v23 = vld [vmem:[%s2719_s28 + $0x24] ss:$8 sps:$4 sm:$0xff]   ;;  %v2557_v25 = vld [vmem:[%s2719_s28 + $0x20] ss:$8 sps:$4 sm:$0xff]  }
  0x14   : > { %899 = vmatpush1.bf16.msra.mxu0 %v2534_v4  ;;  %2498 = vmatpush1.bf16.msra.mxu1 %v2534_v4  ;;  %v2552_v22 = vld [vmem:[%s2719_s28 + $0x110] ss:$8 sps:$4 sm:$0xff]   ;;  %v2555_v24 = vld [vmem:[%s2719_s28 + $0x124] ss:$8 sps:$4 sm:$0xff]   ;;  %v2558_v26 = vld [vmem:[%s2719_s28 + $0x120] ss:$8 sps:$4 sm:$0xff]  }
  0x15   : > { %900 = vmatprep.subr.bf16.mxu0 %v2661_v1  ;;  %2489 = vmatprep.subr.bf16.mxu1 %v2661_v1  ;;  %v2559_v27 = vld [vmem:[%s2719_s28 + $0x34] ss:$8 sps:$4 sm:$0xff]   ;;  %v2563_v29 = vld [vmem:[%s2719_s28 + $0x30] ss:$8 sps:$4 sm:$0xff]   ;;  %v2565_v31 = vld [vmem:[%s2719_s28 + $0x44] ss:$8 sps:$4 sm:$0xff]  }
  0x16   : > { %v2561_v28 = vld [vmem:[%s2719_s28 + $0x134] ss:$8 sps:$4 sm:$0xff]   ;;  %v2564_v30 = vld [vmem:[%s2719_s28 + $0x130] ss:$8 sps:$4 sm:$0xff]   ;;  %v2567_v32 = vld [vmem:[%s2719_s28 + $0x144] ss:$8 sps:$4 sm:$0xff]  }
  0x17   : > { %v2569_v33 = vld [vmem:[%s2719_s28 + $0x40] ss:$8 sps:$4 sm:$0xff]   ;;  %v2571_v35 = vld [vmem:[%s2719_s28 + $0x54] ss:$8 sps:$4 sm:$0xff]   ;;  %v2575_v37 = vld [vmem:[%s2719_s28 + $0x50] ss:$8 sps:$4 sm:$0xff]  }
  0x18   : > { %901 = vmatpush1.bf16.msra.mxu0 %v2535_v5  ;;  %2499 = vmatpush1.bf16.msra.mxu1 %v2535_v5  ;;  %v2570_v34 = vld [vmem:[%s2719_s28 + $0x140] ss:$8 sps:$4 sm:$0xff]   ;;  %v2573_v36 = vld [vmem:[%s2719_s28 + $0x154] ss:$8 sps:$4 sm:$0xff]   ;;  %v2576_v38 = vld [vmem:[%s2719_s28 + $0x150] ss:$8 sps:$4 sm:$0xff]  }
  0x19   : > { %902 = vmatprep.subr.bf16.mxu0 %v2661_v1  ;;  %2490 = vmatprep.subr.bf16.mxu1 %v2661_v1  ;;  %v2577_v39 = vld [vmem:[%s2719_s28 + $0x64] ss:$8 sps:$4 sm:$0xff]   ;;  %v2581_v41 = vld [vmem:[%s2719_s28 + $0x60] ss:$8 sps:$4 sm:$0xff]   ;;  %v2583_v43 = vld [vmem:[%s2719_s28 + $0x74] ss:$8 sps:$4 sm:$0xff]  }
  0x1a   : > { %v2579_v40 = vld [vmem:[%s2719_s28 + $0x164] ss:$8 sps:$4 sm:$0xff]   ;;  %v2582_v42 = vld [vmem:[%s2719_s28 + $0x160] ss:$8 sps:$4 sm:$0xff]   ;;  %v2585_v44 = vld [vmem:[%s2719_s28 + $0x174] ss:$8 sps:$4 sm:$0xff]  }
  0x1b   : > { %v2587_v45 = vld [vmem:[%s2719_s28 + $0x70] ss:$8 sps:$4 sm:$0xff]   ;;  %v2589_v47 = vld [vmem:[%s2719_s28 + $0x84] ss:$8 sps:$4 sm:$0xff]   ;;  %v2593_v49 = vld [vmem:[%s2719_s28 + $0x80] ss:$8 sps:$4 sm:$0xff]  }
  0x1c   : > { %903 = vmatpush1.bf16.msra.mxu0 %v2536_v8  ;;  %2500 = vmatpush1.bf16.msra.mxu1 %v2536_v8  ;;  %v2588_v46 = vld [vmem:[%s2719_s28 + $0x170] ss:$8 sps:$4 sm:$0xff]   ;;  %v2591_v48 = vld [vmem:[%s2719_s28 + $0x184] ss:$8 sps:$4 sm:$0xff]   ;;  %v2594_v50 = vld [vmem:[%s2719_s28 + $0x180] ss:$8 sps:$4 sm:$0xff]  }
  0x1d   : > { %904 = vmatprep.subr.bf16.mxu0 %v2661_v1  ;;  %2491 = vmatprep.subr.bf16.mxu1 %v2661_v1  ;;  %v2595_v51 = vld [vmem:[%s2719_s28 + $0x94] ss:$8 sps:$4 sm:$0xff]   ;;  %v2599_v53 = vld [vmem:[%s2719_s28 + $0x90] ss:$8 sps:$4 sm:$0xff]   ;;  %v2601_v55 = vld [vmem:[%s2719_s28 + $0xa4] ss:$8 sps:$4 sm:$0xff]  }
  0x1e   : > { %v2597_v52 = vld [vmem:[%s2719_s28 + $0x194] ss:$8 sps:$4 sm:$0xff]   ;;  %v2600_v54 = vld [vmem:[%s2719_s28 + $0x190] ss:$8 sps:$4 sm:$0xff]   ;;  %v2603_v56 = vld [vmem:[%s2719_s28 + $0x1a4] ss:$8 sps:$4 sm:$0xff]  }
  0x1f   : > { %v2605_v57 = vld [vmem:[%s2719_s28 + $0xa0] ss:$8 sps:$4 sm:$0xff]   ;;  %v2607_v59 = vld [vmem:[%s2719_s28 + $0xb4] ss:$8 sps:$4 sm:$0xff]   ;;  %v2611_v61 = vld [vmem:[%s2719_s28 + $0xb0] ss:$8 sps:$4 sm:$0xff]  }
  0x20   : > { %905 = vmatpush1.bf16.msra.mxu0 %v2537_v9  ;;  %2501 = vmatpush1.bf16.msra.mxu1 %v2537_v9  ;;  %v2606_v58 = vld [vmem:[%s2719_s28 + $0x1a0] ss:$8 sps:$4 sm:$0xff]   ;;  %v2609_v60 = vld [vmem:[%s2719_s28 + $0x1b4] ss:$8 sps:$4 sm:$0xff]   ;;  %v2612_v62 = vld [vmem:[%s2719_s28 + $0x1b0] ss:$8 sps:$4 sm:$0xff]  }
  0x21   : > { %906 = vmatprep.subr.bf16.mxu0 %v2661_v1  ;;  %2492 = vmatprep.subr.bf16.mxu1 %v2661_v1  ;;  %v2613_v63 = vld [vmem:[%s2719_s28 + $0xc4] ss:$8 sps:$4 sm:$0xff]   ;;  %v2618_v2 = vld [vmem:[%s2719_s28 + $0x1c0] ss:$8 sps:$4 sm:$0xff]   ;;  %v2619_v3 = vld [vmem:[%s2719_s28 + $0xd4] ss:$8 sps:$4 sm:$0xff]  }
  0x22   : > { %v2615_v0 = vld [vmem:[%s2719_s28 + $0x1c4] ss:$8 sps:$4 sm:$0xff]   ;;  %v2621_v4 = vld [vmem:[%s2719_s28 + $0x1d4] ss:$8 sps:$4 sm:$0xff]   ;;  %v2623_v5 = vld [vmem:[%s2719_s28 + $0xd0] ss:$8 sps:$4 sm:$0xff]  }
  0x23   : > { %v2624_v6 = vld [vmem:[%s2719_s28 + $0x1d0] ss:$8 sps:$4 sm:$0xff]   ;;  %v2625_v7 = vld [vmem:[%s2719_s28 + $0xe4] ss:$8 sps:$4 sm:$0xff]   ;;  %v2629_v9 = vld [vmem:[%s2719_s28 + $0xe0] ss:$8 sps:$4 sm:$0xff]  }
  0x24   : > { %907 = vmatpush1.bf16.msra.mxu0 %v2538_v10  ;;  %2502 = vmatpush1.bf16.msra.mxu1 %v2538_v10  ;;  %v2627_v8 = vld [vmem:[%s2719_s28 + $0x1e4] ss:$8 sps:$4 sm:$0xff]   ;;  %v2630_v10 = vld [vmem:[%s2719_s28 + $0x1e0] ss:$8 sps:$4 sm:$0xff]   ;;  %v2631_v11 = vld [vmem:[%s2719_s28 + $0xf4] ss:$8 sps:$4 sm:$0xff]  }
  0x25   : > { %908 = vmatprep.subr.bf16.mxu0 %v2661_v1  ;;  %2493 = vmatprep.subr.bf16.mxu1 %v2661_v1  ;;  %v2633_v12 = vld [vmem:[%s2719_s28 + $0x1f4] ss:$8 sps:$4 sm:$0xff]   ;;  %v2636_v14 = vld [vmem:[%s2719_s28 + $0x1f0] ss:$8 sps:$4 sm:$0xff]  }
  0x28   : > { %909 = vmatpush1.bf16.msra.mxu0 %v2539_v13  ;;  %2503 = vmatpush1.bf16.msra.mxu1 %v2539_v13  ;;  %v2635_v13 = vld [vmem:[%s2719_s28 + $0xf0] ss:$8 sps:$4 sm:$0xff]  }
  0x29   : > { %910 = vmatprep.subr.bf16.mxu0 %v2661_v1  ;;  %2494 = vmatprep.subr.bf16.mxu1 %v2661_v1  ;;  %v2617_v1 = vld [vmem:[%s2719_s28 + $0xc0] ss:$8 sps:$4 sm:$0xff]  }
  0x2c   : > { %911 = vmatpush1.bf16.msra.mxu0 %v890_v16  ;;  %2504 = vmatpush1.bf16.msra.mxu1 %v890_v16 }
  0x2f   : > { %925 = vmatmul.mubr.bf16.vlgmr.msra.gmra.mrb[0].mxu0 %v2541_v17  ;;  %1053 = vmatmul.mubr.bf16.vlgmr.msra.gmra.mrb[0].mxu1 %v2544_v18 }
  0x30   : > { %2131 = vmatprep.mubr.msk.bf16.mxu0 %vm788_vm0, %v2547_v19  ;;  %2147 = vmatprep.mubr.msk.bf16.mxu1 %vm788_vm0, %v2549_v20 }
  0x37   : > { %933 = vmatmul.mubr.bf16.gmra.mrb[4].mxu0 %v2551_v21  ;;  %1061 = vmatmul.mubr.bf16.gmra.mrb[4].mxu1 %v2552_v22 }
  0x38   : > { %2132 = vmatprep.mubr.msk.bf16.mxu0 %vm788_vm0, %v2553_v23  ;;  %2148 = vmatprep.mubr.msk.bf16.mxu1 %vm788_vm0, %v2555_v24 }
  0x3f   : > { %941 = vmatmul.mubr.bf16.gmra.mrb[8].mxu0 %v2557_v25  ;;  %1069 = vmatmul.mubr.bf16.gmra.mrb[8].mxu1 %v2558_v26 }
  0x40   : > { %2133 = vmatprep.mubr.msk.bf16.mxu0 %vm788_vm0, %v2559_v27  ;;  %2149 = vmatprep.mubr.msk.bf16.mxu1 %vm788_vm0, %v2561_v28 }
  0x47   : > { %949 = vmatmul.mubr.bf16.gmra.mrb[12].mxu0 %v2563_v29  ;;  %1077 = vmatmul.mubr.bf16.gmra.mrb[12].mxu1 %v2564_v30 }
  0x48   : > { %2134 = vmatprep.mubr.msk.bf16.mxu0 %vm788_vm0, %v2565_v31  ;;  %2150 = vmatprep.mubr.msk.bf16.mxu1 %vm788_vm0, %v2567_v32 }
  0x4f   : > { %957 = vmatmul.mubr.bf16.gmra.mrb[16].mxu0 %v2569_v33  ;;  %1085 = vmatmul.mubr.bf16.gmra.mrb[16].mxu1 %v2570_v34 }
  0x50   : > { %2135 = vmatprep.mubr.msk.bf16.mxu0 %vm788_vm0, %v2571_v35  ;;  %2151 = vmatprep.mubr.msk.bf16.mxu1 %vm788_vm0, %v2573_v36 }
  0x57   : > { %965 = vmatmul.mubr.bf16.gmra.mrb[20].mxu0 %v2575_v37  ;;  %1093 = vmatmul.mubr.bf16.gmra.mrb[20].mxu1 %v2576_v38 }
  0x58   : > { %2136 = vmatprep.mubr.msk.bf16.mxu0 %vm788_vm0, %v2577_v39  ;;  %2152 = vmatprep.mubr.msk.bf16.mxu1 %vm788_vm0, %v2579_v40 }
  0x5f   : > { %973 = vmatmul.mubr.bf16.gmra.mrb[24].mxu0 %v2581_v41  ;;  %1101 = vmatmul.mubr.bf16.gmra.mrb[24].mxu1 %v2582_v42 }
  0x60   : > { %2137 = vmatprep.mubr.msk.bf16.mxu0 %vm788_vm0, %v2583_v43  ;;  %2153 = vmatprep.mubr.msk.bf16.mxu1 %vm788_vm0, %v2585_v44 }
  0x67   : > { %981 = vmatmul.mubr.bf16.gmra.mrb[28].mxu0 %v2587_v45  ;;  %1109 = vmatmul.mubr.bf16.gmra.mrb[28].mxu1 %v2588_v46 }
  0x68   : > { %2138 = vmatprep.mubr.msk.bf16.mxu0 %vm788_vm0, %v2589_v47  ;;  %2154 = vmatprep.mubr.msk.bf16.mxu1 %vm788_vm0, %v2591_v48 }
  0x6f   : > { %989 = vmatmul.mubr.bf16.gmra.mrb[32].mxu0 %v2593_v49  ;;  %1117 = vmatmul.mubr.bf16.gmra.mrb[32].mxu1 %v2594_v50 }
  0x70   : > { %2139 = vmatprep.mubr.msk.bf16.mxu0 %vm788_vm0, %v2595_v51  ;;  %2155 = vmatprep.mubr.msk.bf16.mxu1 %vm788_vm0, %v2597_v52 }
  0x77   : > { %997 = vmatmul.mubr.bf16.gmra.mrb[36].mxu0 %v2599_v53  ;;  %1125 = vmatmul.mubr.bf16.gmra.mrb[36].mxu1 %v2600_v54 }
  0x78   : > { %2140 = vmatprep.mubr.msk.bf16.mxu0 %vm788_vm0, %v2601_v55  ;;  %2156 = vmatprep.mubr.msk.bf16.mxu1 %vm788_vm0, %v2603_v56 }
  0x7f   : > { %1005 = vmatmul.mubr.bf16.gmra.mrb[40].mxu0 %v2605_v57  ;;  %1133 = vmatmul.mubr.bf16.gmra.mrb[40].mxu1 %v2606_v58 }
  0x80   : > { %2141 = vmatprep.mubr.msk.bf16.mxu0 %vm788_vm0, %v2607_v59  ;;  %2157 = vmatprep.mubr.msk.bf16.mxu1 %vm788_vm0, %v2609_v60 }
  0x87   : > { %1013 = vmatmul.mubr.bf16.gmra.mrb[44].mxu0 %v2611_v61  ;;  %1141 = vmatmul.mubr.bf16.gmra.mrb[44].mxu1 %v2612_v62 }
  0x88   : > { %2142 = vmatprep.mubr.msk.bf16.mxu0 %vm788_vm0, %v2613_v63  ;;  %2158 = vmatprep.mubr.msk.bf16.mxu1 %vm788_vm0, %v2615_v0 }
  0x8f   : > { %1021 = vmatmul.mubr.bf16.gmra.mrb[48].mxu0 %v2617_v1  ;;  %1149 = vmatmul.mubr.bf16.gmra.mrb[48].mxu1 %v2618_v2 }
  0x90   : > { %2143 = vmatprep.mubr.msk.bf16.mxu0 %vm788_vm0, %v2619_v3  ;;  %2159 = vmatprep.mubr.msk.bf16.mxu1 %vm788_vm0, %v2621_v4 }
  0x97   : > { %1029 = vmatmul.mubr.bf16.gmra.mrb[52].mxu0 %v2623_v5  ;;  %1157 = vmatmul.mubr.bf16.gmra.mrb[52].mxu1 %v2624_v6 }
  0x98   : > { %2144 = vmatprep.mubr.msk.bf16.mxu0 %vm788_vm0, %v2625_v7  ;;  %2160 = vmatprep.mubr.msk.bf16.mxu1 %vm788_vm0, %v2627_v8 }
  0x9f   : > { %1037 = vmatmul.mubr.bf16.gmra.mrb[56].mxu0 %v2629_v9  ;;  %1165 = vmatmul.mubr.bf16.gmra.mrb[56].mxu1 %v2630_v10 }
  0xa0   : > { %2145 = vmatprep.mubr.msk.bf16.mxu0 %vm788_vm0, %v2631_v11  ;;  %2161 = vmatprep.mubr.msk.bf16.mxu1 %vm788_vm0, %v2633_v12 }
  0xa7   : > { %1045 = vmatmul.mubr.bf16.gmra.mrb[60].mxu0 %v2635_v13  ;;  %1173 = vmatmul.mubr.bf16.gmra.mrb[60].mxu1 %v2636_v14 }
 0x102   : > { %v926_v16 = vpop.f32.mrb[0].mxu0  ;;  %v1054_v17 = vpop.f32.mrb[0].mxu1 }
 0x103   : > { %v1383_v18 = vadd.f32 %v2838_v15, %v926_v16  ;;  %v1415_v19 = vadd.f32 %v2838_v15, %v1054_v17  ;;  %v928_v20 = vpop.f32.mrb[1].mxu0  ;;  %v1056_v21 = vpop.f32.mrb[1].mxu1 }
 0x104   : > { %v929_v22 = vpop.f32.mrb[2].mxu0  ;;  %v1057_v23 = vpop.f32.mrb[2].mxu1 }
 0x105   : > { %v1511_v24 = vmul.f32 0.01, %v1383_v18  ;;  %v1543_v25 = vmul.f32 0.01, %v1415_v19  ;;  %v1384_v26 = vadd.f32 %v2838_v15, %v929_v22  ;;  %v1416_v27 = vadd.f32 %v2838_v15, %v1057_v23  ;;  %v931_v28 = vpop.f32.mrb[3].mxu0  ;;  %v1059_v29 = vpop.f32.mrb[3].mxu1 }
 0x106   : > { %vm1447_vm3 = vcmp.ge.f32.partialorder %v1383_v18, 0.0  ;;  %vm1479_vm4 = vcmp.ge.f32.partialorder %v1415_v19, 0.0 }
 0x107   : > { %vm1448_vm5 = vcmp.ge.f32.partialorder %v1384_v26, 0.0  ;;  %v1512_v30 = vmul.f32 0.01, %v1384_v26  ;;  %vm1480_vm6 = vcmp.ge.f32.partialorder %v1416_v27, 0.0  ;;  %v1544_v31 = vmul.f32 0.01, %v1416_v27 }
 0x108   : > { %v1575_v32 = vsel %vm1447_vm3, %v1383_v18, %v1511_v24  ;;  %v1607_v33 = vsel %vm1479_vm4, %v1415_v19, %v1543_v25 }
 0x109   : > { %v1576_v34 = vsel %vm1448_vm5, %v1384_v26, %v1512_v30  ;;  %v1608_v35 = vsel %vm1480_vm6, %v1416_v27, %v1544_v31 }
 0x10a   : > { %v934_v36 = vpop.f32.mrb[4].mxu0  ;;  %v1062_v37 = vpop.f32.mrb[4].mxu1  ;;  %v2297_v38 = vpack.c.bf16 %v1576_v34, %v1575_v32  ;;  %v2377_v39 = vpack.c.bf16 %v1608_v35, %v1607_v33 }
 0x10b   : > { %v1385_v40 = vadd.f32 %v2838_v15, %v934_v36  ;;  %v1417_v41 = vadd.f32 %v2838_v15, %v1062_v37  ;;  %v936_v42 = vpop.f32.mrb[5].mxu0  ;;  %v1064_v43 = vpop.f32.mrb[5].mxu1 }
 0x10c   : > { %v937_v44 = vpop.f32.mrb[6].mxu0  ;;  %v1065_v45 = vpop.f32.mrb[6].mxu1  ;;  %2298 = vst [vmem:[%s2848_s23] sm:$0xff] %v2297_v38   ;;  %2469 = vst [vmem:[%s2848_s23 + $0x80] sm:$0xff] %v2377_v39  }
 0x10d   : > { %v1513_v46 = vmul.f32 0.01, %v1385_v40  ;;  %v1545_v47 = vmul.f32 0.01, %v1417_v41  ;;  %v1386_v48 = vadd.f32 %v2838_v15, %v937_v44  ;;  %v1418_v49 = vadd.f32 %v2838_v15, %v1065_v45  ;;  %v939_v50 = vpop.f32.mrb[7].mxu0  ;;  %v1067_v51 = vpop.f32.mrb[7].mxu1 }
 0x10e   : > { %vm1449_vm7 = vcmp.ge.f32.partialorder %v1385_v40, 0.0  ;;  %vm1481_vm8 = vcmp.ge.f32.partialorder %v1417_v41, 0.0 }
 0x10f   : > { %vm1450_vm9 = vcmp.ge.f32.partialorder %v1386_v48, 0.0  ;;  %v1514_v52 = vmul.f32 0.01, %v1386_v48  ;;  %vm1482_vm10 = vcmp.ge.f32.partialorder %v1418_v49, 0.0  ;;  %v1546_v53 = vmul.f32 0.01, %v1418_v49 }
 0x110   : > { %v1577_v54 = vsel %vm1449_vm7, %v1385_v40, %v1513_v46  ;;  %v1609_v55 = vsel %vm1481_vm8, %v1417_v41, %v1545_v47 }
 0x111   : > { %v1578_v56 = vsel %vm1450_vm9, %v1386_v48, %v1514_v52  ;;  %v1610_v57 = vsel %vm1482_vm10, %v1418_v49, %v1546_v53 }
 0x112   : > { %v942_v58 = vpop.f32.mrb[8].mxu0  ;;  %v1070_v59 = vpop.f32.mrb[8].mxu1  ;;  %v2302_v60 = vpack.c.bf16 %v1578_v56, %v1577_v54  ;;  %v2382_v61 = vpack.c.bf16 %v1610_v57, %v1609_v55 }
 0x113   : > { %v1387_v62 = vadd.f32 %v2838_v15, %v942_v58  ;;  %v1419_v63 = vadd.f32 %v2838_v15, %v1070_v59  ;;  %v944_v0 = vpop.f32.mrb[9].mxu0  ;;  %v1072_v1 = vpop.f32.mrb[9].mxu1 }
 0x114   : > { %v945_v2 = vpop.f32.mrb[10].mxu0  ;;  %v1073_v3 = vpop.f32.mrb[10].mxu1  ;;  %2454 = vst [vmem:[%s2848_s23 + $0x8] sm:$0xff] %v2302_v60   ;;  %2470 = vst [vmem:[%s2848_s23 + $0x88] sm:$0xff] %v2382_v61  }
 0x115   : > { %v1515_v4 = vmul.f32 0.01, %v1387_v62  ;;  %v1547_v5 = vmul.f32 0.01, %v1419_v63  ;;  %v1388_v6 = vadd.f32 %v2838_v15, %v945_v2  ;;  %v1420_v7 = vadd.f32 %v2838_v15, %v1073_v3  ;;  %v947_v8 = vpop.f32.mrb[11].mxu0  ;;  %v1075_v9 = vpop.f32.mrb[11].mxu1 }
 0x116   : > { %vm1451_vm11 = vcmp.ge.f32.partialorder %v1387_v62, 0.0  ;;  %vm1483_vm12 = vcmp.ge.f32.partialorder %v1419_v63, 0.0 }
 0x117   : > { %vm1452_vm13 = vcmp.ge.f32.partialorder %v1388_v6, 0.0  ;;  %v1516_v10 = vmul.f32 0.01, %v1388_v6  ;;  %vm1484_vm14 = vcmp.ge.f32.partialorder %v1420_v7, 0.0  ;;  %v1548_v11 = vmul.f32 0.01, %v1420_v7 }
 0x118   : > { %v1579_v12 = vsel %vm1451_vm11, %v1387_v62, %v1515_v4  ;;  %v1611_v13 = vsel %vm1483_vm12, %v1419_v63, %v1547_v5 }
 0x119   : > { %v1580_v14 = vsel %vm1452_vm13, %v1388_v6, %v1516_v10  ;;  %v1612_v16 = vsel %vm1484_vm14, %v1420_v7, %v1548_v11 }
 0x11a   : > { %v950_v17 = vpop.f32.mrb[12].mxu0  ;;  %v1078_v18 = vpop.f32.mrb[12].mxu1  ;;  %v2307_v19 = vpack.c.bf16 %v1580_v14, %v1579_v12  ;;  %v2387_v20 = vpack.c.bf16 %v1612_v16, %v1611_v13 }
 0x11b   : > { %v1389_v21 = vadd.f32 %v2838_v15, %v950_v17  ;;  %v1421_v22 = vadd.f32 %v2838_v15, %v1078_v18  ;;  %v952_v23 = vpop.f32.mrb[13].mxu0  ;;  %v1080_v24 = vpop.f32.mrb[13].mxu1 }
 0x11c   : > { %v953_v25 = vpop.f32.mrb[14].mxu0  ;;  %v1081_v26 = vpop.f32.mrb[14].mxu1  ;;  %2455 = vst [vmem:[%s2848_s23 + $0x10] sm:$0xff] %v2307_v19   ;;  %2471 = vst [vmem:[%s2848_s23 + $0x90] sm:$0xff] %v2387_v20  }
 0x11d   : > { %v1517_v27 = vmul.f32 0.01, %v1389_v21  ;;  %v1549_v28 = vmul.f32 0.01, %v1421_v22  ;;  %v1390_v29 = vadd.f32 %v2838_v15, %v953_v25  ;;  %v1422_v30 = vadd.f32 %v2838_v15, %v1081_v26  ;;  %v955_v31 = vpop.f32.mrb[15].mxu0  ;;  %v1083_v32 = vpop.f32.mrb[15].mxu1 }
 0x11e   : > { %vm1453_vm15 = vcmp.ge.f32.partialorder %v1389_v21, 0.0  ;;  %vm1485_vm0 = vcmp.ge.f32.partialorder %v1421_v22, 0.0 }
 0x11f   : > { %vm1454_vm1 = vcmp.ge.f32.partialorder %v1390_v29, 0.0  ;;  %v1518_v33 = vmul.f32 0.01, %v1390_v29  ;;  %vm1486_vm2 = vcmp.ge.f32.partialorder %v1422_v30, 0.0  ;;  %v1550_v34 = vmul.f32 0.01, %v1422_v30 }
 0x120   : > { %v1581_v35 = vsel %vm1453_vm15, %v1389_v21, %v1517_v27  ;;  %v1613_v36 = vsel %vm1485_vm0, %v1421_v22, %v1549_v28 }
 0x121   : > { %v1582_v37 = vsel %vm1454_vm1, %v1390_v29, %v1518_v33  ;;  %v1614_v38 = vsel %vm1486_vm2, %v1422_v30, %v1550_v34 }
 0x122   : > { %v958_v39 = vpop.f32.mrb[16].mxu0  ;;  %v1086_v40 = vpop.f32.mrb[16].mxu1  ;;  %v2312_v41 = vpack.c.bf16 %v1582_v37, %v1581_v35  ;;  %v2392_v42 = vpack.c.bf16 %v1614_v38, %v1613_v36 }
 0x123   : > { %v1391_v43 = vadd.f32 %v2838_v15, %v958_v39  ;;  %v1423_v44 = vadd.f32 %v2838_v15, %v1086_v40  ;;  %v960_v45 = vpop.f32.mrb[17].mxu0  ;;  %v1088_v46 = vpop.f32.mrb[17].mxu1 }
 0x124   : > { %v961_v47 = vpop.f32.mrb[18].mxu0  ;;  %v1089_v48 = vpop.f32.mrb[18].mxu1  ;;  %2456 = vst [vmem:[%s2848_s23 + $0x18] sm:$0xff] %v2312_v41   ;;  %2472 = vst [vmem:[%s2848_s23 + $0x98] sm:$0xff] %v2392_v42  }
 0x125   : > { %v1519_v49 = vmul.f32 0.01, %v1391_v43  ;;  %v1551_v50 = vmul.f32 0.01, %v1423_v44  ;;  %v1392_v51 = vadd.f32 %v2838_v15, %v961_v47  ;;  %v1424_v52 = vadd.f32 %v2838_v15, %v1089_v48  ;;  %v963_v53 = vpop.f32.mrb[19].mxu0  ;;  %v1091_v54 = vpop.f32.mrb[19].mxu1 }
 0x126   : > { %vm1455_vm3 = vcmp.ge.f32.partialorder %v1391_v43, 0.0  ;;  %vm1487_vm4 = vcmp.ge.f32.partialorder %v1423_v44, 0.0 }
 0x127   : > { %vm1456_vm5 = vcmp.ge.f32.partialorder %v1392_v51, 0.0  ;;  %v1520_v55 = vmul.f32 0.01, %v1392_v51  ;;  %vm1488_vm6 = vcmp.ge.f32.partialorder %v1424_v52, 0.0  ;;  %v1552_v56 = vmul.f32 0.01, %v1424_v52 }
 0x128   : > { %v1583_v57 = vsel %vm1455_vm3, %v1391_v43, %v1519_v49  ;;  %v1615_v58 = vsel %vm1487_vm4, %v1423_v44, %v1551_v50 }
 0x129   : > { %v1584_v59 = vsel %vm1456_vm5, %v1392_v51, %v1520_v55  ;;  %v1616_v60 = vsel %vm1488_vm6, %v1424_v52, %v1552_v56 }
 0x12a   : > { %v966_v61 = vpop.f32.mrb[20].mxu0  ;;  %v1094_v62 = vpop.f32.mrb[20].mxu1  ;;  %v2317_v63 = vpack.c.bf16 %v1584_v59, %v1583_v57  ;;  %v2397_v0 = vpack.c.bf16 %v1616_v60, %v1615_v58 }
 0x12b   : > { %v1393_v1 = vadd.f32 %v2838_v15, %v966_v61  ;;  %v1425_v2 = vadd.f32 %v2838_v15, %v1094_v62  ;;  %v968_v3 = vpop.f32.mrb[21].mxu0  ;;  %v1096_v4 = vpop.f32.mrb[21].mxu1 }
 0x12c   : > { %v969_v5 = vpop.f32.mrb[22].mxu0  ;;  %v1097_v6 = vpop.f32.mrb[22].mxu1  ;;  %2457 = vst [vmem:[%s2848_s23 + $0x20] sm:$0xff] %v2317_v63   ;;  %2473 = vst [vmem:[%s2848_s23 + $0xa0] sm:$0xff] %v2397_v0  }
 0x12d   : > { %v1521_v7 = vmul.f32 0.01, %v1393_v1  ;;  %v1553_v8 = vmul.f32 0.01, %v1425_v2  ;;  %v1394_v9 = vadd.f32 %v2838_v15, %v969_v5  ;;  %v1426_v10 = vadd.f32 %v2838_v15, %v1097_v6  ;;  %v971_v11 = vpop.f32.mrb[23].mxu0  ;;  %v1099_v12 = vpop.f32.mrb[23].mxu1 }
 0x12e   : > { %vm1457_vm7 = vcmp.ge.f32.partialorder %v1393_v1, 0.0  ;;  %vm1489_vm8 = vcmp.ge.f32.partialorder %v1425_v2, 0.0 }
 0x12f   : > { %vm1458_vm9 = vcmp.ge.f32.partialorder %v1394_v9, 0.0  ;;  %v1522_v13 = vmul.f32 0.01, %v1394_v9  ;;  %vm1490_vm10 = vcmp.ge.f32.partialorder %v1426_v10, 0.0  ;;  %v1554_v14 = vmul.f32 0.01, %v1426_v10 }
 0x130   : > { %v1585_v16 = vsel %vm1457_vm7, %v1393_v1, %v1521_v7  ;;  %v1617_v17 = vsel %vm1489_vm8, %v1425_v2, %v1553_v8 }
 0x131   : > { %v1586_v18 = vsel %vm1458_vm9, %v1394_v9, %v1522_v13  ;;  %v1618_v19 = vsel %vm1490_vm10, %v1426_v10, %v1554_v14 }
 0x132   : > { %v974_v20 = vpop.f32.mrb[24].mxu0  ;;  %v1102_v21 = vpop.f32.mrb[24].mxu1  ;;  %v2322_v22 = vpack.c.bf16 %v1586_v18, %v1585_v16  ;;  %v2402_v23 = vpack.c.bf16 %v1618_v19, %v1617_v17 }
 0x133   : > { %v1395_v24 = vadd.f32 %v2838_v15, %v974_v20  ;;  %v1427_v25 = vadd.f32 %v2838_v15, %v1102_v21  ;;  %v976_v26 = vpop.f32.mrb[25].mxu0  ;;  %v1104_v27 = vpop.f32.mrb[25].mxu1 }
 0x134   : > { %v977_v28 = vpop.f32.mrb[26].mxu0  ;;  %v1105_v29 = vpop.f32.mrb[26].mxu1  ;;  %2458 = vst [vmem:[%s2848_s23 + $0x28] sm:$0xff] %v2322_v22   ;;  %2474 = vst [vmem:[%s2848_s23 + $0xa8] sm:$0xff] %v2402_v23  }
 0x135   : > { %v1523_v30 = vmul.f32 0.01, %v1395_v24  ;;  %v1555_v31 = vmul.f32 0.01, %v1427_v25  ;;  %v1396_v32 = vadd.f32 %v2838_v15, %v977_v28  ;;  %v1428_v33 = vadd.f32 %v2838_v15, %v1105_v29  ;;  %v979_v34 = vpop.f32.mrb[27].mxu0  ;;  %v1107_v35 = vpop.f32.mrb[27].mxu1 }
 0x136   : > { %vm1459_vm11 = vcmp.ge.f32.partialorder %v1395_v24, 0.0  ;;  %vm1491_vm12 = vcmp.ge.f32.partialorder %v1427_v25, 0.0 }
 0x137   : > { %vm1460_vm13 = vcmp.ge.f32.partialorder %v1396_v32, 0.0  ;;  %v1524_v36 = vmul.f32 0.01, %v1396_v32  ;;  %vm1492_vm14 = vcmp.ge.f32.partialorder %v1428_v33, 0.0  ;;  %v1556_v37 = vmul.f32 0.01, %v1428_v33 }
 0x138   : > { %v1587_v38 = vsel %vm1459_vm11, %v1395_v24, %v1523_v30  ;;  %v1619_v39 = vsel %vm1491_vm12, %v1427_v25, %v1555_v31 }
 0x139   : > { %v1588_v40 = vsel %vm1460_vm13, %v1396_v32, %v1524_v36  ;;  %v1620_v41 = vsel %vm1492_vm14, %v1428_v33, %v1556_v37 }
 0x13a   : > { %v982_v42 = vpop.f32.mrb[28].mxu0  ;;  %v1110_v43 = vpop.f32.mrb[28].mxu1  ;;  %v2327_v44 = vpack.c.bf16 %v1588_v40, %v1587_v38  ;;  %v2407_v45 = vpack.c.bf16 %v1620_v41, %v1619_v39 }
 0x13b   : > { %v1397_v46 = vadd.f32 %v2838_v15, %v982_v42  ;;  %v1429_v47 = vadd.f32 %v2838_v15, %v1110_v43  ;;  %v984_v48 = vpop.f32.mrb[29].mxu0  ;;  %v1112_v49 = vpop.f32.mrb[29].mxu1 }
 0x13c   : > { %v985_v50 = vpop.f32.mrb[30].mxu0  ;;  %v1113_v51 = vpop.f32.mrb[30].mxu1  ;;  %2459 = vst [vmem:[%s2848_s23 + $0x30] sm:$0xff] %v2327_v44   ;;  %2475 = vst [vmem:[%s2848_s23 + $0xb0] sm:$0xff] %v2407_v45  }
 0x13d   : > { %v1525_v52 = vmul.f32 0.01, %v1397_v46  ;;  %v1557_v53 = vmul.f32 0.01, %v1429_v47  ;;  %v1398_v54 = vadd.f32 %v2838_v15, %v985_v50  ;;  %v1430_v55 = vadd.f32 %v2838_v15, %v1113_v51  ;;  %v987_v56 = vpop.f32.mrb[31].mxu0  ;;  %v1115_v57 = vpop.f32.mrb[31].mxu1 }
 0x13e   : > { %vm1461_vm15 = vcmp.ge.f32.partialorder %v1397_v46, 0.0  ;;  %vm1493_vm0 = vcmp.ge.f32.partialorder %v1429_v47, 0.0 }
 0x13f   : > { %vm1462_vm1 = vcmp.ge.f32.partialorder %v1398_v54, 0.0  ;;  %v1526_v58 = vmul.f32 0.01, %v1398_v54  ;;  %vm1494_vm2 = vcmp.ge.f32.partialorder %v1430_v55, 0.0  ;;  %v1558_v59 = vmul.f32 0.01, %v1430_v55 }
 0x140   : > { %v1589_v60 = vsel %vm1461_vm15, %v1397_v46, %v1525_v52  ;;  %v1621_v61 = vsel %vm1493_vm0, %v1429_v47, %v1557_v53 }
 0x141   : > { %v1590_v62 = vsel %vm1462_vm1, %v1398_v54, %v1526_v58  ;;  %v1622_v63 = vsel %vm1494_vm2, %v1430_v55, %v1558_v59 }
 0x142   : > { %v990_v0 = vpop.f32.mrb[32].mxu0  ;;  %v1118_v1 = vpop.f32.mrb[32].mxu1  ;;  %v2332_v2 = vpack.c.bf16 %v1590_v62, %v1589_v60  ;;  %v2412_v3 = vpack.c.bf16 %v1622_v63, %v1621_v61 }
 0x143   : > { %v1399_v4 = vadd.f32 %v2838_v15, %v990_v0  ;;  %v1431_v5 = vadd.f32 %v2838_v15, %v1118_v1  ;;  %v992_v6 = vpop.f32.mrb[33].mxu0  ;;  %v1120_v7 = vpop.f32.mrb[33].mxu1 }
 0x144   : > { %v993_v8 = vpop.f32.mrb[34].mxu0  ;;  %v1121_v9 = vpop.f32.mrb[34].mxu1  ;;  %2460 = vst [vmem:[%s2848_s23 + $0x38] sm:$0xff] %v2332_v2   ;;  %2476 = vst [vmem:[%s2848_s23 + $0xb8] sm:$0xff] %v2412_v3  }
 0x145   : > { %v1527_v10 = vmul.f32 0.01, %v1399_v4  ;;  %v1559_v11 = vmul.f32 0.01, %v1431_v5  ;;  %v1400_v12 = vadd.f32 %v2838_v15, %v993_v8  ;;  %v1432_v13 = vadd.f32 %v2838_v15, %v1121_v9  ;;  %v995_v14 = vpop.f32.mrb[35].mxu0  ;;  %v1123_v16 = vpop.f32.mrb[35].mxu1 }
 0x146   : > { %vm1463_vm3 = vcmp.ge.f32.partialorder %v1399_v4, 0.0  ;;  %vm1495_vm4 = vcmp.ge.f32.partialorder %v1431_v5, 0.0 }
 0x147   : > { %vm1464_vm5 = vcmp.ge.f32.partialorder %v1400_v12, 0.0  ;;  %v1528_v17 = vmul.f32 0.01, %v1400_v12  ;;  %vm1496_vm6 = vcmp.ge.f32.partialorder %v1432_v13, 0.0  ;;  %v1560_v18 = vmul.f32 0.01, %v1432_v13 }
 0x148   : > { %v1591_v19 = vsel %vm1463_vm3, %v1399_v4, %v1527_v10  ;;  %v1623_v20 = vsel %vm1495_vm4, %v1431_v5, %v1559_v11 }
 0x149   : > { %v1592_v21 = vsel %vm1464_vm5, %v1400_v12, %v1528_v17  ;;  %v1624_v22 = vsel %vm1496_vm6, %v1432_v13, %v1560_v18 }
 0x14a   : > { %v998_v23 = vpop.f32.mrb[36].mxu0  ;;  %v1126_v24 = vpop.f32.mrb[36].mxu1  ;;  %v2337_v25 = vpack.c.bf16 %v1592_v21, %v1591_v19  ;;  %v2417_v26 = vpack.c.bf16 %v1624_v22, %v1623_v20 }
 0x14b   : > { %v1401_v27 = vadd.f32 %v2838_v15, %v998_v23  ;;  %v1433_v28 = vadd.f32 %v2838_v15, %v1126_v24  ;;  %v1000_v29 = vpop.f32.mrb[37].mxu0  ;;  %v1128_v30 = vpop.f32.mrb[37].mxu1 }
 0x14c   : > { %v1001_v31 = vpop.f32.mrb[38].mxu0  ;;  %v1129_v32 = vpop.f32.mrb[38].mxu1  ;;  %2461 = vst [vmem:[%s2848_s23 + $0x40] sm:$0xff] %v2337_v25   ;;  %2477 = vst [vmem:[%s2848_s23 + $0xc0] sm:$0xff] %v2417_v26  }
 0x14d   : > { %v1529_v33 = vmul.f32 0.01, %v1401_v27  ;;  %v1561_v34 = vmul.f32 0.01, %v1433_v28  ;;  %v1402_v35 = vadd.f32 %v2838_v15, %v1001_v31  ;;  %v1434_v36 = vadd.f32 %v2838_v15, %v1129_v32  ;;  %v1003_v37 = vpop.f32.mrb[39].mxu0  ;;  %v1131_v38 = vpop.f32.mrb[39].mxu1 }
 0x14e   : > { %vm1465_vm7 = vcmp.ge.f32.partialorder %v1401_v27, 0.0  ;;  %vm1497_vm8 = vcmp.ge.f32.partialorder %v1433_v28, 0.0 }
 0x14f   : > { %vm1466_vm9 = vcmp.ge.f32.partialorder %v1402_v35, 0.0  ;;  %v1530_v39 = vmul.f32 0.01, %v1402_v35  ;;  %vm1498_vm10 = vcmp.ge.f32.partialorder %v1434_v36, 0.0  ;;  %v1562_v40 = vmul.f32 0.01, %v1434_v36 }
 0x150   : > { %v1593_v41 = vsel %vm1465_vm7, %v1401_v27, %v1529_v33  ;;  %v1625_v42 = vsel %vm1497_vm8, %v1433_v28, %v1561_v34 }
 0x151   : > { %v1594_v43 = vsel %vm1466_vm9, %v1402_v35, %v1530_v39  ;;  %v1626_v44 = vsel %vm1498_vm10, %v1434_v36, %v1562_v40 }
 0x152   : > { %v1006_v45 = vpop.f32.mrb[40].mxu0  ;;  %v1134_v46 = vpop.f32.mrb[40].mxu1  ;;  %v2342_v47 = vpack.c.bf16 %v1594_v43, %v1593_v41  ;;  %v2422_v48 = vpack.c.bf16 %v1626_v44, %v1625_v42 }
 0x153   : > { %v1403_v49 = vadd.f32 %v2838_v15, %v1006_v45  ;;  %v1435_v50 = vadd.f32 %v2838_v15, %v1134_v46  ;;  %v1008_v51 = vpop.f32.mrb[41].mxu0  ;;  %v1136_v52 = vpop.f32.mrb[41].mxu1 }
 0x154   : > { %v1009_v53 = vpop.f32.mrb[42].mxu0  ;;  %v1137_v54 = vpop.f32.mrb[42].mxu1  ;;  %2462 = vst [vmem:[%s2848_s23 + $0x48] sm:$0xff] %v2342_v47   ;;  %2478 = vst [vmem:[%s2848_s23 + $0xc8] sm:$0xff] %v2422_v48  }
 0x155   : > { %v1531_v55 = vmul.f32 0.01, %v1403_v49  ;;  %v1563_v56 = vmul.f32 0.01, %v1435_v50  ;;  %v1404_v57 = vadd.f32 %v2838_v15, %v1009_v53  ;;  %v1436_v58 = vadd.f32 %v2838_v15, %v1137_v54  ;;  %v1011_v59 = vpop.f32.mrb[43].mxu0  ;;  %v1139_v60 = vpop.f32.mrb[43].mxu1 }
 0x156   : > { %vm1467_vm11 = vcmp.ge.f32.partialorder %v1403_v49, 0.0  ;;  %vm1499_vm12 = vcmp.ge.f32.partialorder %v1435_v50, 0.0 }
 0x157   : > { %vm1468_vm13 = vcmp.ge.f32.partialorder %v1404_v57, 0.0  ;;  %v1532_v61 = vmul.f32 0.01, %v1404_v57  ;;  %vm1500_vm14 = vcmp.ge.f32.partialorder %v1436_v58, 0.0  ;;  %v1564_v62 = vmul.f32 0.01, %v1436_v58 }
 0x158   : > { %v1595_v63 = vsel %vm1467_vm11, %v1403_v49, %v1531_v55  ;;  %v1627_v0 = vsel %vm1499_vm12, %v1435_v50, %v1563_v56 }
 0x159   : > { %v1596_v1 = vsel %vm1468_vm13, %v1404_v57, %v1532_v61  ;;  %v1628_v2 = vsel %vm1500_vm14, %v1436_v58, %v1564_v62 }
 0x15a   : > { %v1014_v3 = vpop.f32.mrb[44].mxu0  ;;  %v1142_v4 = vpop.f32.mrb[44].mxu1  ;;  %v2347_v5 = vpack.c.bf16 %v1596_v1, %v1595_v63  ;;  %v2427_v6 = vpack.c.bf16 %v1628_v2, %v1627_v0 }
 0x15b   : > { %v1405_v7 = vadd.f32 %v2838_v15, %v1014_v3  ;;  %v1437_v8 = vadd.f32 %v2838_v15, %v1142_v4  ;;  %v1016_v9 = vpop.f32.mrb[45].mxu0  ;;  %v1144_v10 = vpop.f32.mrb[45].mxu1 }
 0x15c   : > { %v1017_v11 = vpop.f32.mrb[46].mxu0  ;;  %v1145_v12 = vpop.f32.mrb[46].mxu1  ;;  %2463 = vst [vmem:[%s2848_s23 + $0x50] sm:$0xff] %v2347_v5   ;;  %2479 = vst [vmem:[%s2848_s23 + $0xd0] sm:$0xff] %v2427_v6  }
 0x15d   : > { %v1533_v13 = vmul.f32 0.01, %v1405_v7  ;;  %v1565_v14 = vmul.f32 0.01, %v1437_v8  ;;  %v1406_v16 = vadd.f32 %v2838_v15, %v1017_v11  ;;  %v1438_v17 = vadd.f32 %v2838_v15, %v1145_v12  ;;  %v1019_v18 = vpop.f32.mrb[47].mxu0  ;;  %v1147_v19 = vpop.f32.mrb[47].mxu1 }
 0x15e   : > { %vm1469_vm15 = vcmp.ge.f32.partialorder %v1405_v7, 0.0  ;;  %vm1501_vm0 = vcmp.ge.f32.partialorder %v1437_v8, 0.0 }
 0x15f   : > { %vm1470_vm1 = vcmp.ge.f32.partialorder %v1406_v16, 0.0  ;;  %v1534_v20 = vmul.f32 0.01, %v1406_v16  ;;  %vm1502_vm2 = vcmp.ge.f32.partialorder %v1438_v17, 0.0  ;;  %v1566_v21 = vmul.f32 0.01, %v1438_v17 }
 0x160   : > { %v1597_v22 = vsel %vm1469_vm15, %v1405_v7, %v1533_v13  ;;  %v1629_v23 = vsel %vm1501_vm0, %v1437_v8, %v1565_v14 }
 0x161   : > { %v1598_v24 = vsel %vm1470_vm1, %v1406_v16, %v1534_v20  ;;  %v1630_v25 = vsel %vm1502_vm2, %v1438_v17, %v1566_v21 }
 0x162   : > { %v1022_v26 = vpop.f32.mrb[48].mxu0  ;;  %v1150_v27 = vpop.f32.mrb[48].mxu1  ;;  %v2352_v28 = vpack.c.bf16 %v1598_v24, %v1597_v22  ;;  %v2432_v29 = vpack.c.bf16 %v1630_v25, %v1629_v23 }
 0x163   : > { %v1407_v30 = vadd.f32 %v2838_v15, %v1022_v26  ;;  %v1439_v31 = vadd.f32 %v2838_v15, %v1150_v27  ;;  %v1024_v32 = vpop.f32.mrb[49].mxu0  ;;  %v1152_v33 = vpop.f32.mrb[49].mxu1 }
 0x164   : > { %v1025_v34 = vpop.f32.mrb[50].mxu0  ;;  %v1153_v35 = vpop.f32.mrb[50].mxu1  ;;  %2464 = vst [vmem:[%s2848_s23 + $0x58] sm:$0xff] %v2352_v28   ;;  %2480 = vst [vmem:[%s2848_s23 + $0xd8] sm:$0xff] %v2432_v29  }
 0x165   : > { %v1535_v36 = vmul.f32 0.01, %v1407_v30  ;;  %v1567_v37 = vmul.f32 0.01, %v1439_v31  ;;  %v1408_v38 = vadd.f32 %v2838_v15, %v1025_v34  ;;  %v1440_v39 = vadd.f32 %v2838_v15, %v1153_v35  ;;  %v1027_v40 = vpop.f32.mrb[51].mxu0  ;;  %v1155_v41 = vpop.f32.mrb[51].mxu1 }
 0x166   : > { %vm1471_vm3 = vcmp.ge.f32.partialorder %v1407_v30, 0.0  ;;  %vm1503_vm4 = vcmp.ge.f32.partialorder %v1439_v31, 0.0 }
 0x167   : > { %vm1472_vm5 = vcmp.ge.f32.partialorder %v1408_v38, 0.0  ;;  %v1536_v42 = vmul.f32 0.01, %v1408_v38  ;;  %vm1504_vm6 = vcmp.ge.f32.partialorder %v1440_v39, 0.0  ;;  %v1568_v43 = vmul.f32 0.01, %v1440_v39 }
 0x168   : > { %v1599_v44 = vsel %vm1471_vm3, %v1407_v30, %v1535_v36  ;;  %v1631_v45 = vsel %vm1503_vm4, %v1439_v31, %v1567_v37 }
 0x169   : > { %v1600_v46 = vsel %vm1472_vm5, %v1408_v38, %v1536_v42  ;;  %v1632_v47 = vsel %vm1504_vm6, %v1440_v39, %v1568_v43 }
 0x16a   : > { %v1030_v48 = vpop.f32.mrb[52].mxu0  ;;  %v1158_v49 = vpop.f32.mrb[52].mxu1  ;;  %v2357_v50 = vpack.c.bf16 %v1600_v46, %v1599_v44  ;;  %v2437_v51 = vpack.c.bf16 %v1632_v47, %v1631_v45 }
 0x16b   : > { %v1409_v52 = vadd.f32 %v2838_v15, %v1030_v48  ;;  %v1441_v53 = vadd.f32 %v2838_v15, %v1158_v49  ;;  %v1032_v54 = vpop.f32.mrb[53].mxu0  ;;  %v1160_v55 = vpop.f32.mrb[53].mxu1 }
 0x16c   : > { %v1033_v56 = vpop.f32.mrb[54].mxu0  ;;  %v1161_v57 = vpop.f32.mrb[54].mxu1  ;;  %2465 = vst [vmem:[%s2848_s23 + $0x60] sm:$0xff] %v2357_v50   ;;  %2481 = vst [vmem:[%s2848_s23 + $0xe0] sm:$0xff] %v2437_v51  }
 0x16d   : > { %v1537_v58 = vmul.f32 0.01, %v1409_v52  ;;  %v1569_v59 = vmul.f32 0.01, %v1441_v53  ;;  %v1410_v60 = vadd.f32 %v2838_v15, %v1033_v56  ;;  %v1442_v61 = vadd.f32 %v2838_v15, %v1161_v57  ;;  %v1035_v62 = vpop.f32.mrb[55].mxu0  ;;  %v1163_v63 = vpop.f32.mrb[55].mxu1 }
 0x16e   : > { %vm1473_vm7 = vcmp.ge.f32.partialorder %v1409_v52, 0.0  ;;  %vm1505_vm8 = vcmp.ge.f32.partialorder %v1441_v53, 0.0 }
 0x16f   : > { %vm1474_vm9 = vcmp.ge.f32.partialorder %v1410_v60, 0.0  ;;  %v1538_v0 = vmul.f32 0.01, %v1410_v60  ;;  %vm1506_vm10 = vcmp.ge.f32.partialorder %v1442_v61, 0.0  ;;  %v1570_v1 = vmul.f32 0.01, %v1442_v61 }
 0x170   : > { %v1601_v2 = vsel %vm1473_vm7, %v1409_v52, %v1537_v58  ;;  %v1633_v3 = vsel %vm1505_vm8, %v1441_v53, %v1569_v59 }
 0x171   : > { %v1602_v4 = vsel %vm1474_vm9, %v1410_v60, %v1538_v0  ;;  %v1634_v5 = vsel %vm1506_vm10, %v1442_v61, %v1570_v1 }
 0x172   : > { %v1038_v6 = vpop.f32.mrb[56].mxu0  ;;  %v1166_v7 = vpop.f32.mrb[56].mxu1  ;;  %v2362_v8 = vpack.c.bf16 %v1602_v4, %v1601_v2  ;;  %v2442_v9 = vpack.c.bf16 %v1634_v5, %v1633_v3 }
 0x173   : > { %v1411_v10 = vadd.f32 %v2838_v15, %v1038_v6  ;;  %v1443_v11 = vadd.f32 %v2838_v15, %v1166_v7  ;;  %v1040_v12 = vpop.f32.mrb[57].mxu0  ;;  %v1168_v13 = vpop.f32.mrb[57].mxu1 }
 0x174   : > { %v1041_v14 = vpop.f32.mrb[58].mxu0  ;;  %v1169_v16 = vpop.f32.mrb[58].mxu1  ;;  %2466 = vst [vmem:[%s2848_s23 + $0x68] sm:$0xff] %v2362_v8   ;;  %2482 = vst [vmem:[%s2848_s23 + $0xe8] sm:$0xff] %v2442_v9  }
 0x175   : > { %v1539_v17 = vmul.f32 0.01, %v1411_v10  ;;  %v1571_v18 = vmul.f32 0.01, %v1443_v11  ;;  %v1412_v19 = vadd.f32 %v2838_v15, %v1041_v14  ;;  %v1444_v20 = vadd.f32 %v2838_v15, %v1169_v16  ;;  %v1043_v21 = vpop.f32.mrb[59].mxu0  ;;  %v1171_v22 = vpop.f32.mrb[59].mxu1 }
 0x176   : > { %vm1475_vm11 = vcmp.ge.f32.partialorder %v1411_v10, 0.0  ;;  %vm1507_vm12 = vcmp.ge.f32.partialorder %v1443_v11, 0.0 }
 0x177   : > { %vm1476_vm13 = vcmp.ge.f32.partialorder %v1412_v19, 0.0  ;;  %v1540_v23 = vmul.f32 0.01, %v1412_v19  ;;  %vm1508_vm14 = vcmp.ge.f32.partialorder %v1444_v20, 0.0  ;;  %v1572_v24 = vmul.f32 0.01, %v1444_v20 }
 0x178   : > { %v1603_v25 = vsel %vm1475_vm11, %v1411_v10, %v1539_v17  ;;  %v1635_v26 = vsel %vm1507_vm12, %v1443_v11, %v1571_v18 }
 0x179   : > { %v1604_v27 = vsel %vm1476_vm13, %v1412_v19, %v1540_v23  ;;  %v1636_v28 = vsel %vm1508_vm14, %v1444_v20, %v1572_v24 }
 0x17a   : > { %v1046_v29 = vpop.f32.mrb[60].mxu0  ;;  %v1174_v30 = vpop.f32.mrb[60].mxu1  ;;  %v2367_v31 = vpack.c.bf16 %v1604_v27, %v1603_v25  ;;  %v2447_v32 = vpack.c.bf16 %v1636_v28, %v1635_v26 }
 0x17b   : > { %v1413_v33 = vadd.f32 %v2838_v15, %v1046_v29  ;;  %v1445_v34 = vadd.f32 %v2838_v15, %v1174_v30  ;;  %v1048_v35 = vpop.f32.mrb[61].mxu0  ;;  %v1176_v36 = vpop.f32.mrb[61].mxu1 }
 0x17c   : > { %v1049_v37 = vpop.f32.mrb[62].mxu0  ;;  %v1177_v38 = vpop.f32.mrb[62].mxu1  ;;  %2467 = vst [vmem:[%s2848_s23 + $0x70] sm:$0xff] %v2367_v31   ;;  %2483 = vst [vmem:[%s2848_s23 + $0xf0] sm:$0xff] %v2447_v32  }
 0x17d   : > { %v1541_v39 = vmul.f32 0.01, %v1413_v33  ;;  %v1573_v40 = vmul.f32 0.01, %v1445_v34  ;;  %v1414_v41 = vadd.f32 %v2838_v15, %v1049_v37  ;;  %v1446_v42 = vadd.f32 %v2838_v15, %v1177_v38  ;;  %v1051_v43 = vpop.f32.mrb[63].mxu0  ;;  %v1179_v44 = vpop.f32.mrb[63].mxu1 }
 0x17e   : > { %vm1477_vm15 = vcmp.ge.f32.partialorder %v1413_v33, 0.0  ;;  %vm1509_vm0 = vcmp.ge.f32.partialorder %v1445_v34, 0.0 }
 0x17f   : > { %vm1478_vm1 = vcmp.ge.f32.partialorder %v1414_v41, 0.0  ;;  %v1542_v45 = vmul.f32 0.01, %v1414_v41  ;;  %vm1510_vm2 = vcmp.ge.f32.partialorder %v1446_v42, 0.0  ;;  %v1574_v46 = vmul.f32 0.01, %v1446_v42 }
 0x180   : > { %v1605_v47 = vsel %vm1477_vm15, %v1413_v33, %v1541_v39  ;;  %v1637_v48 = vsel %vm1509_vm0, %v1445_v34, %v1573_v40 }
 0x181   : > { %v1606_v49 = vsel %vm1478_vm1, %v1414_v41, %v1542_v45  ;;  %v1638_v50 = vsel %vm1510_vm2, %v1446_v42, %v1574_v46 }
 0x182   : > { %v2372_v51 = vpack.c.bf16 %v1606_v49, %v1605_v47  ;;  %v2452_v52 = vpack.c.bf16 %v1638_v50, %v1637_v48 }
 0x184   : > { %2468 = vst [vmem:[%s2848_s23 + $0x78] sm:$0xff] %v2372_v51   ;;  %2484 = vst [vmem:[%s2848_s23 + $0xf8] sm:$0xff] %v2452_v52  }
 0x185 PF: > { %s13_s14 = sadd.s32 1, %s2659_s14   ;;  %s2955_s12 = smov %s2655_s13 }
 0x186   : > { %p10_p5 = scmp.ge.s32.totalorder %s13_s14, 6   ;;  %s2956_s13 = smov %s2958_s15 }
 0x188   :  { %12 = sbr.rel (!%p10_p5) target bundleno = 2 (0x2), region = 73 }

// kernel: _lambda_.24
= control target key start
LH: loop header
LB: loop body
LE: loop exit
PB: predicated region body
PF: predicated region fallthrough
CT: control target
= control target key end

     0   :  { %s2462_s12 = smov 0   ;;  %s2464_s13 = smov 0   ;;  %s2689_s0 = inlined_call_operand.vmem [shape: bf16[2048,36], index: 0, kind: input, shape index: {}]   ;;  %s2690_s1 = inlined_call_operand.vmem [shape: bf16[36,128], index: 1, kind: input, shape index: {}]   ;;  %s2691_s2 = inlined_call_operand.vmem [shape: f32[1,128], index: 2, kind: input, shape index: {}]   ;;  %s2692_s3 = inlined_call_operand.vmem [shape: bf16[2048,128], index: 3, kind: output, shape index: {}]  }
   0x1   :  { %s2466_s14 = smov 0  }
   0x2 LB: > { %s25_s15 = sadd.s32 1, %s2436_s13  ;;  %p1852_p0 = scmp.ge.s32.totalorder %s2440_s14, 1  ;;  %s2440_s14 = sphi %s2466_s14, %s13_s14   ;;  %s2436_s13 = sphi %s2464_s13, %s2694_s13   ;;  %s2432_s12 = sphi %s2462_s12, %s2693_s12  }
   0x3   : > { %p27_p1 = scmp.ge.s32.totalorder %s25_s15, 4  ;;  %p166_p2 = scmp.lt.s32.totalorder %s2440_s14, 5 }
   0x5   : > { %s2696_s15 = smov (%p27_p1, %s25_s15), 0  ;;  %p167_p3 = pnand %p1852_p0, %p166_p2 }
   0x6   : > { %v2383_v0 = vld [vmem:[%s2690_s1] sm:$0xff] (!%p167_p3)   ;;  %v2384_v1 = vld [vmem:[%s2690_s1 + $0x8] sm:$0xff] (!%p167_p3)   ;;  %s1853_s20 = sshll.u32 (!%p167_p3), %s2432_s12, 6  ;;  %v2385_v2 = vld [vmem:[%s2690_s1 + $0x10] ss:$0 sps:$4 sm:$0x33] (!%p167_p3)  }
   0x7   : > { %170 = sbr.rel (%p167_p3) target bundleno = 308 (0x134), region = 32  ;;  %2281 = vmatprep.subr.bf16.mxu0 (!%p167_p3), %v2383_v0  ;;  %2351 = vmatprep.subr.bf16.mxu1 (!%p167_p3), %v2383_v0  ;;  %p199_p4 = scmp.lt.s32.totalorder (!%p167_p3), %s1853_s20, 255  ;;  %vm693_vm0 = vcmask (!%p167_p3), 1041408   ;;  %vm596_vm1 = vcmask (!%p167_p3), 293888   ;;  %v2566_v36 = vld [vmem:[%s2691_s2] ss:$0 sm:$0xff] (!%p167_p3) }
   0x8   : > { %2282 = vmatpush3.bf16.msra.mxu0 (!%p167_p3), %v2383_v0  ;;  %2354 = vmatpush3.bf16.msra.mxu1 (!%p167_p3), %v2383_v0  ;;  %v695_v3 = vsel (!%p167_p3), %vm693_vm0, %v2385_v2, 0 }
   0x9   : > { %2283 = vmatprep.subr.bf16.mxu0 (!%p167_p3), %v2384_v1  ;;  %2352 = vmatprep.subr.bf16.mxu1 (!%p167_p3), %v2384_v1 }
   0xc   : > { %2284 = vmatpush3.bf16.msra.mxu0 (!%p167_p3), %v2384_v1  ;;  %2355 = vmatpush3.bf16.msra.mxu1 (!%p167_p3), %v2384_v1 }
   0xd   : > { %2357 = vmatprep.subr.msk.bf16.mxu0 (!%p167_p3), %vm693_vm0, %v2385_v2  ;;  %2358 = vmatprep.subr.msk.bf16.mxu1 (!%p167_p3), %vm693_vm0, %v2385_v2 }
   0xe   : > { %s2698_s20 = smov (!%p199_p4, %s1853_s20), 255 }
   0xf   : > { %s1854_s23 = sshll.u32 %s2698_s20, 2 }
  0x10   : > { %s2497_s26 = scalar_lea.vmem %s2689_s0, %s1854_s23  ;;  %2286 = vmatpush3.bf16.msra.mxu0 %v695_v3  ;;  %2356 = vmatpush3.bf16.msra.mxu1 %v695_v3  ;;  %s2583_s4 = scalar_lea.vmem %s2692_s3, %s1854_s23 }
  0x11   : > { %v2386_v4 = vld [vmem:[%s2497_s26] sm:$0xff]   ;;  %v2388_v6 = vld [vmem:[%s2497_s26 + $0x8] sm:$0xff]   ;;  %v2390_v8 = vld [vmem:[%s2497_s26 + $0x10] sm:$0xff]  }
  0x12   : > { %v2387_v5 = vld [vmem:[%s2497_s26 + $0x80] sm:$0xff]   ;;  %2287 = vmatprep.mubr.msk.bf16.mxu0 %vm596_vm1, %v2386_v4  ;;  %v2389_v7 = vld [vmem:[%s2497_s26 + $0x88] sm:$0xff]   ;;  %v2391_v9 = vld [vmem:[%s2497_s26 + $0x90] sm:$0xff]  }
  0x13   : > { %2319 = vmatprep.mubr.msk.bf16.mxu1 %vm596_vm1, %v2387_v5  ;;  %2288 = vmatmul.mubr.msk.bf16.vlgmr.msra.gmra.mrb[0].mxu0 %vm596_vm1, %v2388_v6  ;;  %v2392_v10 = vld [vmem:[%s2497_s26 + $0x18] sm:$0xff]   ;;  %v2394_v12 = vld [vmem:[%s2497_s26 + $0x20] sm:$0xff]   ;;  %v2396_v14 = vld [vmem:[%s2497_s26 + $0x28] sm:$0xff]  }
  0x14   : > { %2320 = vmatmul.mubr.msk.bf16.vlgmr.msra.gmra.mrb[0].mxu1 %vm596_vm1, %v2389_v7  ;;  %2291 = vmatprep.mubr.msk.bf16.mxu0 %vm596_vm1, %v2390_v8  ;;  %v2393_v11 = vld [vmem:[%s2497_s26 + $0x98] sm:$0xff]   ;;  %v2395_v13 = vld [vmem:[%s2497_s26 + $0xa0] sm:$0xff]   ;;  %v2397_v15 = vld [vmem:[%s2497_s26 + $0xa8] sm:$0xff]  }
  0x15   : > { %2323 = vmatprep.mubr.msk.bf16.mxu1 %vm596_vm1, %v2391_v9  ;;  %v2398_v16 = vld [vmem:[%s2497_s26 + $0x30] sm:$0xff]   ;;  %v2400_v18 = vld [vmem:[%s2497_s26 + $0x38] sm:$0xff]   ;;  %v2402_v20 = vld [vmem:[%s2497_s26 + $0x40] sm:$0xff]  }
  0x16   : > { %v2399_v17 = vld [vmem:[%s2497_s26 + $0xb0] sm:$0xff]   ;;  %v2401_v19 = vld [vmem:[%s2497_s26 + $0xb8] sm:$0xff]   ;;  %v2403_v21 = vld [vmem:[%s2497_s26 + $0xc0] sm:$0xff]  }
  0x17   : > { %v2404_v22 = vld [vmem:[%s2497_s26 + $0x48] sm:$0xff]   ;;  %v2406_v24 = vld [vmem:[%s2497_s26 + $0x50] sm:$0xff]   ;;  %v2408_v26 = vld [vmem:[%s2497_s26 + $0x58] sm:$0xff]  }
  0x18   : > { %v2405_v23 = vld [vmem:[%s2497_s26 + $0xc8] sm:$0xff]   ;;  %v2407_v25 = vld [vmem:[%s2497_s26 + $0xd0] sm:$0xff]   ;;  %v2409_v27 = vld [vmem:[%s2497_s26 + $0xd8] sm:$0xff]  }
  0x19   : > { %v2410_v28 = vld [vmem:[%s2497_s26 + $0x60] sm:$0xff]   ;;  %v2412_v30 = vld [vmem:[%s2497_s26 + $0x68] sm:$0xff]   ;;  %v2414_v32 = vld [vmem:[%s2497_s26 + $0x70] sm:$0xff]  }
  0x1a   : > { %v2411_v29 = vld [vmem:[%s2497_s26 + $0xe0] sm:$0xff]   ;;  %v2413_v31 = vld [vmem:[%s2497_s26 + $0xe8] sm:$0xff]   ;;  %v2415_v33 = vld [vmem:[%s2497_s26 + $0xf0] sm:$0xff]  }
  0x1b   : > { %2292 = vmatmul.mubr.msk.bf16.gmra.mrb[4].mxu0 %vm596_vm1, %v2392_v10  ;;  %v2416_v34 = vld [vmem:[%s2497_s26 + $0x78] sm:$0xff]  }
  0x1c   : > { %2324 = vmatmul.mubr.msk.bf16.gmra.mrb[4].mxu1 %vm596_vm1, %v2393_v11  ;;  %2295 = vmatprep.mubr.msk.bf16.mxu0 %vm596_vm1, %v2394_v12  ;;  %v2417_v35 = vld [vmem:[%s2497_s26 + $0xf8] sm:$0xff]  }
  0x1d   : > { %2327 = vmatprep.mubr.msk.bf16.mxu1 %vm596_vm1, %v2395_v13 }
  0x23   : > { %2296 = vmatmul.mubr.msk.bf16.gmra.mrb[8].mxu0 %vm596_vm1, %v2396_v14 }
  0x24   : > { %2328 = vmatmul.mubr.msk.bf16.gmra.mrb[8].mxu1 %vm596_vm1, %v2397_v15  ;;  %2299 = vmatprep.mubr.msk.bf16.mxu0 %vm596_vm1, %v2398_v16 }
  0x25   : > { %2331 = vmatprep.mubr.msk.bf16.mxu1 %vm596_vm1, %v2399_v17 }
  0x2b   : > { %2300 = vmatmul.mubr.msk.bf16.gmra.mrb[12].mxu0 %vm596_vm1, %v2400_v18 }
  0x2c   : > { %2332 = vmatmul.mubr.msk.bf16.gmra.mrb[12].mxu1 %vm596_vm1, %v2401_v19  ;;  %2303 = vmatprep.mubr.msk.bf16.mxu0 %vm596_vm1, %v2402_v20 }
  0x2d   : > { %2335 = vmatprep.mubr.msk.bf16.mxu1 %vm596_vm1, %v2403_v21 }
  0x33   : > { %2304 = vmatmul.mubr.msk.bf16.gmra.mrb[16].mxu0 %vm596_vm1, %v2404_v22 }
  0x34   : > { %2336 = vmatmul.mubr.msk.bf16.gmra.mrb[16].mxu1 %vm596_vm1, %v2405_v23  ;;  %2307 = vmatprep.mubr.msk.bf16.mxu0 %vm596_vm1, %v2406_v24 }
  0x35   : > { %2339 = vmatprep.mubr.msk.bf16.mxu1 %vm596_vm1, %v2407_v25 }
  0x3b   : > { %2308 = vmatmul.mubr.msk.bf16.gmra.mrb[20].mxu0 %vm596_vm1, %v2408_v26 }
  0x3c   : > { %2340 = vmatmul.mubr.msk.bf16.gmra.mrb[20].mxu1 %vm596_vm1, %v2409_v27  ;;  %2311 = vmatprep.mubr.msk.bf16.mxu0 %vm596_vm1, %v2410_v28 }
  0x3d   : > { %2343 = vmatprep.mubr.msk.bf16.mxu1 %vm596_vm1, %v2411_v29 }
  0x43   : > { %2312 = vmatmul.mubr.msk.bf16.gmra.mrb[24].mxu0 %vm596_vm1, %v2412_v30 }
  0x44   : > { %2344 = vmatmul.mubr.msk.bf16.gmra.mrb[24].mxu1 %vm596_vm1, %v2413_v31  ;;  %2315 = vmatprep.mubr.msk.bf16.mxu0 %vm596_vm1, %v2414_v32 }
  0x45   : > { %2347 = vmatprep.mubr.msk.bf16.mxu1 %vm596_vm1, %v2415_v33 }
  0x4b   : > { %2316 = vmatmul.mubr.msk.bf16.gmra.mrb[28].mxu0 %vm596_vm1, %v2416_v34 }
  0x4c   : > { %2348 = vmatmul.mubr.msk.bf16.gmra.mrb[28].mxu1 %vm596_vm1, %v2417_v35 }
  0xe6   : > { %v2289_v37 = vpop.f32.mrb[0].mxu0 }
  0xe7   : > { %v2321_v38 = vpop.f32.mrb[0].mxu1  ;;  %v1190_v39 = vadd.f32 %v2289_v37, %v2566_v36  ;;  %v731_v41 = vpop.f32.mrb[1].mxu0 }
  0xe8   : > { %v1222_v40 = vadd.f32 %v2321_v38, %v2566_v36  ;;  %v859_v42 = vpop.f32.mrb[1].mxu1  ;;  %v1188_v43 = vadd.f32 %v2566_v36, %v731_v41  ;;  %v2290_v45 = vpop.f32.mrb[2].mxu0 }
  0xe9   : > { %v1220_v44 = vadd.f32 %v2566_v36, %v859_v42  ;;  %v2322_v46 = vpop.f32.mrb[2].mxu1  ;;  %vm1254_vm2 = vcmp.ge.f32.partialorder %v1190_v39, 0.0  ;;  %v1318_v47 = vmul.f32 0.01, %v1190_v39  ;;  %v1191_v51 = vadd.f32 %v2290_v45, %v2566_v36  ;;  %v734_v53 = vpop.f32.mrb[3].mxu0 }
  0xea   : > { %vm1286_vm3 = vcmp.ge.f32.partialorder %v1222_v40, 0.0  ;;  %v1350_v48 = vmul.f32 0.01, %v1222_v40  ;;  %vm1252_vm4 = vcmp.ge.f32.partialorder %v1188_v43, 0.0  ;;  %v1316_v49 = vmul.f32 0.01, %v1188_v43 }
  0xeb   : > { %vm1284_vm5 = vcmp.ge.f32.partialorder %v1220_v44, 0.0  ;;  %v1348_v50 = vmul.f32 0.01, %v1220_v44  ;;  %v1223_v52 = vadd.f32 %v2322_v46, %v2566_v36  ;;  %v862_v54 = vpop.f32.mrb[3].mxu1  ;;  %v1382_v55 = vsel %vm1254_vm2, %v1190_v39, %v1318_v47 }
  0xec   : > { %v1414_v56 = vsel %vm1286_vm3, %v1222_v40, %v1350_v48  ;;  %v1189_v57 = vadd.f32 %v2566_v36, %v734_v53  ;;  %v1221_v58 = vadd.f32 %v2566_v36, %v862_v54  ;;  %vm1255_vm6 = vcmp.ge.f32.partialorder %v1191_v51, 0.0 }
  0xed   : > { %v1319_v59 = vmul.f32 0.01, %v1191_v51  ;;  %vm1287_vm7 = vcmp.ge.f32.partialorder %v1223_v52, 0.0  ;;  %v1351_v60 = vmul.f32 0.01, %v1223_v52  ;;  %v1380_v63 = vsel %vm1252_vm4, %v1188_v43, %v1316_v49 }
  0xee   : > { %vm1253_vm8 = vcmp.ge.f32.partialorder %v1189_v57, 0.0  ;;  %v1317_v61 = vmul.f32 0.01, %v1189_v57  ;;  %vm1285_vm9 = vcmp.ge.f32.partialorder %v1221_v58, 0.0  ;;  %v1349_v62 = vmul.f32 0.01, %v1221_v58 }
  0xef   : > { %v1412_v0 = vsel %vm1284_vm5, %v1220_v44, %v1348_v50  ;;  %v1383_v1 = vsel %vm1255_vm6, %v1191_v51, %v1319_v59  ;;  %v1415_v2 = vsel %vm1287_vm7, %v1223_v52, %v1351_v60  ;;  %v2293_v3 = vpop.f32.mrb[4].mxu0  ;;  %v2325_v4 = vpop.f32.mrb[4].mxu1 }
  0xf0   : > { %v2063_v5 = vpack.c.bf16 %v1383_v1, %v1382_v55  ;;  %v2143_v6 = vpack.c.bf16 %v1415_v2, %v1414_v56  ;;  %v1381_v7 = vsel %vm1253_vm8, %v1189_v57, %v1317_v61  ;;  %v1413_v8 = vsel %vm1285_vm9, %v1221_v58, %v1349_v62  ;;  %v747_v9 = vpop.f32.mrb[5].mxu0  ;;  %v875_v10 = vpop.f32.mrb[5].mxu1 }
  0xf1   : > { %v2058_v11 = vpack.c.bf16 %v1381_v7, %v1380_v63  ;;  %v2138_v12 = vpack.c.bf16 %v1413_v8, %v1412_v0  ;;  %v1194_v13 = vadd.f32 %v2293_v3, %v2566_v36  ;;  %v1226_v14 = vadd.f32 %v2325_v4, %v2566_v36  ;;  %v2294_v15 = vpop.f32.mrb[6].mxu0  ;;  %v2326_v16 = vpop.f32.mrb[6].mxu1 }
  0xf2   : > { %2215 = vst [vmem:[%s2583_s4 + $0x8] sm:$0xff] %v2063_v5   ;;  %2231 = vst [vmem:[%s2583_s4 + $0x88] sm:$0xff] %v2143_v6   ;;  %v1192_v17 = vadd.f32 %v2566_v36, %v747_v9  ;;  %v1224_v18 = vadd.f32 %v2566_v36, %v875_v10  ;;  %v1195_v19 = vadd.f32 %v2294_v15, %v2566_v36  ;;  %v750_v21 = vpop.f32.mrb[7].mxu0  ;;  %v878_v22 = vpop.f32.mrb[7].mxu1 }
  0xf3   : > { %v1227_v20 = vadd.f32 %v2326_v16, %v2566_v36  ;;  %2059 = vst [vmem:[%s2583_s4] sm:$0xff] %v2058_v11   ;;  %2230 = vst [vmem:[%s2583_s4 + $0x80] sm:$0xff] %v2138_v12   ;;  %vm1258_vm10 = vcmp.ge.f32.partialorder %v1194_v13, 0.0  ;;  %v1322_v23 = vmul.f32 0.01, %v1194_v13  ;;  %vm1290_vm11 = vcmp.ge.f32.partialorder %v1226_v14, 0.0 }
  0xf4   : > { %v1354_v24 = vmul.f32 0.01, %v1226_v14  ;;  %vm1256_vm12 = vcmp.ge.f32.partialorder %v1192_v17, 0.0  ;;  %v1320_v25 = vmul.f32 0.01, %v1192_v17  ;;  %vm1288_vm13 = vcmp.ge.f32.partialorder %v1224_v18, 0.0 }
  0xf5   : > { %v1352_v26 = vmul.f32 0.01, %v1224_v18  ;;  %v1386_v27 = vsel %vm1258_vm10, %v1194_v13, %v1322_v23  ;;  %vm1259_vm14 = vcmp.ge.f32.partialorder %v1195_v19, 0.0  ;;  %v1323_v29 = vmul.f32 0.01, %v1195_v19 }
  0xf6   : > { %v1418_v28 = vsel %vm1290_vm11, %v1226_v14, %v1354_v24  ;;  %v1384_v30 = vsel %vm1256_vm12, %v1192_v17, %v1320_v25  ;;  %vm1291_vm15 = vcmp.ge.f32.partialorder %v1227_v20, 0.0  ;;  %v1355_v32 = vmul.f32 0.01, %v1227_v20  ;;  %v2297_v33 = vpop.f32.mrb[8].mxu0 }
  0xf7   : > { %v1416_v31 = vsel %vm1288_vm13, %v1224_v18, %v1352_v26  ;;  %v2329_v34 = vpop.f32.mrb[8].mxu1  ;;  %v1387_v35 = vsel %vm1259_vm14, %v1195_v19, %v1323_v29  ;;  %v1193_v37 = vadd.f32 %v2566_v36, %v750_v21  ;;  %v1225_v38 = vadd.f32 %v2566_v36, %v878_v22  ;;  %v763_v40 = vpop.f32.mrb[9].mxu0 }
  0xf8   : > { %v1198_v39 = vadd.f32 %v2297_v33, %v2566_v36  ;;  %v891_v41 = vpop.f32.mrb[9].mxu1  ;;  %v2073_v42 = vpack.c.bf16 %v1387_v35, %v1386_v27  ;;  %v1419_v43 = vsel %vm1291_vm15, %v1227_v20, %v1355_v32  ;;  %v1230_v44 = vadd.f32 %v2329_v34, %v2566_v36  ;;  %v2298_v46 = vpop.f32.mrb[10].mxu0 }
  0xf9   : > { %v1196_v45 = vadd.f32 %v2566_v36, %v763_v40  ;;  %v2330_v47 = vpop.f32.mrb[10].mxu1  ;;  %v2153_v48 = vpack.c.bf16 %v1419_v43, %v1418_v28  ;;  %vm1257_vm0 = vcmp.ge.f32.partialorder %v1193_v37, 0.0  ;;  %v1321_v49 = vmul.f32 0.01, %v1193_v37  ;;  %v766_v50 = vpop.f32.mrb[11].mxu0 }
  0xfa   : > { %vm1289_vm1 = vcmp.ge.f32.partialorder %v1225_v38, 0.0  ;;  %v894_v51 = vpop.f32.mrb[11].mxu1  ;;  %2217 = vst [vmem:[%s2583_s4 + $0x18] sm:$0xff] %v2073_v42   ;;  %v1353_v52 = vmul.f32 0.01, %v1225_v38  ;;  %vm1262_vm2 = vcmp.ge.f32.partialorder %v1198_v39, 0.0  ;;  %v1228_v60 = vadd.f32 %v2566_v36, %v891_v41 }
  0xfb   : > { %v1326_v53 = vmul.f32 0.01, %v1198_v39  ;;  %vm1294_vm3 = vcmp.ge.f32.partialorder %v1230_v44, 0.0  ;;  %2233 = vst [vmem:[%s2583_s4 + $0x98] sm:$0xff] %v2153_v48   ;;  %v1385_v54 = vsel %vm1257_vm0, %v1193_v37, %v1321_v49  ;;  %v1358_v55 = vmul.f32 0.01, %v1230_v44 }
  0xfc   : > { %vm1260_vm4 = vcmp.ge.f32.partialorder %v1196_v45, 0.0  ;;  %v1324_v56 = vmul.f32 0.01, %v1196_v45  ;;  %v2068_v57 = vpack.c.bf16 %v1385_v54, %v1384_v30  ;;  %v1417_v58 = vsel %vm1289_vm1, %v1225_v38, %v1353_v52 }
  0xfd   : > { %v1390_v59 = vsel %vm1262_vm2, %v1198_v39, %v1326_v53  ;;  %v2148_v61 = vpack.c.bf16 %v1417_v58, %v1416_v31  ;;  %v1422_v62 = vsel %vm1294_vm3, %v1230_v44, %v1358_v55  ;;  %v1199_v0 = vadd.f32 %v2298_v46, %v2566_v36 }
  0xfe   : > { %v1388_v63 = vsel %vm1260_vm4, %v1196_v45, %v1324_v56  ;;  %2216 = vst [vmem:[%s2583_s4 + $0x10] sm:$0xff] %v2068_v57   ;;  %vm1292_vm5 = vcmp.ge.f32.partialorder %v1228_v60, 0.0  ;;  %v1356_v1 = vmul.f32 0.01, %v1228_v60  ;;  %v1231_v2 = vadd.f32 %v2330_v47, %v2566_v36  ;;  %v2301_v4 = vpop.f32.mrb[12].mxu0 }
  0xff   : > { %v1197_v3 = vadd.f32 %v2566_v36, %v766_v50  ;;  %v2333_v5 = vpop.f32.mrb[12].mxu1  ;;  %2232 = vst [vmem:[%s2583_s4 + $0x90] sm:$0xff] %v2148_v61   ;;  %vm1263_vm6 = vcmp.ge.f32.partialorder %v1199_v0, 0.0  ;;  %v1327_v6 = vmul.f32 0.01, %v1199_v0  ;;  %v1229_v7 = vadd.f32 %v2566_v36, %v894_v51  ;;  %v779_v9 = vpop.f32.mrb[13].mxu0 }
 0x100   : > { %v1202_v8 = vadd.f32 %v2301_v4, %v2566_v36  ;;  %v907_v10 = vpop.f32.mrb[13].mxu1  ;;  %v1420_v11 = vsel %vm1292_vm5, %v1228_v60, %v1356_v1  ;;  %vm1295_vm7 = vcmp.ge.f32.partialorder %v1231_v2, 0.0  ;;  %v1359_v12 = vmul.f32 0.01, %v1231_v2  ;;  %v2302_v13 = vpop.f32.mrb[14].mxu0 }
 0x101   : > { %vm1261_vm8 = vcmp.ge.f32.partialorder %v1197_v3, 0.0  ;;  %v2334_v14 = vpop.f32.mrb[14].mxu1  ;;  %v1391_v15 = vsel %vm1263_vm6, %v1199_v0, %v1327_v6  ;;  %v1325_v16 = vmul.f32 0.01, %v1197_v3  ;;  %vm1293_vm9 = vcmp.ge.f32.partialorder %v1229_v7, 0.0  ;;  %v782_v18 = vpop.f32.mrb[15].mxu0 }
 0x102   : > { %v1357_v17 = vmul.f32 0.01, %v1229_v7  ;;  %v2083_v19 = vpack.c.bf16 %v1391_v15, %v1390_v59  ;;  %v1423_v20 = vsel %vm1295_vm7, %v1231_v2, %v1359_v12  ;;  %vm1266_vm10 = vcmp.ge.f32.partialorder %v1202_v8, 0.0  ;;  %v910_v22 = vpop.f32.mrb[15].mxu1 }
 0x103   : > { %v1330_v21 = vmul.f32 0.01, %v1202_v8  ;;  %v2163_v23 = vpack.c.bf16 %v1423_v20, %v1422_v62  ;;  %v1389_v24 = vsel %vm1261_vm8, %v1197_v3, %v1325_v16  ;;  %v1234_v26 = vadd.f32 %v2333_v5, %v2566_v36 }
 0x104   : > { %v1421_v25 = vsel %vm1293_vm9, %v1229_v7, %v1357_v17  ;;  %2219 = vst [vmem:[%s2583_s4 + $0x28] sm:$0xff] %v2083_v19   ;;  %v2078_v27 = vpack.c.bf16 %v1389_v24, %v1388_v63  ;;  %v1200_v30 = vadd.f32 %v2566_v36, %v779_v9  ;;  %v1232_v32 = vadd.f32 %v2566_v36, %v907_v10 }
 0x105   : > { %v2158_v28 = vpack.c.bf16 %v1421_v25, %v1420_v11  ;;  %v1394_v29 = vsel %vm1266_vm10, %v1202_v8, %v1330_v21  ;;  %2235 = vst [vmem:[%s2583_s4 + $0xa8] sm:$0xff] %v2163_v23   ;;  %vm1298_vm11 = vcmp.ge.f32.partialorder %v1234_v26, 0.0  ;;  %v1362_v31 = vmul.f32 0.01, %v1234_v26 }
 0x106   : > { %v1203_v33 = vadd.f32 %v2302_v13, %v2566_v36  ;;  %2218 = vst [vmem:[%s2583_s4 + $0x20] sm:$0xff] %v2078_v27   ;;  %vm1264_vm12 = vcmp.ge.f32.partialorder %v1200_v30, 0.0  ;;  %v1328_v34 = vmul.f32 0.01, %v1200_v30  ;;  %v1235_v35 = vadd.f32 %v2334_v14, %v2566_v36  ;;  %v2305_v38 = vpop.f32.mrb[16].mxu0 }
 0x107   : > { %2234 = vst [vmem:[%s2583_s4 + $0xa0] sm:$0xff] %v2158_v28   ;;  %v1201_v37 = vadd.f32 %v2566_v36, %v782_v18  ;;  %v2337_v39 = vpop.f32.mrb[16].mxu1  ;;  %v1426_v40 = vsel %vm1298_vm11, %v1234_v26, %v1362_v31  ;;  %vm1296_vm13 = vcmp.ge.f32.partialorder %v1232_v32, 0.0  ;;  %v1360_v41 = vmul.f32 0.01, %v1232_v32  ;;  %v795_v42 = vpop.f32.mrb[17].mxu0 }
 0x108   : > { %vm1267_vm14 = vcmp.ge.f32.partialorder %v1203_v33, 0.0  ;;  %v923_v43 = vpop.f32.mrb[17].mxu1  ;;  %v1392_v44 = vsel %vm1264_vm12, %v1200_v30, %v1328_v34  ;;  %v1331_v45 = vmul.f32 0.01, %v1203_v33  ;;  %vm1299_vm15 = vcmp.ge.f32.partialorder %v1235_v35, 0.0  ;;  %v2306_v47 = vpop.f32.mrb[18].mxu0 }
 0x109   : > { %v1363_v46 = vmul.f32 0.01, %v1235_v35  ;;  %v1424_v48 = vsel %vm1296_vm13, %v1232_v32, %v1360_v41  ;;  %vm1265_vm0 = vcmp.ge.f32.partialorder %v1201_v37, 0.0  ;;  %v1329_v49 = vmul.f32 0.01, %v1201_v37  ;;  %v2338_v51 = vpop.f32.mrb[18].mxu1 }
 0x10a   : > { %v1233_v50 = vadd.f32 %v2566_v36, %v910_v22  ;;  %v798_v52 = vpop.f32.mrb[19].mxu0  ;;  %v1395_v53 = vsel %vm1267_vm14, %v1203_v33, %v1331_v45  ;;  %v1206_v55 = vadd.f32 %v2305_v38, %v2566_v36  ;;  %v1238_v56 = vadd.f32 %v2337_v39, %v2566_v36  ;;  %v926_v57 = vpop.f32.mrb[19].mxu1 }
 0x10b   : > { %v1427_v54 = vsel %vm1299_vm15, %v1235_v35, %v1363_v46  ;;  %v2093_v58 = vpack.c.bf16 %v1395_v53, %v1394_v29  ;;  %v1393_v60 = vsel %vm1265_vm0, %v1201_v37, %v1329_v49  ;;  %v1204_v1 = vadd.f32 %v2566_v36, %v795_v42 }
 0x10c   : > { %v2173_v59 = vpack.c.bf16 %v1427_v54, %v1426_v40  ;;  %vm1297_vm1 = vcmp.ge.f32.partialorder %v1233_v50, 0.0  ;;  %v2088_v61 = vpack.c.bf16 %v1393_v60, %v1392_v44  ;;  %v1361_v62 = vmul.f32 0.01, %v1233_v50 }
 0x10d   : > { %vm1270_vm2 = vcmp.ge.f32.partialorder %v1206_v55, 0.0  ;;  %v1334_v63 = vmul.f32 0.01, %v1206_v55  ;;  %2221 = vst [vmem:[%s2583_s4 + $0x38] sm:$0xff] %v2093_v58   ;;  %vm1302_vm3 = vcmp.ge.f32.partialorder %v1238_v56, 0.0  ;;  %v1236_v2 = vadd.f32 %v2566_v36, %v923_v43 }
 0x10e   : > { %2237 = vst [vmem:[%s2583_s4 + $0xb8] sm:$0xff] %v2173_v59   ;;  %v1366_v0 = vmul.f32 0.01, %v1238_v56  ;;  %2220 = vst [vmem:[%s2583_s4 + $0x30] sm:$0xff] %v2088_v61   ;;  %v1425_v3 = vsel %vm1297_vm1, %v1233_v50, %v1361_v62  ;;  %v1207_v5 = vadd.f32 %v2306_v47, %v2566_v36  ;;  %v1239_v6 = vadd.f32 %v2338_v51, %v2566_v36  ;;  %v2309_v7 = vpop.f32.mrb[20].mxu0 }
 0x10f   : > { %v1398_v4 = vsel %vm1270_vm2, %v1206_v55, %v1334_v63  ;;  %v2341_v8 = vpop.f32.mrb[20].mxu1  ;;  %v2168_v9 = vpack.c.bf16 %v1425_v3, %v1424_v48  ;;  %vm1268_vm4 = vcmp.ge.f32.partialorder %v1204_v1, 0.0  ;;  %v1332_v11 = vmul.f32 0.01, %v1204_v1  ;;  %v811_v12 = vpop.f32.mrb[21].mxu0 }
 0x110   : > { %v1430_v10 = vsel %vm1302_vm3, %v1238_v56, %v1366_v0  ;;  %v939_v13 = vpop.f32.mrb[21].mxu1  ;;  %vm1300_vm5 = vcmp.ge.f32.partialorder %v1236_v2, 0.0  ;;  %v1364_v14 = vmul.f32 0.01, %v1236_v2  ;;  %vm1271_vm6 = vcmp.ge.f32.partialorder %v1207_v5, 0.0  ;;  %v2310_v19 = vpop.f32.mrb[22].mxu0 }
 0x111   : > { %v1335_v15 = vmul.f32 0.01, %v1207_v5  ;;  %2236 = vst [vmem:[%s2583_s4 + $0xb0] sm:$0xff] %v2168_v9   ;;  %v1396_v16 = vsel %vm1268_vm4, %v1204_v1, %v1332_v11  ;;  %vm1303_vm7 = vcmp.ge.f32.partialorder %v1239_v6, 0.0  ;;  %v1367_v17 = vmul.f32 0.01, %v1239_v6 }
 0x112   : > { %v1205_v18 = vadd.f32 %v2566_v36, %v798_v52  ;;  %v2342_v20 = vpop.f32.mrb[22].mxu1  ;;  %v1428_v21 = vsel %vm1300_vm5, %v1236_v2, %v1364_v14  ;;  %v1237_v23 = vadd.f32 %v2566_v36, %v926_v57  ;;  %v1210_v24 = vadd.f32 %v2309_v7, %v2566_v36  ;;  %v814_v25 = vpop.f32.mrb[23].mxu0 }
 0x113   : > { %v1399_v22 = vsel %vm1271_vm6, %v1207_v5, %v1335_v15  ;;  %v942_v26 = vpop.f32.mrb[23].mxu1  ;;  %v1431_v28 = vsel %vm1303_vm7, %v1239_v6, %v1367_v17  ;;  %v1242_v34 = vadd.f32 %v2341_v8, %v2566_v36  ;;  %v1208_v35 = vadd.f32 %v2566_v36, %v811_v12 }
 0x114   : > { %v2103_v27 = vpack.c.bf16 %v1399_v22, %v1398_v4  ;;  %vm1269_vm8 = vcmp.ge.f32.partialorder %v1205_v18, 0.0  ;;  %v1333_v29 = vmul.f32 0.01, %v1205_v18  ;;  %v2183_v30 = vpack.c.bf16 %v1431_v28, %v1430_v10 }
 0x115   : > { %vm1301_vm9 = vcmp.ge.f32.partialorder %v1237_v23, 0.0  ;;  %v1365_v31 = vmul.f32 0.01, %v1237_v23  ;;  %vm1274_vm10 = vcmp.ge.f32.partialorder %v1210_v24, 0.0  ;;  %v1338_v33 = vmul.f32 0.01, %v1210_v24 }
 0x116   : > { %2223 = vst [vmem:[%s2583_s4 + $0x48] sm:$0xff] %v2103_v27   ;;  %v1397_v32 = vsel %vm1269_vm8, %v1205_v18, %v1333_v29  ;;  %2239 = vst [vmem:[%s2583_s4 + $0xc8] sm:$0xff] %v2183_v30   ;;  %v1240_v39 = vadd.f32 %v2566_v36, %v939_v13  ;;  %v1211_v40 = vadd.f32 %v2310_v19, %v2566_v36  ;;  %v2313_v41 = vpop.f32.mrb[24].mxu0  ;;  %vm1306_vm11 = vcmp.ge.f32.partialorder %v1242_v34, 0.0 }
 0x117   : > { %v2098_v37 = vpack.c.bf16 %v1397_v32, %v1396_v16  ;;  %v1429_v38 = vsel %vm1301_vm9, %v1237_v23, %v1365_v31  ;;  %v2345_v42 = vpop.f32.mrb[24].mxu1  ;;  %v1370_v44 = vmul.f32 0.01, %v1242_v34  ;;  %v827_v45 = vpop.f32.mrb[25].mxu0  ;;  %v1402_v47 = vsel %vm1274_vm10, %v1210_v24, %v1338_v33 }
 0x118   : > { %v2178_v43 = vpack.c.bf16 %v1429_v38, %v1428_v21  ;;  %v955_v46 = vpop.f32.mrb[25].mxu1  ;;  %vm1272_vm12 = vcmp.ge.f32.partialorder %v1208_v35, 0.0  ;;  %v1336_v48 = vmul.f32 0.01, %v1208_v35  ;;  %v1368_v49 = vmul.f32 0.01, %v1240_v39 }
 0x119   : > { %2222 = vst [vmem:[%s2583_s4 + $0x40] sm:$0xff] %v2098_v37   ;;  %vm1304_vm13 = vcmp.ge.f32.partialorder %v1240_v39, 0.0  ;;  %vm1275_vm14 = vcmp.ge.f32.partialorder %v1211_v40, 0.0  ;;  %v1339_v50 = vmul.f32 0.01, %v1211_v40  ;;  %v1243_v51 = vadd.f32 %v2342_v20, %v2566_v36  ;;  %v2314_v52 = vpop.f32.mrb[26].mxu0 }
 0x11a   : > { %2238 = vst [vmem:[%s2583_s4 + $0xc0] sm:$0xff] %v2178_v43   ;;  %v2346_v53 = vpop.f32.mrb[26].mxu1  ;;  %v1434_v54 = vsel %vm1306_vm11, %v1242_v34, %v1370_v44  ;;  %v1400_v55 = vsel %vm1272_vm12, %v1208_v35, %v1336_v48  ;;  %v1209_v56 = vadd.f32 %v2566_v36, %v814_v25  ;;  %v1241_v57 = vadd.f32 %v2566_v36, %v942_v26  ;;  %v830_v58 = vpop.f32.mrb[27].mxu0 }
 0x11b   : > { %v958_v59 = vpop.f32.mrb[27].mxu1  ;;  %v1403_v60 = vsel %vm1275_vm14, %v1211_v40, %v1339_v50  ;;  %vm1307_vm15 = vcmp.ge.f32.partialorder %v1243_v51, 0.0  ;;  %v1371_v61 = vmul.f32 0.01, %v1243_v51  ;;  %v1214_v62 = vadd.f32 %v2313_v41, %v2566_v36 }
 0x11c   : > { %v2113_v63 = vpack.c.bf16 %v1403_v60, %v1402_v47  ;;  %vm1273_vm0 = vcmp.ge.f32.partialorder %v1209_v56, 0.0  ;;  %v1337_v0 = vmul.f32 0.01, %v1209_v56  ;;  %vm1305_vm1 = vcmp.ge.f32.partialorder %v1241_v57, 0.0 }
 0x11d   : > { %v1435_v1 = vsel %vm1307_vm15, %v1243_v51, %v1371_v61  ;;  %v1369_v2 = vmul.f32 0.01, %v1241_v57  ;;  %vm1278_vm2 = vcmp.ge.f32.partialorder %v1214_v62, 0.0  ;;  %v1342_v3 = vmul.f32 0.01, %v1214_v62 }
 0x11e   : > { %2225 = vst [vmem:[%s2583_s4 + $0x58] sm:$0xff] %v2113_v63   ;;  %v2193_v4 = vpack.c.bf16 %v1435_v1, %v1434_v54  ;;  %v1401_v5 = vsel %vm1273_vm0, %v1209_v56, %v1337_v0  ;;  %v1246_v6 = vadd.f32 %v2345_v42, %v2566_v36  ;;  %v1212_v7 = vadd.f32 %v2566_v36, %v827_v45  ;;  %v2317_v8 = vpop.f32.mrb[28].mxu0 }
 0x11f   : > { %v2349_v9 = vpop.f32.mrb[28].mxu1  ;;  %v1432_v10 = vsel %vm1304_vm13, %v1240_v39, %v1368_v49  ;;  %v2108_v11 = vpack.c.bf16 %v1401_v5, %v1400_v55  ;;  %v1433_v12 = vsel %vm1305_vm1, %v1241_v57, %v1369_v2  ;;  %v1244_v13 = vadd.f32 %v2566_v36, %v955_v46  ;;  %v843_v14 = vpop.f32.mrb[29].mxu0 }
 0x120   : > { %v971_v15 = vpop.f32.mrb[29].mxu1  ;;  %2241 = vst [vmem:[%s2583_s4 + $0xd8] sm:$0xff] %v2193_v4   ;;  %v2188_v16 = vpack.c.bf16 %v1433_v12, %v1432_v10  ;;  %vm1310_vm3 = vcmp.ge.f32.partialorder %v1246_v6, 0.0  ;;  %v1374_v17 = vmul.f32 0.01, %v1246_v6  ;;  %vm1276_vm4 = vcmp.ge.f32.partialorder %v1212_v7, 0.0 }
 0x121   : > { %v2318_v18 = vpop.f32.mrb[30].mxu0  ;;  %v2350_v19 = vpop.f32.mrb[30].mxu1  ;;  %2224 = vst [vmem:[%s2583_s4 + $0x50] sm:$0xff] %v2108_v11   ;;  %v1406_v20 = vsel %vm1278_vm2, %v1214_v62, %v1342_v3  ;;  %v1340_v21 = vmul.f32 0.01, %v1212_v7  ;;  %vm1308_vm5 = vcmp.ge.f32.partialorder %v1244_v13, 0.0  ;;  %v1215_v22 = vadd.f32 %v2314_v52, %v2566_v36 }
 0x122   : > { %v846_v23 = vpop.f32.mrb[31].mxu0  ;;  %2240 = vst [vmem:[%s2583_s4 + $0xd0] sm:$0xff] %v2188_v16   ;;  %v1372_v24 = vmul.f32 0.01, %v1244_v13  ;;  %v1247_v25 = vadd.f32 %v2346_v53, %v2566_v36  ;;  %v1213_v26 = vadd.f32 %v2566_v36, %v830_v58  ;;  %v1245_v27 = vadd.f32 %v2566_v36, %v958_v59  ;;  %v974_v28 = vpop.f32.mrb[31].mxu1 }
 0x123   : > { %v1438_v29 = vsel %vm1310_vm3, %v1246_v6, %v1374_v17  ;;  %v1404_v30 = vsel %vm1276_vm4, %v1212_v7, %v1340_v21  ;;  %vm1279_vm6 = vcmp.ge.f32.partialorder %v1215_v22, 0.0  ;;  %v1343_v31 = vmul.f32 0.01, %v1215_v22 }
 0x124   : > { %vm1311_vm7 = vcmp.ge.f32.partialorder %v1247_v25, 0.0  ;;  %v1375_v32 = vmul.f32 0.01, %v1247_v25  ;;  %vm1277_vm8 = vcmp.ge.f32.partialorder %v1213_v26, 0.0  ;;  %v1341_v33 = vmul.f32 0.01, %v1213_v26 }
 0x125   : > { %v1407_v34 = vsel %vm1279_vm6, %v1215_v22, %v1343_v31  ;;  %vm1309_vm9 = vcmp.ge.f32.partialorder %v1245_v27, 0.0  ;;  %v1373_v35 = vmul.f32 0.01, %v1245_v27  ;;  %v1218_v37 = vadd.f32 %v2317_v8, %v2566_v36 }
 0x126   : > { %v2123_v38 = vpack.c.bf16 %v1407_v34, %v1406_v20  ;;  %v1439_v39 = vsel %vm1311_vm7, %v1247_v25, %v1375_v32  ;;  %v1405_v40 = vsel %vm1277_vm8, %v1213_v26, %v1341_v33  ;;  %v1250_v41 = vadd.f32 %v2349_v9, %v2566_v36 }
 0x127   : > { %v1436_v42 = vsel %vm1308_vm5, %v1244_v13, %v1372_v24  ;;  %v2203_v43 = vpack.c.bf16 %v1439_v39, %v1438_v29  ;;  %v2118_v44 = vpack.c.bf16 %v1405_v40, %v1404_v30  ;;  %v1437_v45 = vsel %vm1309_vm9, %v1245_v27, %v1373_v35 }
 0x128   : > { %2227 = vst [vmem:[%s2583_s4 + $0x68] sm:$0xff] %v2123_v38   ;;  %v2198_v46 = vpack.c.bf16 %v1437_v45, %v1436_v42  ;;  %vm1282_vm10 = vcmp.ge.f32.partialorder %v1218_v37, 0.0  ;;  %v1346_v47 = vmul.f32 0.01, %v1218_v37  ;;  %v1378_v48 = vmul.f32 0.01, %v1250_v41 }
 0x129   : > { %2243 = vst [vmem:[%s2583_s4 + $0xe8] sm:$0xff] %v2203_v43   ;;  %2226 = vst [vmem:[%s2583_s4 + $0x60] sm:$0xff] %v2118_v44   ;;  %v1216_v49 = vadd.f32 %v2566_v36, %v843_v14  ;;  %v1248_v50 = vadd.f32 %v2566_v36, %v971_v15  ;;  %v1219_v51 = vadd.f32 %v2318_v18, %v2566_v36  ;;  %vm1314_vm11 = vcmp.ge.f32.partialorder %v1250_v41, 0.0 }
 0x12a   : > { %v1251_v52 = vadd.f32 %v2350_v19, %v2566_v36  ;;  %2242 = vst [vmem:[%s2583_s4 + $0xe0] sm:$0xff] %v2198_v46   ;;  %v1217_v53 = vadd.f32 %v2566_v36, %v846_v23  ;;  %v1249_v54 = vadd.f32 %v2566_v36, %v974_v28  ;;  %v1410_v55 = vsel %vm1282_vm10, %v1218_v37, %v1346_v47 }
 0x12b   : > { %vm1280_vm12 = vcmp.ge.f32.partialorder %v1216_v49, 0.0  ;;  %v1344_v56 = vmul.f32 0.01, %v1216_v49  ;;  %v1376_v57 = vmul.f32 0.01, %v1248_v50  ;;  %vm1283_vm13 = vcmp.ge.f32.partialorder %v1219_v51, 0.0 }
 0x12c   : > { %v1347_v58 = vmul.f32 0.01, %v1219_v51  ;;  %vm1315_vm14 = vcmp.ge.f32.partialorder %v1251_v52, 0.0  ;;  %v1379_v59 = vmul.f32 0.01, %v1251_v52  ;;  %v1442_v60 = vsel %vm1314_vm11, %v1250_v41, %v1378_v48 }
 0x12d   : > { %vm1312_vm15 = vcmp.ge.f32.partialorder %v1248_v50, 0.0  ;;  %vm1281_vm0 = vcmp.ge.f32.partialorder %v1217_v53, 0.0  ;;  %v1345_v61 = vmul.f32 0.01, %v1217_v53  ;;  %vm1313_vm1 = vcmp.ge.f32.partialorder %v1249_v54, 0.0 }
 0x12e   : > { %v1411_v62 = vsel %vm1283_vm13, %v1219_v51, %v1347_v58  ;;  %v1443_v63 = vsel %vm1315_vm14, %v1251_v52, %v1379_v59  ;;  %v1377_v36 = vmul.f32 0.01, %v1249_v54  ;;  %v1408_v0 = vsel %vm1280_vm12, %v1216_v49, %v1344_v56 }
 0x12f   : > { %v2133_v1 = vpack.c.bf16 %v1411_v62, %v1410_v55  ;;  %v2213_v2 = vpack.c.bf16 %v1443_v63, %v1442_v60  ;;  %v1409_v3 = vsel %vm1281_vm0, %v1217_v53, %v1345_v61  ;;  %v1440_v4 = vsel %vm1312_vm15, %v1248_v50, %v1376_v57 }
 0x130   : > { %v2128_v5 = vpack.c.bf16 %v1409_v3, %v1408_v0  ;;  %v1441_v6 = vsel %vm1313_vm1, %v1249_v54, %v1377_v36 }
 0x131   : > { %2229 = vst [vmem:[%s2583_s4 + $0x78] sm:$0xff] %v2133_v1   ;;  %2245 = vst [vmem:[%s2583_s4 + $0xf8] sm:$0xff] %v2213_v2   ;;  %v2208_v7 = vpack.c.bf16 %v1441_v6, %v1440_v4 }
 0x132   : > { %2228 = vst [vmem:[%s2583_s4 + $0x70] sm:$0xff] %v2128_v5  }
 0x133   : > { %2244 = vst [vmem:[%s2583_s4 + $0xf0] sm:$0xff] %v2208_v7  }
 0x134 PF: > { %s13_s14 = sadd.s32 1, %s2440_s14   ;;  %s2693_s12 = smov %s2436_s13 }
 0x135   : > { %p10_p5 = scmp.ge.s32.totalorder %s13_s14, 6   ;;  %s2694_s13 = smov %s2696_s15 }
 0x137   :  { %12 = sbr.rel (!%p10_p5) target bundleno = 2 (0x2), region = 73 }

// kernel: _lambda_.25
= control target key start
LH: loop header
LB: loop body
LE: loop exit
PB: predicated region body
PF: predicated region fallthrough
CT: control target
= control target key end

     0   :  { %s1470_s12 = smov 0   ;;  %s1472_s13 = smov 0   ;;  %s1614_s0 = inlined_call_operand.vmem [shape: bf16[512,36], index: 0, kind: input, shape index: {}]   ;;  %s1615_s1 = inlined_call_operand.vmem [shape: bf16[36,128], index: 1, kind: input, shape index: {}]   ;;  %s1616_s2 = inlined_call_operand.vmem [shape: f32[1,128], index: 2, kind: input, shape index: {}]   ;;  %s1617_s3 = inlined_call_operand.vmem [shape: bf16[512,128], index: 3, kind: output, shape index: {}]  }
   0x1   :  { %s1474_s14 = smov 0  }
   0x2 LB: > { %s25_s15 = sadd.s32 1, %s1444_s13  ;;  %p1116_p0 = scmp.ge.s32.totalorder %s1448_s14, 1  ;;  %s1448_s14 = sphi %s1474_s14, %s13_s14   ;;  %s1444_s13 = sphi %s1472_s13, %s1619_s13   ;;  %s1440_s12 = sphi %s1470_s12, %s1618_s12  }
   0x3   : > { %p27_p1 = scmp.ge.s32.totalorder %s25_s15, 2  ;;  %p166_p2 = scmp.lt.s32.totalorder %s1448_s14, 3 }
   0x5   : > { %s1621_s15 = smov (%p27_p1, %s25_s15), 0  ;;  %p167_p3 = pnand %p1116_p0, %p166_p2 }
   0x6   : > { %v1407_v0 = vld [vmem:[%s1615_s1] sm:$0xff] (!%p167_p3)   ;;  %v1408_v1 = vld [vmem:[%s1615_s1 + $0x8] sm:$0xff] (!%p167_p3)   ;;  %s1117_s20 = sshll.u32 (!%p167_p3), %s1440_s12, 5  ;;  %v1409_v2 = vld [vmem:[%s1615_s1 + $0x10] ss:$0 sps:$4 sm:$0x33] (!%p167_p3)  }
   0x7   : > { %170 = sbr.rel (%p167_p3) target bundleno = 274 (0x112), region = 32  ;;  %1337 = vmatprep.subr.bf16.mxu0 (!%p167_p3), %v1407_v0  ;;  %1375 = vmatprep.subr.bf16.mxu1 (!%p167_p3), %v1407_v0  ;;  %p199_p4 = scmp.lt.s32.totalorder (!%p167_p3), %s1117_s20, 63  ;;  %vm469_vm0 = vcmask (!%p167_p3), 1041408   ;;  %vm420_vm1 = vcmask (!%p167_p3), 293888   ;;  %v1542_v20 = vld [vmem:[%s1616_s2] ss:$0 sm:$0xff] (!%p167_p3) }
   0x8   : > { %1338 = vmatpush3.bf16.msra.mxu0 (!%p167_p3), %v1407_v0  ;;  %1378 = vmatpush3.bf16.msra.mxu1 (!%p167_p3), %v1407_v0  ;;  %v471_v3 = vsel (!%p167_p3), %vm469_vm0, %v1409_v2, 0 }
   0x9   : > { %1339 = vmatprep.subr.bf16.mxu0 (!%p167_p3), %v1408_v1  ;;  %1376 = vmatprep.subr.bf16.mxu1 (!%p167_p3), %v1408_v1 }
   0xc   : > { %1340 = vmatpush3.bf16.msra.mxu0 (!%p167_p3), %v1408_v1  ;;  %1379 = vmatpush3.bf16.msra.mxu1 (!%p167_p3), %v1408_v1 }
   0xd   : > { %1381 = vmatprep.subr.msk.bf16.mxu0 (!%p167_p3), %vm469_vm0, %v1409_v2  ;;  %1382 = vmatprep.subr.msk.bf16.mxu1 (!%p167_p3), %vm469_vm0, %v1409_v2 }
   0xe   : > { %s1623_s20 = smov (!%p199_p4, %s1117_s20), 63 }
   0xf   : > { %s1118_s23 = sshll.u32 %s1623_s20, 2 }
  0x10   : > { %s1505_s26 = scalar_lea.vmem %s1614_s0, %s1118_s23  ;;  %1342 = vmatpush3.bf16.msra.mxu0 %v471_v3  ;;  %1380 = vmatpush3.bf16.msra.mxu1 %v471_v3  ;;  %s1559_s4 = scalar_lea.vmem %s1617_s3, %s1118_s23 }
  0x11   : > { %v1410_v4 = vld [vmem:[%s1505_s26] sm:$0xff]   ;;  %v1412_v6 = vld [vmem:[%s1505_s26 + $0x8] sm:$0xff]   ;;  %v1414_v8 = vld [vmem:[%s1505_s26 + $0x10] sm:$0xff]  }
  0x12   : > { %v1411_v5 = vld [vmem:[%s1505_s26 + $0x40] sm:$0xff]   ;;  %1343 = vmatprep.mubr.msk.bf16.mxu0 %vm420_vm1, %v1410_v4  ;;  %v1413_v7 = vld [vmem:[%s1505_s26 + $0x48] sm:$0xff]   ;;  %v1415_v9 = vld [vmem:[%s1505_s26 + $0x50] sm:$0xff]  }
  0x13   : > { %1359 = vmatprep.mubr.msk.bf16.mxu1 %vm420_vm1, %v1411_v5  ;;  %1344 = vmatmul.mubr.msk.bf16.vlgmr.msra.gmra.mrb[0].mxu0 %vm420_vm1, %v1412_v6  ;;  %v1416_v10 = vld [vmem:[%s1505_s26 + $0x18] sm:$0xff]   ;;  %v1418_v12 = vld [vmem:[%s1505_s26 + $0x20] sm:$0xff]   ;;  %v1420_v14 = vld [vmem:[%s1505_s26 + $0x28] sm:$0xff]  }
  0x14   : > { %1360 = vmatmul.mubr.msk.bf16.vlgmr.msra.gmra.mrb[0].mxu1 %vm420_vm1, %v1413_v7  ;;  %1347 = vmatprep.mubr.msk.bf16.mxu0 %vm420_vm1, %v1414_v8  ;;  %v1417_v11 = vld [vmem:[%s1505_s26 + $0x58] sm:$0xff]   ;;  %v1419_v13 = vld [vmem:[%s1505_s26 + $0x60] sm:$0xff]   ;;  %v1421_v15 = vld [vmem:[%s1505_s26 + $0x68] sm:$0xff]  }
  0x15   : > { %1363 = vmatprep.mubr.msk.bf16.mxu1 %vm420_vm1, %v1415_v9  ;;  %v1422_v16 = vld [vmem:[%s1505_s26 + $0x30] sm:$0xff]   ;;  %v1424_v18 = vld [vmem:[%s1505_s26 + $0x38] sm:$0xff]  }
  0x16   : > { %v1423_v17 = vld [vmem:[%s1505_s26 + $0x70] sm:$0xff]   ;;  %v1425_v19 = vld [vmem:[%s1505_s26 + $0x78] sm:$0xff]  }
  0x1b   : > { %1348 = vmatmul.mubr.msk.bf16.gmra.mrb[4].mxu0 %vm420_vm1, %v1416_v10 }
  0x1c   : > { %1364 = vmatmul.mubr.msk.bf16.gmra.mrb[4].mxu1 %vm420_vm1, %v1417_v11  ;;  %1351 = vmatprep.mubr.msk.bf16.mxu0 %vm420_vm1, %v1418_v12 }
  0x1d   : > { %1367 = vmatprep.mubr.msk.bf16.mxu1 %vm420_vm1, %v1419_v13 }
  0x23   : > { %1352 = vmatmul.mubr.msk.bf16.gmra.mrb[8].mxu0 %vm420_vm1, %v1420_v14 }
  0x24   : > { %1368 = vmatmul.mubr.msk.bf16.gmra.mrb[8].mxu1 %vm420_vm1, %v1421_v15  ;;  %1355 = vmatprep.mubr.msk.bf16.mxu0 %vm420_vm1, %v1422_v16 }
  0x25   : > { %1371 = vmatprep.mubr.msk.bf16.mxu1 %vm420_vm1, %v1423_v17 }
  0x2b   : > { %1356 = vmatmul.mubr.msk.bf16.gmra.mrb[12].mxu0 %vm420_vm1, %v1424_v18 }
  0x2c   : > { %1372 = vmatmul.mubr.msk.bf16.gmra.mrb[12].mxu1 %vm420_vm1, %v1425_v19 }
  0xe6   : > { %v1345_v21 = vpop.f32.mrb[0].mxu0 }
  0xe7   : > { %v1361_v22 = vpop.f32.mrb[0].mxu1  ;;  %v742_v23 = vadd.f32 %v1345_v21, %v1542_v20  ;;  %v507_v25 = vpop.f32.mrb[1].mxu0 }
  0xe8   : > { %v758_v24 = vadd.f32 %v1361_v22, %v1542_v20  ;;  %v571_v26 = vpop.f32.mrb[1].mxu1  ;;  %v740_v27 = vadd.f32 %v1542_v20, %v507_v25  ;;  %v1346_v29 = vpop.f32.mrb[2].mxu0 }
  0xe9   : > { %v756_v28 = vadd.f32 %v1542_v20, %v571_v26  ;;  %v1362_v30 = vpop.f32.mrb[2].mxu1  ;;  %vm774_vm2 = vcmp.ge.f32.partialorder %v742_v23, 0.0  ;;  %v806_v31 = vmul.f32 0.01, %v742_v23  ;;  %v743_v35 = vadd.f32 %v1346_v29, %v1542_v20  ;;  %v510_v37 = vpop.f32.mrb[3].mxu0 }
  0xea   : > { %vm790_vm3 = vcmp.ge.f32.partialorder %v758_v24, 0.0  ;;  %v822_v32 = vmul.f32 0.01, %v758_v24  ;;  %vm772_vm4 = vcmp.ge.f32.partialorder %v740_v27, 0.0  ;;  %v804_v33 = vmul.f32 0.01, %v740_v27 }
  0xeb   : > { %vm788_vm5 = vcmp.ge.f32.partialorder %v756_v28, 0.0  ;;  %v820_v34 = vmul.f32 0.01, %v756_v28  ;;  %v759_v36 = vadd.f32 %v1362_v30, %v1542_v20  ;;  %v574_v38 = vpop.f32.mrb[3].mxu1  ;;  %v838_v39 = vsel %vm774_vm2, %v742_v23, %v806_v31 }
  0xec   : > { %v854_v40 = vsel %vm790_vm3, %v758_v24, %v822_v32  ;;  %v741_v41 = vadd.f32 %v1542_v20, %v510_v37  ;;  %v757_v42 = vadd.f32 %v1542_v20, %v574_v38  ;;  %vm775_vm6 = vcmp.ge.f32.partialorder %v743_v35, 0.0 }
  0xed   : > { %v807_v43 = vmul.f32 0.01, %v743_v35  ;;  %vm791_vm7 = vcmp.ge.f32.partialorder %v759_v36, 0.0  ;;  %v823_v44 = vmul.f32 0.01, %v759_v36  ;;  %v836_v47 = vsel %vm772_vm4, %v740_v27, %v804_v33 }
  0xee   : > { %vm773_vm8 = vcmp.ge.f32.partialorder %v741_v41, 0.0  ;;  %v805_v45 = vmul.f32 0.01, %v741_v41  ;;  %vm789_vm9 = vcmp.ge.f32.partialorder %v757_v42, 0.0  ;;  %v821_v46 = vmul.f32 0.01, %v757_v42 }
  0xef   : > { %v852_v48 = vsel %vm788_vm5, %v756_v28, %v820_v34  ;;  %v839_v49 = vsel %vm775_vm6, %v743_v35, %v807_v43  ;;  %v855_v50 = vsel %vm791_vm7, %v759_v36, %v823_v44  ;;  %v1349_v51 = vpop.f32.mrb[4].mxu0  ;;  %v1365_v52 = vpop.f32.mrb[4].mxu1 }
  0xf0   : > { %v1231_v53 = vpack.c.bf16 %v839_v49, %v838_v39  ;;  %v1271_v54 = vpack.c.bf16 %v855_v50, %v854_v40  ;;  %v837_v55 = vsel %vm773_vm8, %v741_v41, %v805_v45  ;;  %v853_v56 = vsel %vm789_vm9, %v757_v42, %v821_v46  ;;  %v523_v57 = vpop.f32.mrb[5].mxu0  ;;  %v587_v58 = vpop.f32.mrb[5].mxu1 }
  0xf1   : > { %v1226_v59 = vpack.c.bf16 %v837_v55, %v836_v47  ;;  %v1266_v60 = vpack.c.bf16 %v853_v56, %v852_v48  ;;  %v746_v61 = vadd.f32 %v1349_v51, %v1542_v20  ;;  %v762_v62 = vadd.f32 %v1365_v52, %v1542_v20  ;;  %v1350_v63 = vpop.f32.mrb[6].mxu0  ;;  %v1366_v0 = vpop.f32.mrb[6].mxu1 }
  0xf2   : > { %1303 = vst [vmem:[%s1559_s4 + $0x8] sm:$0xff] %v1231_v53   ;;  %1311 = vst [vmem:[%s1559_s4 + $0x48] sm:$0xff] %v1271_v54   ;;  %v744_v1 = vadd.f32 %v1542_v20, %v523_v57  ;;  %v760_v2 = vadd.f32 %v1542_v20, %v587_v58  ;;  %v747_v3 = vadd.f32 %v1350_v63, %v1542_v20  ;;  %v526_v5 = vpop.f32.mrb[7].mxu0  ;;  %v590_v6 = vpop.f32.mrb[7].mxu1 }
  0xf3   : > { %v763_v4 = vadd.f32 %v1366_v0, %v1542_v20  ;;  %1227 = vst [vmem:[%s1559_s4] sm:$0xff] %v1226_v59   ;;  %1310 = vst [vmem:[%s1559_s4 + $0x40] sm:$0xff] %v1266_v60   ;;  %vm778_vm10 = vcmp.ge.f32.partialorder %v746_v61, 0.0  ;;  %v810_v7 = vmul.f32 0.01, %v746_v61  ;;  %vm794_vm11 = vcmp.ge.f32.partialorder %v762_v62, 0.0 }
  0xf4   : > { %v826_v8 = vmul.f32 0.01, %v762_v62  ;;  %vm776_vm12 = vcmp.ge.f32.partialorder %v744_v1, 0.0  ;;  %v808_v9 = vmul.f32 0.01, %v744_v1  ;;  %vm792_vm13 = vcmp.ge.f32.partialorder %v760_v2, 0.0 }
  0xf5   : > { %v842_v10 = vsel %vm778_vm10, %v746_v61, %v810_v7  ;;  %v824_v11 = vmul.f32 0.01, %v760_v2  ;;  %vm779_vm14 = vcmp.ge.f32.partialorder %v747_v3, 0.0  ;;  %v811_v12 = vmul.f32 0.01, %v747_v3 }
  0xf6   : > { %v858_v13 = vsel %vm794_vm11, %v762_v62, %v826_v8  ;;  %v840_v14 = vsel %vm776_vm12, %v744_v1, %v808_v9  ;;  %vm795_vm15 = vcmp.ge.f32.partialorder %v763_v4, 0.0  ;;  %v827_v15 = vmul.f32 0.01, %v763_v4  ;;  %v1353_v16 = vpop.f32.mrb[8].mxu0 }
  0xf7   : > { %v1369_v17 = vpop.f32.mrb[8].mxu1  ;;  %v843_v18 = vsel %vm779_vm14, %v747_v3, %v811_v12  ;;  %v745_v19 = vadd.f32 %v1542_v20, %v526_v5  ;;  %v761_v21 = vadd.f32 %v1542_v20, %v590_v6  ;;  %v750_v22 = vadd.f32 %v1353_v16, %v1542_v20  ;;  %v539_v23 = vpop.f32.mrb[9].mxu0 }
  0xf8   : > { %v603_v24 = vpop.f32.mrb[9].mxu1  ;;  %v1241_v25 = vpack.c.bf16 %v843_v18, %v842_v10  ;;  %v859_v26 = vsel %vm795_vm15, %v763_v4, %v827_v15  ;;  %v766_v27 = vadd.f32 %v1369_v17, %v1542_v20  ;;  %v748_v28 = vadd.f32 %v1542_v20, %v539_v23  ;;  %v1354_v29 = vpop.f32.mrb[10].mxu0 }
  0xf9   : > { %v1370_v30 = vpop.f32.mrb[10].mxu1  ;;  %v1281_v31 = vpack.c.bf16 %v859_v26, %v858_v13  ;;  %vm777_vm0 = vcmp.ge.f32.partialorder %v745_v19, 0.0  ;;  %v809_v32 = vmul.f32 0.01, %v745_v19  ;;  %vm793_vm1 = vcmp.ge.f32.partialorder %v761_v21, 0.0  ;;  %v542_v33 = vpop.f32.mrb[11].mxu0 }
  0xfa   : > { %v606_v34 = vpop.f32.mrb[11].mxu1  ;;  %1305 = vst [vmem:[%s1559_s4 + $0x18] sm:$0xff] %v1241_v25   ;;  %v825_v35 = vmul.f32 0.01, %v761_v21  ;;  %vm782_vm2 = vcmp.ge.f32.partialorder %v750_v22, 0.0  ;;  %vm798_vm3 = vcmp.ge.f32.partialorder %v766_v27, 0.0  ;;  %v856_v37 = vsel %vm792_vm13, %v760_v2, %v824_v11 }
  0xfb   : > { %v814_v36 = vmul.f32 0.01, %v750_v22  ;;  %1313 = vst [vmem:[%s1559_s4 + $0x58] sm:$0xff] %v1281_v31   ;;  %v841_v38 = vsel %vm777_vm0, %v745_v19, %v809_v32  ;;  %v830_v39 = vmul.f32 0.01, %v766_v27  ;;  %vm780_vm4 = vcmp.ge.f32.partialorder %v748_v28, 0.0 }
  0xfc   : > { %v1236_v40 = vpack.c.bf16 %v841_v38, %v840_v14  ;;  %v857_v41 = vsel %vm793_vm1, %v761_v21, %v825_v35  ;;  %v812_v42 = vmul.f32 0.01, %v748_v28  ;;  %v764_v43 = vadd.f32 %v1542_v20, %v603_v24 }
  0xfd   : > { %v1276_v44 = vpack.c.bf16 %v857_v41, %v856_v37  ;;  %v846_v45 = vsel %vm782_vm2, %v750_v22, %v814_v36  ;;  %v862_v46 = vsel %vm798_vm3, %v766_v27, %v830_v39  ;;  %v751_v47 = vadd.f32 %v1354_v29, %v1542_v20 }
  0xfe   : > { %1304 = vst [vmem:[%s1559_s4 + $0x10] sm:$0xff] %v1236_v40   ;;  %vm796_vm5 = vcmp.ge.f32.partialorder %v764_v43, 0.0  ;;  %v828_v48 = vmul.f32 0.01, %v764_v43  ;;  %v767_v49 = vadd.f32 %v1370_v30, %v1542_v20  ;;  %v749_v50 = vadd.f32 %v1542_v20, %v542_v33  ;;  %v1357_v51 = vpop.f32.mrb[12].mxu0 }
  0xff   : > { %v1373_v52 = vpop.f32.mrb[12].mxu1  ;;  %1312 = vst [vmem:[%s1559_s4 + $0x50] sm:$0xff] %v1276_v44   ;;  %vm783_vm6 = vcmp.ge.f32.partialorder %v751_v47, 0.0  ;;  %v815_v53 = vmul.f32 0.01, %v751_v47  ;;  %v765_v54 = vadd.f32 %v1542_v20, %v606_v34  ;;  %v754_v55 = vadd.f32 %v1357_v51, %v1542_v20  ;;  %v555_v56 = vpop.f32.mrb[13].mxu0 }
 0x100   : > { %v619_v57 = vpop.f32.mrb[13].mxu1  ;;  %v844_v58 = vsel %vm780_vm4, %v748_v28, %v812_v42  ;;  %vm799_vm7 = vcmp.ge.f32.partialorder %v767_v49, 0.0  ;;  %v831_v59 = vmul.f32 0.01, %v767_v49  ;;  %vm781_vm8 = vcmp.ge.f32.partialorder %v749_v50, 0.0  ;;  %v1358_v60 = vpop.f32.mrb[14].mxu0 }
 0x101   : > { %v1374_v61 = vpop.f32.mrb[14].mxu1  ;;  %v847_v62 = vsel %vm783_vm6, %v751_v47, %v815_v53  ;;  %v813_v63 = vmul.f32 0.01, %v749_v50  ;;  %vm797_vm9 = vcmp.ge.f32.partialorder %v765_v54, 0.0  ;;  %v829_v0 = vmul.f32 0.01, %v765_v54 }
 0x102   : > { %v558_v1 = vpop.f32.mrb[15].mxu0  ;;  %v860_v2 = vsel %vm796_vm5, %v764_v43, %v828_v48  ;;  %v1251_v3 = vpack.c.bf16 %v847_v62, %v846_v45  ;;  %v863_v4 = vsel %vm799_vm7, %v767_v49, %v831_v59  ;;  %v818_v5 = vmul.f32 0.01, %v754_v55  ;;  %v622_v6 = vpop.f32.mrb[15].mxu1 }
 0x103   : > { %v1291_v7 = vpack.c.bf16 %v863_v4, %v862_v46  ;;  %v845_v8 = vsel %vm781_vm8, %v749_v50, %v813_v63  ;;  %v861_v9 = vsel %vm797_vm9, %v765_v54, %v829_v0  ;;  %v770_v10 = vadd.f32 %v1373_v52, %v1542_v20 }
 0x104   : > { %1307 = vst [vmem:[%s1559_s4 + $0x28] sm:$0xff] %v1251_v3   ;;  %v1246_v11 = vpack.c.bf16 %v845_v8, %v844_v58  ;;  %v1286_v12 = vpack.c.bf16 %v861_v9, %v860_v2  ;;  %vm786_vm10 = vcmp.ge.f32.partialorder %v754_v55, 0.0  ;;  %v752_v13 = vadd.f32 %v1542_v20, %v555_v56 }
 0x105   : > { %1315 = vst [vmem:[%s1559_s4 + $0x68] sm:$0xff] %v1291_v7   ;;  %vm802_vm11 = vcmp.ge.f32.partialorder %v770_v10, 0.0  ;;  %v834_v14 = vmul.f32 0.01, %v770_v10  ;;  %v768_v15 = vadd.f32 %v1542_v20, %v619_v57  ;;  %v755_v16 = vadd.f32 %v1358_v60, %v1542_v20 }
 0x106   : > { %1306 = vst [vmem:[%s1559_s4 + $0x20] sm:$0xff] %v1246_v11   ;;  %1314 = vst [vmem:[%s1559_s4 + $0x60] sm:$0xff] %v1286_v12   ;;  %v816_v17 = vmul.f32 0.01, %v752_v13  ;;  %v771_v18 = vadd.f32 %v1374_v61, %v1542_v20  ;;  %v753_v19 = vadd.f32 %v1542_v20, %v558_v1  ;;  %v850_v21 = vsel %vm786_vm10, %v754_v55, %v818_v5 }
 0x107   : > { %vm784_vm12 = vcmp.ge.f32.partialorder %v752_v13, 0.0  ;;  %vm787_vm13 = vcmp.ge.f32.partialorder %v755_v16, 0.0  ;;  %v866_v22 = vsel %vm802_vm11, %v770_v10, %v834_v14  ;;  %v819_v23 = vmul.f32 0.01, %v755_v16 }
 0x108   : > { %vm803_vm14 = vcmp.ge.f32.partialorder %v771_v18, 0.0  ;;  %v835_v24 = vmul.f32 0.01, %v771_v18  ;;  %vm800_vm15 = vcmp.ge.f32.partialorder %v768_v15, 0.0  ;;  %vm785_vm0 = vcmp.ge.f32.partialorder %v753_v19, 0.0 }
 0x109   : > { %v817_v25 = vmul.f32 0.01, %v753_v19  ;;  %v769_v26 = vadd.f32 %v1542_v20, %v622_v6  ;;  %v848_v27 = vsel %vm784_vm12, %v752_v13, %v816_v17  ;;  %v832_v28 = vmul.f32 0.01, %v768_v15 }
 0x10a   : > { %v851_v29 = vsel %vm787_vm13, %v755_v16, %v819_v23  ;;  %v867_v30 = vsel %vm803_vm14, %v771_v18, %v835_v24 }
 0x10b   : > { %v1261_v31 = vpack.c.bf16 %v851_v29, %v850_v21  ;;  %v1301_v32 = vpack.c.bf16 %v867_v30, %v866_v22  ;;  %v849_v33 = vsel %vm785_vm0, %v753_v19, %v817_v25  ;;  %vm801_vm1 = vcmp.ge.f32.partialorder %v769_v26, 0.0 }
 0x10c   : > { %v1256_v34 = vpack.c.bf16 %v849_v33, %v848_v27  ;;  %v833_v35 = vmul.f32 0.01, %v769_v26  ;;  %v864_v36 = vsel %vm800_vm15, %v768_v15, %v832_v28 }
 0x10d   : > { %1309 = vst [vmem:[%s1559_s4 + $0x38] sm:$0xff] %v1261_v31   ;;  %1317 = vst [vmem:[%s1559_s4 + $0x78] sm:$0xff] %v1301_v32  }
 0x10e   : > { %1308 = vst [vmem:[%s1559_s4 + $0x30] sm:$0xff] %v1256_v34   ;;  %v865_v37 = vsel %vm801_vm1, %v769_v26, %v833_v35 }
 0x10f   : > { %v1296_v38 = vpack.c.bf16 %v865_v37, %v864_v36 }
 0x111   : > { %1316 = vst [vmem:[%s1559_s4 + $0x70] sm:$0xff] %v1296_v38  }
 0x112 PF: > { %s13_s14 = sadd.s32 1, %s1448_s14   ;;  %s1618_s12 = smov %s1444_s13 }
 0x113   : > { %p10_p5 = scmp.ge.s32.totalorder %s13_s14, 4   ;;  %s1619_s13 = smov %s1621_s15 }
 0x115   :  { %12 = sbr.rel (!%p10_p5) target bundleno = 2 (0x2), region = 73 }

// kernel: _lambda_.26
= control target key start
LH: loop header
LB: loop body
LE: loop exit
PB: predicated region body
PF: predicated region fallthrough
CT: control target
= control target key end

     0   :  { %vm143_vm0 = vcmask 588800   ;;  %vm168_vm1 = vcmask 1043456   ;;  %s756_s1 = inlined_call_operand.vmem [shape: bf16[72,128], index: 1, kind: input, shape index: {}]   ;;  %s757_s0 = inlined_call_operand.vmem [shape: bf16[128,72], index: 0, kind: input, shape index: {}]   ;;  %s758_s2 = inlined_call_operand.vmem [shape: f32[1,128], index: 2, kind: input, shape index: {}]   ;;  %s759_s3 = inlined_call_operand.vmem [shape: bf16[128,128], index: 3, kind: output, shape index: {}]  }
   0x1   :  { %v627_v0 = vld [vmem:[%s756_s1] sm:$0xff]   ;;  %v628_v1 = vld [vmem:[%s756_s1 + $0x8] sm:$0xff]   ;;  %v629_v2 = vld [vmem:[%s756_s1 + $0x10] sm:$0xff]  }
   0x2   :  { %589 = vmatprep.subr.bf16.mxu0 %v627_v0  ;;  %615 = vmatprep.subr.bf16.mxu1 %v627_v0  ;;  %v632_v3 = vld [vmem:[%s757_s0] sm:$0xff]   ;;  %v630_v5 = vld [vmem:[%s756_s1 + $0x18] sm:$0xff]   ;;  %v634_v8 = vld [vmem:[%s757_s0 + $0x8] sm:$0xff]  }
   0x3   :  { %590 = vmatpush3.bf16.msra.mxu0 %v627_v0  ;;  %620 = vmatpush3.bf16.msra.mxu1 %v627_v0  ;;  %v633_v4 = vld [vmem:[%s757_s0 + $0x20] sm:$0xff]   ;;  %v635_v9 = vld [vmem:[%s757_s0 + $0x28] sm:$0xff]   ;;  %v636_v10 = vld [vmem:[%s757_s0 + $0x10] sm:$0xff]  }
   0x4   :  { %591 = vmatprep.subr.bf16.mxu0 %v628_v1  ;;  %616 = vmatprep.subr.bf16.mxu1 %v628_v1  ;;  %v631_v6 = vld [vmem:[%s756_s1 + $0x20] ss:$0 sps:$4 sm:$0xff]   ;;  %v637_v11 = vld [vmem:[%s757_s0 + $0x30] sm:$0xff]   ;;  %v638_v12 = vld [vmem:[%s757_s0 + $0x18] sm:$0xff]  }
   0x5   :  { %599 = vmatprep.mubr.msk.bf16.mxu0 %vm143_vm0, %v632_v3  ;;  %607 = vmatprep.mubr.msk.bf16.mxu1 %vm143_vm0, %v633_v4  ;;  %v170_v7 = vsel %vm168_vm1, %v631_v6, 0  ;;  %v639_v13 = vld [vmem:[%s757_s0 + $0x38] sm:$0xff]   ;;  %v710_v14 = vld [vmem:[%s758_s2] ss:$0 sm:$0xff] }
   0x7   :  { %592 = vmatpush3.bf16.msra.mxu0 %v628_v1  ;;  %621 = vmatpush3.bf16.msra.mxu1 %v628_v1 }
   0x8   :  { %593 = vmatprep.subr.bf16.mxu0 %v629_v2  ;;  %617 = vmatprep.subr.bf16.mxu1 %v629_v2 }
   0xb   :  { %594 = vmatpush3.bf16.msra.mxu0 %v629_v2  ;;  %622 = vmatpush3.bf16.msra.mxu1 %v629_v2 }
   0xc   :  { %595 = vmatprep.subr.bf16.mxu0 %v630_v5  ;;  %618 = vmatprep.subr.bf16.mxu1 %v630_v5 }
   0xf   :  { %596 = vmatpush3.bf16.msra.mxu0 %v630_v5  ;;  %623 = vmatpush3.bf16.msra.mxu1 %v630_v5 }
  0x10   :  { %625 = vmatprep.subr.msk.bf16.mxu0 %vm168_vm1, %v631_v6  ;;  %626 = vmatprep.subr.msk.bf16.mxu1 %vm168_vm1, %v631_v6 }
  0x13   :  { %598 = vmatpush3.bf16.msra.mxu0 %v170_v7  ;;  %624 = vmatpush3.bf16.msra.mxu1 %v170_v7 }
  0x16   :  { %600 = vmatmul.mubr.msk.bf16.vlgmr.msra.gmra.mrb[0].mxu0 %vm143_vm0, %v634_v8  ;;  %608 = vmatmul.mubr.msk.bf16.vlgmr.msra.gmra.mrb[0].mxu1 %vm143_vm0, %v635_v9 }
  0x17   :  { %603 = vmatprep.mubr.msk.bf16.mxu0 %vm143_vm0, %v636_v10  ;;  %611 = vmatprep.mubr.msk.bf16.mxu1 %vm143_vm0, %v637_v11 }
  0x1e   :  { %604 = vmatmul.mubr.msk.bf16.gmra.mrb[4].mxu0 %vm143_vm0, %v638_v12  ;;  %612 = vmatmul.mubr.msk.bf16.gmra.mrb[4].mxu1 %vm143_vm0, %v639_v13 }
  0xe9   :  { %v601_v15 = vpop.f32.mrb[0].mxu0  ;;  %v609_v16 = vpop.f32.mrb[0].mxu1 }
  0xea   :  { %v329_v17 = vadd.f32 %v601_v15, %v710_v14  ;;  %v337_v18 = vadd.f32 %v609_v16, %v710_v14  ;;  %v206_v19 = vpop.f32.mrb[1].mxu0  ;;  %v238_v20 = vpop.f32.mrb[1].mxu1 }
  0xeb   :  { %v327_v21 = vadd.f32 %v710_v14, %v206_v19  ;;  %v335_v22 = vadd.f32 %v710_v14, %v238_v20  ;;  %v602_v23 = vpop.f32.mrb[2].mxu0  ;;  %v610_v24 = vpop.f32.mrb[2].mxu1 }
  0xec   :  { %vm345_vm2 = vcmp.ge.f32.partialorder %v329_v17, 0.0  ;;  %v361_v25 = vmul.f32 0.01, %v329_v17  ;;  %vm353_vm3 = vcmp.ge.f32.partialorder %v337_v18, 0.0  ;;  %v369_v26 = vmul.f32 0.01, %v337_v18 }
  0xed   :  { %vm343_vm4 = vcmp.ge.f32.partialorder %v327_v21, 0.0  ;;  %v359_v27 = vmul.f32 0.01, %v327_v21  ;;  %vm351_vm5 = vcmp.ge.f32.partialorder %v335_v22, 0.0  ;;  %v367_v28 = vmul.f32 0.01, %v335_v22 }
  0xee   :  { %v330_v29 = vadd.f32 %v602_v23, %v710_v14  ;;  %v338_v30 = vadd.f32 %v610_v24, %v710_v14  ;;  %v209_v31 = vpop.f32.mrb[3].mxu0  ;;  %v241_v32 = vpop.f32.mrb[3].mxu1  ;;  %v377_v33 = vsel %vm345_vm2, %v329_v17, %v361_v25  ;;  %v385_v34 = vsel %vm353_vm3, %v337_v18, %v369_v26 }
  0xef   :  { %v328_v35 = vadd.f32 %v710_v14, %v209_v31  ;;  %v336_v36 = vadd.f32 %v710_v14, %v241_v32  ;;  %v375_v41 = vsel %vm343_vm4, %v327_v21, %v359_v27  ;;  %v383_v42 = vsel %vm351_vm5, %v335_v22, %v367_v28 }
  0xf0   :  { %vm346_vm6 = vcmp.ge.f32.partialorder %v330_v29, 0.0  ;;  %v362_v37 = vmul.f32 0.01, %v330_v29  ;;  %vm354_vm7 = vcmp.ge.f32.partialorder %v338_v30, 0.0  ;;  %v370_v38 = vmul.f32 0.01, %v338_v30 }
  0xf1   :  { %vm344_vm8 = vcmp.ge.f32.partialorder %v328_v35, 0.0  ;;  %v360_v39 = vmul.f32 0.01, %v328_v35  ;;  %vm352_vm9 = vcmp.ge.f32.partialorder %v336_v36, 0.0  ;;  %v368_v40 = vmul.f32 0.01, %v336_v36 }
  0xf2   :  { %v378_v43 = vsel %vm346_vm6, %v330_v29, %v362_v37  ;;  %v386_v44 = vsel %vm354_vm7, %v338_v30, %v370_v38  ;;  %v605_v45 = vpop.f32.mrb[4].mxu0  ;;  %v613_v46 = vpop.f32.mrb[4].mxu1 }
  0xf3   :  { %v537_v47 = vpack.c.bf16 %v378_v43, %v377_v33  ;;  %v557_v48 = vpack.c.bf16 %v386_v44, %v385_v34  ;;  %v376_v49 = vsel %vm344_vm8, %v328_v35, %v360_v39  ;;  %v384_v50 = vsel %vm352_vm9, %v336_v36, %v368_v40  ;;  %v222_v51 = vpop.f32.mrb[5].mxu0  ;;  %v254_v52 = vpop.f32.mrb[5].mxu1 }
  0xf4   :  { %v532_v53 = vpack.c.bf16 %v376_v49, %v375_v41  ;;  %v552_v54 = vpack.c.bf16 %v384_v50, %v383_v42  ;;  %v333_v55 = vadd.f32 %v605_v45, %v710_v14  ;;  %v341_v56 = vadd.f32 %v613_v46, %v710_v14  ;;  %v606_v57 = vpop.f32.mrb[6].mxu0  ;;  %v614_v58 = vpop.f32.mrb[6].mxu1 }
  0xf5   :  { %569 = vst [vmem:[%s759_s3 + $0x8] sm:$0xff] %v537_v47   ;;  %573 = vst [vmem:[%s759_s3 + $0x28] sm:$0xff] %v557_v48   ;;  %v331_v59 = vadd.f32 %v710_v14, %v222_v51  ;;  %v339_v60 = vadd.f32 %v710_v14, %v254_v52  ;;  %v334_v61 = vadd.f32 %v606_v57, %v710_v14  ;;  %v225_v63 = vpop.f32.mrb[7].mxu0  ;;  %v257_v0 = vpop.f32.mrb[7].mxu1 }
  0xf6   :  { %v342_v62 = vadd.f32 %v614_v58, %v710_v14  ;;  %533 = vst [vmem:[%s759_s3] sm:$0xff] %v532_v53   ;;  %572 = vst [vmem:[%s759_s3 + $0x20] sm:$0xff] %v552_v54   ;;  %v365_v1 = vmul.f32 0.01, %v333_v55  ;;  %vm349_vm10 = vcmp.ge.f32.partialorder %v333_v55, 0.0  ;;  %v373_v2 = vmul.f32 0.01, %v341_v56 }
  0xf7   :  { %vm357_vm11 = vcmp.ge.f32.partialorder %v341_v56, 0.0  ;;  %vm347_vm12 = vcmp.ge.f32.partialorder %v331_v59, 0.0  ;;  %vm350_vm13 = vcmp.ge.f32.partialorder %v334_v61, 0.0  ;;  %v366_v3 = vmul.f32 0.01, %v334_v61 }
  0xf8   :  { %v363_v4 = vmul.f32 0.01, %v331_v59  ;;  %vm355_vm14 = vcmp.ge.f32.partialorder %v339_v60, 0.0  ;;  %vm358_vm15 = vcmp.ge.f32.partialorder %v342_v62, 0.0  ;;  %v374_v5 = vmul.f32 0.01, %v342_v62 }
  0xf9   :  { %v381_v6 = vsel %vm349_vm10, %v333_v55, %v365_v1  ;;  %v382_v7 = vsel %vm350_vm13, %v334_v61, %v366_v3  ;;  %v332_v8 = vadd.f32 %v710_v14, %v225_v63  ;;  %v340_v9 = vadd.f32 %v710_v14, %v257_v0 }
  0xfa   :  { %v389_v10 = vsel %vm357_vm11, %v341_v56, %v373_v2  ;;  %v371_v11 = vmul.f32 0.01, %v339_v60  ;;  %v547_v12 = vpack.c.bf16 %v382_v7, %v381_v6  ;;  %v390_v13 = vsel %vm358_vm15, %v342_v62, %v374_v5 }
  0xfb   :  { %v567_v15 = vpack.c.bf16 %v390_v13, %v389_v10  ;;  %vm348_vm0 = vcmp.ge.f32.partialorder %v332_v8, 0.0  ;;  %v364_v16 = vmul.f32 0.01, %v332_v8  ;;  %vm356_vm1 = vcmp.ge.f32.partialorder %v340_v9, 0.0 }
  0xfc   :  { %571 = vst [vmem:[%s759_s3 + $0x18] sm:$0xff] %v547_v12   ;;  %v372_v17 = vmul.f32 0.01, %v340_v9  ;;  %v379_v18 = vsel %vm347_vm12, %v331_v59, %v363_v4  ;;  %v387_v19 = vsel %vm355_vm14, %v339_v60, %v371_v11 }
  0xfd   :  { %575 = vst [vmem:[%s759_s3 + $0x38] sm:$0xff] %v567_v15   ;;  %v380_v14 = vsel %vm348_vm0, %v332_v8, %v364_v16 }
  0xfe   :  { %v542_v20 = vpack.c.bf16 %v380_v14, %v379_v18  ;;  %v388_v21 = vsel %vm356_vm1, %v340_v9, %v372_v17 }
  0xff   :  { %v562_v22 = vpack.c.bf16 %v388_v21, %v387_v19 }
 0x100   :  { %570 = vst [vmem:[%s759_s3 + $0x10] sm:$0xff] %v542_v20  }
 0x101   :  { %574 = vst [vmem:[%s759_s3 + $0x30] sm:$0xff] %v562_v22  }

// kernel: _lambda_.27
= control target key start
LH: loop header
LB: loop body
LE: loop exit
PB: predicated region body
PF: predicated region fallthrough
CT: control target
= control target key end

     0   :  { %vm146_vm0 = vcmask 588800   ;;  %vm171_vm1 = vcmask 1043456   ;;  %s901_s1 = inlined_call_operand.vmem [shape: bf16[72,128], index: 1, kind: input, shape index: {}]   ;;  %s902_s0 = inlined_call_operand.vmem [shape: bf16[128,72], index: 0, kind: input, shape index: {}]   ;;  %s903_s3 = inlined_call_operand.vmem [shape: bf16[128,128], index: 3, kind: input, shape index: {}]   ;;  %s904_s2 = inlined_call_operand.vmem [shape: f32[1,128], index: 2, kind: input, shape index: {}]   ;;  %s905_s4 = inlined_call_operand.vmem [shape: bf16[128,128], index: 4, kind: output, shape index: {}]  }
   0x1   :  { %v717_v0 = vld [vmem:[%s901_s1] sm:$0xff]   ;;  %v718_v1 = vld [vmem:[%s901_s1 + $0x8] sm:$0xff]   ;;  %v719_v2 = vld [vmem:[%s901_s1 + $0x10] sm:$0xff]  }
   0x2   :  { %679 = vmatprep.subr.bf16.mxu0 %v717_v0  ;;  %705 = vmatprep.subr.bf16.mxu1 %v717_v0  ;;  %v722_v3 = vld [vmem:[%s902_s0] sm:$0xff]   ;;  %v720_v5 = vld [vmem:[%s901_s1 + $0x18] sm:$0xff]   ;;  %v724_v8 = vld [vmem:[%s902_s0 + $0x8] sm:$0xff]  }
   0x3   :  { %680 = vmatpush3.bf16.msra.mxu0 %v717_v0  ;;  %710 = vmatpush3.bf16.msra.mxu1 %v717_v0  ;;  %v723_v4 = vld [vmem:[%s902_s0 + $0x20] sm:$0xff]   ;;  %v725_v9 = vld [vmem:[%s902_s0 + $0x28] sm:$0xff]   ;;  %v726_v10 = vld [vmem:[%s902_s0 + $0x10] sm:$0xff]  }
   0x4   :  { %681 = vmatprep.subr.bf16.mxu0 %v718_v1  ;;  %706 = vmatprep.subr.bf16.mxu1 %v718_v1  ;;  %v721_v6 = vld [vmem:[%s901_s1 + $0x20] ss:$0 sps:$4 sm:$0xff]   ;;  %v727_v11 = vld [vmem:[%s902_s0 + $0x30] sm:$0xff]   ;;  %v728_v12 = vld [vmem:[%s902_s0 + $0x18] sm:$0xff]  }
   0x5   :  { %689 = vmatprep.mubr.msk.bf16.mxu0 %vm146_vm0, %v722_v3  ;;  %697 = vmatprep.mubr.msk.bf16.mxu1 %vm146_vm0, %v723_v4  ;;  %v173_v7 = vsel %vm171_vm1, %v721_v6, 0  ;;  %v729_v13 = vld [vmem:[%s902_s0 + $0x38] sm:$0xff]   ;;  %v652_v14 = vld [vmem:[%s903_s3 + $0x8] sm:$0xff]   ;;  %v581_v16 = vld [vmem:[%s903_s3] sm:$0xff]  }
   0x6   :  { %v656_v15 = vld [vmem:[%s903_s3 + $0x28] sm:$0xff]   ;;  %v655_v17 = vld [vmem:[%s903_s3 + $0x20] sm:$0xff]   ;;  %v817_v18 = vld [vmem:[%s903_s3 + $0x18] sm:$0xff]   ;;  %v586_v22 = vunpack.c.l.bf16 %v652_v14  ;;  %v582_v24 = vunpack.c.l.bf16 %v581_v16  ;;  %v587_v27 = vunpack.c.h.bf16 %v652_v14  ;;  %v583_v29 = vunpack.c.h.bf16 %v581_v16 }
   0x7   :  { %682 = vmatpush3.bf16.msra.mxu0 %v718_v1  ;;  %711 = vmatpush3.bf16.msra.mxu1 %v718_v1  ;;  %v822_v19 = vld [vmem:[%s903_s3 + $0x38] sm:$0xff]   ;;  %v827_v20 = vld [vmem:[%s903_s3 + $0x10] sm:$0xff]   ;;  %v832_v21 = vld [vmem:[%s904_s2] ss:$0 sm:$0xff]  ;;  %v602_v23 = vunpack.c.l.bf16 %v656_v15  ;;  %v598_v26 = vunpack.c.l.bf16 %v655_v17  ;;  %v603_v28 = vunpack.c.h.bf16 %v656_v15  ;;  %v599_v32 = vunpack.c.h.bf16 %v655_v17 }
   0x8   :  { %683 = vmatprep.subr.bf16.mxu0 %v719_v2  ;;  %707 = vmatprep.subr.bf16.mxu1 %v719_v2  ;;  %v837_v25 = vld [vmem:[%s903_s3 + $0x30] sm:$0xff]   ;;  %v594_v33 = vunpack.c.l.bf16 %v817_v18  ;;  %v610_v34 = vunpack.c.l.bf16 %v822_v19  ;;  %v590_v35 = vunpack.c.l.bf16 %v827_v20  ;;  %v595_v41 = vunpack.c.h.bf16 %v817_v18 }
   0x9   :  { %v606_v40 = vunpack.c.l.bf16 %v837_v25  ;;  %v611_v46 = vunpack.c.h.bf16 %v822_v19  ;;  %v591_v47 = vunpack.c.h.bf16 %v827_v20 }
   0xb   :  { %684 = vmatpush3.bf16.msra.mxu0 %v719_v2  ;;  %712 = vmatpush3.bf16.msra.mxu1 %v719_v2 }
   0xc   :  { %685 = vmatprep.subr.bf16.mxu0 %v720_v5  ;;  %708 = vmatprep.subr.bf16.mxu1 %v720_v5 }
   0xf   :  { %686 = vmatpush3.bf16.msra.mxu0 %v720_v5  ;;  %713 = vmatpush3.bf16.msra.mxu1 %v720_v5 }
  0x10   :  { %715 = vmatprep.subr.msk.bf16.mxu0 %vm171_vm1, %v721_v6  ;;  %716 = vmatprep.subr.msk.bf16.mxu1 %vm171_vm1, %v721_v6 }
  0x13   :  { %688 = vmatpush3.bf16.msra.mxu0 %v173_v7  ;;  %714 = vmatpush3.bf16.msra.mxu1 %v173_v7 }
  0x16   :  { %690 = vmatmul.mubr.msk.bf16.vlgmr.msra.gmra.mrb[0].mxu0 %vm146_vm0, %v724_v8  ;;  %698 = vmatmul.mubr.msk.bf16.vlgmr.msra.gmra.mrb[0].mxu1 %vm146_vm0, %v725_v9 }
  0x17   :  { %693 = vmatprep.mubr.msk.bf16.mxu0 %vm146_vm0, %v726_v10  ;;  %701 = vmatprep.mubr.msk.bf16.mxu1 %vm146_vm0, %v727_v11 }
  0x1e   :  { %694 = vmatmul.mubr.msk.bf16.gmra.mrb[4].mxu0 %vm146_vm0, %v728_v12  ;;  %702 = vmatmul.mubr.msk.bf16.gmra.mrb[4].mxu1 %vm146_vm0, %v729_v13 }
  0xe9   :  { %v691_v30 = vpop.f32.mrb[0].mxu0  ;;  %v699_v31 = vpop.f32.mrb[0].mxu1 }
  0xea   :  { %v332_v36 = vadd.f32 %v691_v30, %v832_v21  ;;  %v340_v37 = vadd.f32 %v699_v31, %v832_v21  ;;  %v209_v38 = vpop.f32.mrb[1].mxu0  ;;  %v241_v39 = vpop.f32.mrb[1].mxu1 }
  0xeb   :  { %v330_v42 = vadd.f32 %v832_v21, %v209_v38  ;;  %v338_v43 = vadd.f32 %v832_v21, %v241_v39  ;;  %v692_v44 = vpop.f32.mrb[2].mxu0  ;;  %v700_v45 = vpop.f32.mrb[2].mxu1 }
  0xec   :  { %v380_v48 = vadd.f32 %v586_v22, %v332_v36  ;;  %v388_v49 = vadd.f32 %v602_v23, %v340_v37  ;;  %v333_v50 = vadd.f32 %v692_v44, %v832_v21  ;;  %v341_v51 = vadd.f32 %v700_v45, %v832_v21  ;;  %v212_v52 = vpop.f32.mrb[3].mxu0  ;;  %v244_v53 = vpop.f32.mrb[3].mxu1 }
  0xed   :  { %v378_v54 = vadd.f32 %v582_v24, %v330_v42  ;;  %v386_v55 = vadd.f32 %v598_v26, %v338_v43  ;;  %v331_v56 = vadd.f32 %v832_v21, %v212_v52  ;;  %v339_v57 = vadd.f32 %v832_v21, %v244_v53 }
  0xee   :  { %vm396_vm2 = vcmp.ge.f32.partialorder %v380_v48, 0.0  ;;  %v412_v58 = vmul.f32 0.01, %v380_v48  ;;  %vm404_vm3 = vcmp.ge.f32.partialorder %v388_v49, 0.0  ;;  %v420_v59 = vmul.f32 0.01, %v388_v49 }
  0xef   :  { %vm394_vm4 = vcmp.ge.f32.partialorder %v378_v54, 0.0  ;;  %v410_v60 = vmul.f32 0.01, %v378_v54  ;;  %vm402_vm5 = vcmp.ge.f32.partialorder %v386_v55, 0.0  ;;  %v418_v61 = vmul.f32 0.01, %v386_v55 }
  0xf0   :  { %v428_v62 = vsel %vm396_vm2, %v380_v48, %v412_v58  ;;  %v436_v63 = vsel %vm404_vm3, %v388_v49, %v420_v59  ;;  %v381_v0 = vadd.f32 %v587_v27, %v333_v50  ;;  %v389_v1 = vadd.f32 %v603_v28, %v341_v51 }
  0xf1   :  { %v426_v2 = vsel %vm394_vm4, %v378_v54, %v410_v60  ;;  %v434_v3 = vsel %vm402_vm5, %v386_v55, %v418_v61  ;;  %v379_v4 = vadd.f32 %v583_v29, %v331_v56  ;;  %v387_v5 = vadd.f32 %v599_v32, %v339_v57  ;;  %v695_v6 = vpop.f32.mrb[4].mxu0  ;;  %v703_v7 = vpop.f32.mrb[4].mxu1 }
  0xf2   :  { %vm397_vm6 = vcmp.ge.f32.partialorder %v381_v0, 0.0  ;;  %v413_v8 = vmul.f32 0.01, %v381_v0  ;;  %vm405_vm7 = vcmp.ge.f32.partialorder %v389_v1, 0.0  ;;  %v421_v9 = vmul.f32 0.01, %v389_v1 }
  0xf3   :  { %vm395_vm8 = vcmp.ge.f32.partialorder %v379_v4, 0.0  ;;  %v411_v10 = vmul.f32 0.01, %v379_v4  ;;  %vm403_vm9 = vcmp.ge.f32.partialorder %v387_v5, 0.0  ;;  %v419_v11 = vmul.f32 0.01, %v387_v5 }
  0xf4   :  { %v429_v12 = vsel %vm397_vm6, %v381_v0, %v413_v8  ;;  %v437_v13 = vsel %vm405_vm7, %v389_v1, %v421_v9  ;;  %v336_v14 = vadd.f32 %v695_v6, %v832_v21  ;;  %v344_v15 = vadd.f32 %v703_v7, %v832_v21  ;;  %v225_v16 = vpop.f32.mrb[5].mxu0  ;;  %v257_v17 = vpop.f32.mrb[5].mxu1 }
  0xf5   :  { %v620_v22 = vpack.c.bf16 %v429_v12, %v428_v62  ;;  %v640_v23 = vpack.c.bf16 %v437_v13, %v436_v63  ;;  %v427_v24 = vsel %vm395_vm8, %v379_v4, %v411_v10  ;;  %v435_v26 = vsel %vm403_vm9, %v387_v5, %v419_v11  ;;  %v696_v27 = vpop.f32.mrb[6].mxu0  ;;  %v704_v28 = vpop.f32.mrb[6].mxu1 }
  0xf6   :  { %v615_v29 = vpack.c.bf16 %v427_v24, %v426_v2  ;;  %v635_v30 = vpack.c.bf16 %v435_v26, %v434_v3  ;;  %v384_v31 = vadd.f32 %v594_v33, %v336_v14  ;;  %v392_v32 = vadd.f32 %v610_v34, %v344_v15  ;;  %v228_v36 = vpop.f32.mrb[7].mxu0  ;;  %v260_v37 = vpop.f32.mrb[7].mxu1 }
  0xf7   :  { %659 = vst [vmem:[%s905_s4 + $0x8] sm:$0xff] %v620_v22   ;;  %663 = vst [vmem:[%s905_s4 + $0x28] sm:$0xff] %v640_v23   ;;  %v334_v38 = vadd.f32 %v832_v21, %v225_v16  ;;  %v342_v39 = vadd.f32 %v832_v21, %v257_v17  ;;  %v337_v42 = vadd.f32 %v696_v27, %v832_v21  ;;  %v607_v49 = vunpack.c.h.bf16 %v837_v25 }
  0xf8   :  { %v345_v33 = vadd.f32 %v704_v28, %v832_v21  ;;  %616 = vst [vmem:[%s905_s4] sm:$0xff] %v615_v29   ;;  %662 = vst [vmem:[%s905_s4 + $0x20] sm:$0xff] %v635_v30   ;;  %vm400_vm10 = vcmp.ge.f32.partialorder %v384_v31, 0.0  ;;  %v416_v34 = vmul.f32 0.01, %v384_v31  ;;  %vm408_vm11 = vcmp.ge.f32.partialorder %v392_v32, 0.0 }
  0xf9   :  { %v424_v43 = vmul.f32 0.01, %v392_v32  ;;  %v382_v44 = vadd.f32 %v590_v35, %v334_v38  ;;  %v385_v45 = vadd.f32 %v595_v41, %v337_v42  ;;  %v390_v50 = vadd.f32 %v606_v40, %v342_v39 }
  0xfa   :  { %v393_v48 = vadd.f32 %v611_v46, %v345_v33  ;;  %v335_v51 = vadd.f32 %v832_v21, %v228_v36  ;;  %v343_v52 = vadd.f32 %v832_v21, %v260_v37  ;;  %v432_v53 = vsel %vm400_vm10, %v384_v31, %v416_v34 }
  0xfb   :  { %v440_v54 = vsel %vm408_vm11, %v392_v32, %v424_v43  ;;  %vm401_vm12 = vcmp.ge.f32.partialorder %v385_v45, 0.0  ;;  %v417_v55 = vmul.f32 0.01, %v385_v45  ;;  %vm398_vm14 = vcmp.ge.f32.partialorder %v382_v44, 0.0 }
  0xfc   :  { %vm409_vm13 = vcmp.ge.f32.partialorder %v393_v48, 0.0  ;;  %v425_v35 = vmul.f32 0.01, %v393_v48  ;;  %v414_v18 = vmul.f32 0.01, %v382_v44  ;;  %v383_v19 = vadd.f32 %v591_v47, %v335_v51 }
  0xfd   :  { %v391_v41 = vadd.f32 %v607_v49, %v343_v52  ;;  %vm406_vm15 = vcmp.ge.f32.partialorder %v390_v50, 0.0  ;;  %v422_v46 = vmul.f32 0.01, %v390_v50  ;;  %v433_v25 = vsel %vm401_vm12, %v385_v45, %v417_v55 }
  0xfe   :  { %v441_v40 = vsel %vm409_vm13, %v393_v48, %v425_v35  ;;  %v630_v56 = vpack.c.bf16 %v433_v25, %v432_v53  ;;  %vm399_vm0 = vcmp.ge.f32.partialorder %v383_v19, 0.0  ;;  %v415_v21 = vmul.f32 0.01, %v383_v19 }
  0xff   :  { %v650_v57 = vpack.c.bf16 %v441_v40, %v440_v54  ;;  %vm407_vm1 = vcmp.ge.f32.partialorder %v391_v41, 0.0  ;;  %v423_v58 = vmul.f32 0.01, %v391_v41  ;;  %v430_v59 = vsel %vm398_vm14, %v382_v44, %v414_v18 }
 0x100   :  { %661 = vst [vmem:[%s905_s4 + $0x18] sm:$0xff] %v630_v56   ;;  %v431_v20 = vsel %vm399_vm0, %v383_v19, %v415_v21  ;;  %v438_v47 = vsel %vm406_vm15, %v390_v50, %v422_v46 }
 0x101   :  { %665 = vst [vmem:[%s905_s4 + $0x38] sm:$0xff] %v650_v57   ;;  %v625_v60 = vpack.c.bf16 %v431_v20, %v430_v59  ;;  %v439_v61 = vsel %vm407_vm1, %v391_v41, %v423_v58 }
 0x102   :  { %v645_v62 = vpack.c.bf16 %v439_v61, %v438_v47 }
 0x103   :  { %660 = vst [vmem:[%s905_s4 + $0x10] sm:$0xff] %v625_v60  }
 0x104   :  { %664 = vst [vmem:[%s905_s4 + $0x30] sm:$0xff] %v645_v62  }

// kernel: _lambda_.30
= control target key start
LH: loop header
LB: loop body
LE: loop exit
PB: predicated region body
PF: predicated region fallthrough
CT: control target
= control target key end

     0   :  { %vm115_vm0 = vcmask 130048   ;;  %s682_s1 = inlined_call_operand.vmem [shape: bf16[16,128], index: 1, kind: input, shape index: {}]   ;;  %s683_s0 = inlined_call_operand.vmem [shape: bf16[128,16], index: 0, kind: input, shape index: {}]   ;;  %s684_s2 = inlined_call_operand.vmem [shape: f32[1,128], index: 2, kind: input, shape index: {}]   ;;  %s685_s3 = inlined_call_operand.vmem [shape: bf16[128,128], index: 3, kind: output, shape index: {}]  }
   0x1   :  { %v569_v0 = vld [vmem:[%s682_s1] sm:$0xff]   ;;  %v572_v3 = vld [vmem:[%s683_s0 + $0x8] sm:$0xff]   ;;  %v574_v5 = vld [vmem:[%s683_s0 + $0x10] sm:$0xff]  }
   0x2   :  { %v570_v1 = vld [vmem:[%s683_s0] sm:$0xff]   ;;  %549 = vmatprep.subr.bf16.mxu0 %v569_v0  ;;  %567 = vmatprep.subr.bf16.mxu1 %v569_v0  ;;  %v573_v4 = vld [vmem:[%s683_s0 + $0x28] sm:$0xff]   ;;  %v575_v6 = vld [vmem:[%s683_s0 + $0x30] sm:$0xff]  }
   0x3   :  { %v571_v2 = vld [vmem:[%s683_s0 + $0x20] sm:$0xff]   ;;  %550 = vmatpush3.bf16.msra.mxu0 %v569_v0  ;;  %568 = vmatpush3.bf16.msra.mxu1 %v569_v0  ;;  %v576_v7 = vld [vmem:[%s683_s0 + $0x18] sm:$0xff]  }
   0x4   :  { %551 = vmatprep.mubr.msk.bf16.mxu0 %vm115_vm0, %v570_v1  ;;  %559 = vmatprep.mubr.msk.bf16.mxu1 %vm115_vm0, %v571_v2  ;;  %v577_v8 = vld [vmem:[%s683_s0 + $0x38] sm:$0xff]   ;;  %v636_v9 = vld [vmem:[%s684_s2] ss:$0 sm:$0xff] }
   0x6   :  { %552 = vmatmul.mubr.msk.bf16.vlgmr.msra.gmra.mrb[0].mxu0 %vm115_vm0, %v572_v3  ;;  %560 = vmatmul.mubr.msk.bf16.vlgmr.msra.gmra.mrb[0].mxu1 %vm115_vm0, %v573_v4 }
   0x7   :  { %555 = vmatprep.mubr.msk.bf16.mxu0 %vm115_vm0, %v574_v5  ;;  %563 = vmatprep.mubr.msk.bf16.mxu1 %vm115_vm0, %v575_v6 }
   0xe   :  { %556 = vmatmul.mubr.msk.bf16.gmra.mrb[4].mxu0 %vm115_vm0, %v576_v7  ;;  %564 = vmatmul.mubr.msk.bf16.gmra.mrb[4].mxu1 %vm115_vm0, %v577_v8 }
  0xd9   :  { %v553_v10 = vpop.f32.mrb[0].mxu0  ;;  %v561_v11 = vpop.f32.mrb[0].mxu1 }
  0xda   :  { %v297_v12 = vadd.f32 %v553_v10, %v636_v9  ;;  %v305_v13 = vadd.f32 %v561_v11, %v636_v9  ;;  %v174_v14 = vpop.f32.mrb[1].mxu0  ;;  %v206_v15 = vpop.f32.mrb[1].mxu1 }
  0xdb   :  { %v295_v16 = vadd.f32 %v636_v9, %v174_v14  ;;  %v303_v17 = vadd.f32 %v636_v9, %v206_v15  ;;  %v554_v18 = vpop.f32.mrb[2].mxu0  ;;  %v562_v19 = vpop.f32.mrb[2].mxu1 }
  0xdc   :  { %vm313_vm1 = vcmp.ge.f32.partialorder %v297_v12, 0.0  ;;  %v329_v20 = vmul.f32 0.01, %v297_v12  ;;  %vm321_vm2 = vcmp.ge.f32.partialorder %v305_v13, 0.0  ;;  %v337_v21 = vmul.f32 0.01, %v305_v13 }
  0xdd   :  { %vm311_vm3 = vcmp.ge.f32.partialorder %v295_v16, 0.0  ;;  %v327_v22 = vmul.f32 0.01, %v295_v16  ;;  %vm319_vm4 = vcmp.ge.f32.partialorder %v303_v17, 0.0  ;;  %v335_v23 = vmul.f32 0.01, %v303_v17 }
  0xde   :  { %v298_v24 = vadd.f32 %v554_v18, %v636_v9  ;;  %v306_v25 = vadd.f32 %v562_v19, %v636_v9  ;;  %v177_v26 = vpop.f32.mrb[3].mxu0  ;;  %v209_v27 = vpop.f32.mrb[3].mxu1  ;;  %v345_v28 = vsel %vm313_vm1, %v297_v12, %v329_v20  ;;  %v353_v29 = vsel %vm321_vm2, %v305_v13, %v337_v21 }
  0xdf   :  { %v296_v30 = vadd.f32 %v636_v9, %v177_v26  ;;  %v304_v31 = vadd.f32 %v636_v9, %v209_v27  ;;  %v343_v36 = vsel %vm311_vm3, %v295_v16, %v327_v22  ;;  %v351_v37 = vsel %vm319_vm4, %v303_v17, %v335_v23 }
  0xe0   :  { %vm314_vm5 = vcmp.ge.f32.partialorder %v298_v24, 0.0  ;;  %v330_v32 = vmul.f32 0.01, %v298_v24  ;;  %vm322_vm6 = vcmp.ge.f32.partialorder %v306_v25, 0.0  ;;  %v338_v33 = vmul.f32 0.01, %v306_v25 }
  0xe1   :  { %vm312_vm7 = vcmp.ge.f32.partialorder %v296_v30, 0.0  ;;  %v328_v34 = vmul.f32 0.01, %v296_v30  ;;  %vm320_vm8 = vcmp.ge.f32.partialorder %v304_v31, 0.0  ;;  %v336_v35 = vmul.f32 0.01, %v304_v31 }
  0xe2   :  { %v346_v38 = vsel %vm314_vm5, %v298_v24, %v330_v32  ;;  %v354_v39 = vsel %vm322_vm6, %v306_v25, %v338_v33  ;;  %v557_v40 = vpop.f32.mrb[4].mxu0  ;;  %v565_v41 = vpop.f32.mrb[4].mxu1 }
  0xe3   :  { %v501_v42 = vpack.c.bf16 %v346_v38, %v345_v28  ;;  %v521_v43 = vpack.c.bf16 %v354_v39, %v353_v29  ;;  %v344_v44 = vsel %vm312_vm7, %v296_v30, %v328_v34  ;;  %v352_v45 = vsel %vm320_vm8, %v304_v31, %v336_v35  ;;  %v190_v46 = vpop.f32.mrb[5].mxu0  ;;  %v222_v47 = vpop.f32.mrb[5].mxu1 }
  0xe4   :  { %v496_v48 = vpack.c.bf16 %v344_v44, %v343_v36  ;;  %v516_v49 = vpack.c.bf16 %v352_v45, %v351_v37  ;;  %v301_v50 = vadd.f32 %v557_v40, %v636_v9  ;;  %v309_v51 = vadd.f32 %v565_v41, %v636_v9  ;;  %v558_v52 = vpop.f32.mrb[6].mxu0  ;;  %v566_v53 = vpop.f32.mrb[6].mxu1 }
  0xe5   :  { %533 = vst [vmem:[%s685_s3 + $0x8] sm:$0xff] %v501_v42   ;;  %537 = vst [vmem:[%s685_s3 + $0x28] sm:$0xff] %v521_v43   ;;  %v299_v54 = vadd.f32 %v636_v9, %v190_v46  ;;  %v307_v55 = vadd.f32 %v636_v9, %v222_v47  ;;  %v302_v56 = vadd.f32 %v558_v52, %v636_v9  ;;  %v193_v58 = vpop.f32.mrb[7].mxu0  ;;  %v225_v59 = vpop.f32.mrb[7].mxu1 }
  0xe6   :  { %v310_v57 = vadd.f32 %v566_v53, %v636_v9  ;;  %497 = vst [vmem:[%s685_s3] sm:$0xff] %v496_v48   ;;  %536 = vst [vmem:[%s685_s3 + $0x20] sm:$0xff] %v516_v49   ;;  %v333_v60 = vmul.f32 0.01, %v301_v50  ;;  %vm317_vm9 = vcmp.ge.f32.partialorder %v301_v50, 0.0  ;;  %v341_v61 = vmul.f32 0.01, %v309_v51 }
  0xe7   :  { %vm325_vm10 = vcmp.ge.f32.partialorder %v309_v51, 0.0  ;;  %vm315_vm11 = vcmp.ge.f32.partialorder %v299_v54, 0.0  ;;  %vm318_vm12 = vcmp.ge.f32.partialorder %v302_v56, 0.0  ;;  %v334_v62 = vmul.f32 0.01, %v302_v56 }
  0xe8   :  { %v331_v63 = vmul.f32 0.01, %v299_v54  ;;  %vm323_vm13 = vcmp.ge.f32.partialorder %v307_v55, 0.0  ;;  %vm326_vm14 = vcmp.ge.f32.partialorder %v310_v57, 0.0  ;;  %v342_v0 = vmul.f32 0.01, %v310_v57 }
  0xe9   :  { %v349_v1 = vsel %vm317_vm9, %v301_v50, %v333_v60  ;;  %v350_v2 = vsel %vm318_vm12, %v302_v56, %v334_v62  ;;  %v300_v3 = vadd.f32 %v636_v9, %v193_v58  ;;  %v308_v4 = vadd.f32 %v636_v9, %v225_v59 }
  0xea   :  { %v357_v5 = vsel %vm325_vm10, %v309_v51, %v341_v61  ;;  %v339_v6 = vmul.f32 0.01, %v307_v55  ;;  %v511_v7 = vpack.c.bf16 %v350_v2, %v349_v1  ;;  %v358_v8 = vsel %vm326_vm14, %v310_v57, %v342_v0 }
  0xeb   :  { %v531_v10 = vpack.c.bf16 %v358_v8, %v357_v5  ;;  %vm316_vm15 = vcmp.ge.f32.partialorder %v300_v3, 0.0  ;;  %v332_v11 = vmul.f32 0.01, %v300_v3  ;;  %vm324_vm0 = vcmp.ge.f32.partialorder %v308_v4, 0.0 }
  0xec   :  { %535 = vst [vmem:[%s685_s3 + $0x18] sm:$0xff] %v511_v7   ;;  %v340_v12 = vmul.f32 0.01, %v308_v4  ;;  %v347_v13 = vsel %vm315_vm11, %v299_v54, %v331_v63  ;;  %v355_v14 = vsel %vm323_vm13, %v307_v55, %v339_v6 }
  0xed   :  { %539 = vst [vmem:[%s685_s3 + $0x38] sm:$0xff] %v531_v10   ;;  %v348_v9 = vsel %vm316_vm15, %v300_v3, %v332_v11 }
  0xee   :  { %v506_v15 = vpack.c.bf16 %v348_v9, %v347_v13  ;;  %v356_v16 = vsel %vm324_vm0, %v308_v4, %v340_v12 }
  0xef   :  { %v526_v17 = vpack.c.bf16 %v356_v16, %v355_v14 }
  0xf0   :  { %534 = vst [vmem:[%s685_s3 + $0x10] sm:$0xff] %v506_v15  }
  0xf1   :  { %538 = vst [vmem:[%s685_s3 + $0x30] sm:$0xff] %v526_v17  }

// kernel: _lambda_.31
= control target key start
LH: loop header
LB: loop body
LE: loop exit
PB: predicated region body
PF: predicated region fallthrough
CT: control target
= control target key end

     0   :  { %vm49_vm0 = vcmask 1043456   ;;  %vm42_vm1 = vcmask 64512   ;;  %s226_s1 = inlined_call_operand.vmem [shape: bf16[8,128], index: 1, kind: input, shape index: {}]   ;;  %s227_s0 = inlined_call_operand.vmem [shape: bf16[32,8], index: 0, kind: input, shape index: {}]   ;;  %s228_s2 = inlined_call_operand.vmem [shape: f32[1,128], index: 2, kind: input, shape index: {}]   ;;  %s229_s3 = inlined_call_operand.vmem [shape: bf16[32,128], index: 3, kind: output, shape index: {}]  }
   0x1   :  { %v31_v0 = vld [vmem:[%s226_s1] sm:$0xf]  ;;  %v187_v3 = vld [vmem:[%s227_s0 + $0x8] sm:$0xff]  }
   0x2   :  { %185 = vmatprep.subr.msk.bf16.mxu0 %vm49_vm0, %v31_v0  ;;  %v51_v1 = vsel %vm49_vm0, %v31_v0, 0  ;;  %v186_v2 = vld [vmem:[%s227_s0] sm:$0xff]  }
   0x3   :  { %180 = vmatpush3.bf16.msra.mxu0 %v51_v1  ;;  %181 = vmatprep.mubr.msk.bf16.mxu0 %vm42_vm1, %v186_v2  ;;  %v156_v5 = vld [vmem:[%s228_s2] ss:$0 sm:$0xff] }
   0x6   :  { %182 = vmatmul.mubr.msk.bf16.vlgmr.msra.gmra.mrb[0].mxu0 %vm42_vm1, %v187_v3 }
  0xd9   :  { %v183_v4 = vpop.f32.mrb[0].mxu0 }
  0xda   :  { %v87_v6 = vpop.f32.mrb[1].mxu0  ;;  %v126_v8 = vadd.f32 %v183_v4, %v156_v5 }
  0xdb   :  { %v184_v7 = vpop.f32.mrb[2].mxu0  ;;  %v124_v11 = vadd.f32 %v156_v5, %v87_v6 }
  0xdc   :  { %v127_v9 = vadd.f32 %v184_v7, %v156_v5  ;;  %v90_v10 = vpop.f32.mrb[3].mxu0 }
  0xdd   :  { %v125_v12 = vadd.f32 %v156_v5, %v90_v10 }
  0xde   :  { %v173_v13 = vpack.c.bf16 %v127_v9, %v126_v8 }
  0xdf   :  { %v168_v14 = vpack.c.bf16 %v125_v12, %v124_v11 }
  0xe0   :  { %175 = vst [vmem:[%s229_s3 + $0x8] sm:$0xff] %v173_v13  }
  0xe1   :  { %169 = vst [vmem:[%s229_s3] sm:$0xff] %v168_v14  }

// kernel: _lambda_.32
= control target key start
LH: loop header
LB: loop body
LE: loop exit
PB: predicated region body
PF: predicated region fallthrough
CT: control target
= control target key end

     0   :  { %vm77_vm0 = vcmask 588800   ;;  %vm84_vm1 = vcmask 1043456   ;;  %s307_s1 = inlined_call_operand.vmem [shape: bf16[72,128], index: 1, kind: input, shape index: {}]   ;;  %s308_s0 = inlined_call_operand.vmem [shape: bf16[32,72], index: 0, kind: input, shape index: {}]   ;;  %s309_s2 = inlined_call_operand.vmem [shape: f32[1,128], index: 2, kind: input, shape index: {}]   ;;  %s310_s3 = inlined_call_operand.vmem [shape: bf16[32,128], index: 3, kind: output, shape index: {}]  }
   0x1   :  { %v250_v0 = vld [vmem:[%s307_s1] sm:$0xff]   ;;  %v251_v1 = vld [vmem:[%s307_s1 + $0x8] sm:$0xff]   ;;  %v252_v2 = vld [vmem:[%s307_s1 + $0x10] sm:$0xff]  }
   0x2   :  { %235 = vmatprep.subr.bf16.mxu0 %v250_v0  ;;  %v255_v3 = vld [vmem:[%s308_s0] sm:$0xff]   ;;  %v253_v4 = vld [vmem:[%s307_s1 + $0x18] sm:$0xff]   ;;  %v256_v7 = vld [vmem:[%s308_s0 + $0x8] sm:$0xff]  }
   0x3   :  { %236 = vmatpush3.bf16.msra.mxu0 %v250_v0  ;;  %245 = vmatprep.mubr.msk.bf16.mxu0 %vm77_vm0, %v255_v3  ;;  %v254_v5 = vld [vmem:[%s307_s1 + $0x20] ss:$0 sps:$4 sm:$0xff]  }
   0x4   :  { %237 = vmatprep.subr.bf16.mxu0 %v251_v1  ;;  %v86_v6 = vsel %vm84_vm1, %v254_v5, 0  ;;  %v208_v8 = vld [vmem:[%s309_s2] ss:$0 sm:$0xff] }
   0x7   :  { %238 = vmatpush3.bf16.msra.mxu0 %v251_v1 }
   0x8   :  { %239 = vmatprep.subr.bf16.mxu0 %v252_v2 }
   0xb   :  { %240 = vmatpush3.bf16.msra.mxu0 %v252_v2 }
   0xc   :  { %241 = vmatprep.subr.bf16.mxu0 %v253_v4 }
   0xf   :  { %242 = vmatpush3.bf16.msra.mxu0 %v253_v4 }
  0x10   :  { %249 = vmatprep.subr.msk.bf16.mxu0 %vm84_vm1, %v254_v5 }
  0x13   :  { %244 = vmatpush3.bf16.msra.mxu0 %v86_v6 }
  0x16   :  { %246 = vmatmul.mubr.msk.bf16.vlgmr.msra.gmra.mrb[0].mxu0 %vm77_vm0, %v256_v7 }
  0xe9   :  { %v247_v9 = vpop.f32.mrb[0].mxu0 }
  0xea   :  { %v161_v10 = vadd.f32 %v247_v9, %v208_v8  ;;  %v122_v11 = vpop.f32.mrb[1].mxu0 }
  0xeb   :  { %v159_v12 = vadd.f32 %v208_v8, %v122_v11  ;;  %v248_v13 = vpop.f32.mrb[2].mxu0 }
  0xec   :  { %v169_v14 = vmul.f32 0.01, %v161_v10  ;;  %v162_v15 = vadd.f32 %v248_v13, %v208_v8  ;;  %v125_v16 = vpop.f32.mrb[3].mxu0  ;;  %vm165_vm2 = vcmp.ge.f32.partialorder %v161_v10, 0.0 }
  0xed   :  { %v167_v17 = vmul.f32 0.01, %v159_v12  ;;  %v160_v18 = vadd.f32 %v208_v8, %v125_v16  ;;  %vm163_vm3 = vcmp.ge.f32.partialorder %v159_v12, 0.0 }
  0xee   :  { %vm166_vm4 = vcmp.ge.f32.partialorder %v162_v15, 0.0  ;;  %v170_v19 = vmul.f32 0.01, %v162_v15  ;;  %v173_v21 = vsel %vm165_vm2, %v161_v10, %v169_v14 }
  0xef   :  { %vm164_vm5 = vcmp.ge.f32.partialorder %v160_v18, 0.0  ;;  %v168_v20 = vmul.f32 0.01, %v160_v18  ;;  %v171_v23 = vsel %vm163_vm3, %v159_v12, %v167_v17 }
  0xf0   :  { %v174_v22 = vsel %vm166_vm4, %v162_v15, %v170_v19 }
  0xf1   :  { %v225_v24 = vpack.c.bf16 %v174_v22, %v173_v21  ;;  %v172_v25 = vsel %vm164_vm5, %v160_v18, %v168_v20 }
  0xf2   :  { %v220_v26 = vpack.c.bf16 %v172_v25, %v171_v23 }
  0xf3   :  { %227 = vst [vmem:[%s310_s3 + $0x8] sm:$0xff] %v225_v24  }
  0xf4   :  { %221 = vst [vmem:[%s310_s3] sm:$0xff] %v220_v26  }

// kernel: _lambda_.34
= control target key start
LH: loop header
LB: loop body
LE: loop exit
PB: predicated region body
PF: predicated region fallthrough
CT: control target
= control target key end

     0   :  { %v308_v0 = vmov 0   ;;  %vm121_vm0 = vcmask 130048   ;;  %s377_s1 = inlined_call_operand.vmem [shape: bf16[144,128], index: 1, kind: input, shape index: {}]   ;;  %s378_s0 = inlined_call_operand.vmem [shape: bf16[32,144], index: 0, kind: input, shape index: {}]   ;;  %s379_s2 = inlined_call_operand.vmem [shape: f32[1,128], index: 2, kind: input, shape index: {}]   ;;  %s380_s3 = inlined_call_operand.vmem [shape: bf16[32,128], index: 3, kind: output, shape index: {}]  }
   0x1   :  { %128 = vmatprep.subr.bf16.mxu0 %v308_v0  ;;  %274 = vmatprep.subr.bf16.mxu1 %v308_v0  ;;  %v293_v1 = vld [vmem:[%s377_s1] sm:$0xff]   ;;  %v294_v2 = vld [vmem:[%s377_s1 + $0x8] sm:$0xff]   ;;  %v295_v3 = vld [vmem:[%s377_s1 + $0x10] sm:$0xff]  }
   0x2   :  { %129 = vmatpush1.bf16.msra.mxu0 %v293_v1  ;;  %283 = vmatpush1.bf16.msra.mxu1 %v293_v1  ;;  %v296_v4 = vld [vmem:[%s377_s1 + $0x18] sm:$0xff]   ;;  %v304_v5 = vld [vmem:[%s378_s0 + $0x4] ss:$8 sps:$4 sm:$0xff]   ;;  %v299_v9 = vld [vmem:[%s377_s1 + $0x30] sm:$0xff]  }
   0x3   :  { %130 = vmatprep.subr.bf16.mxu0 %v308_v0  ;;  %275 = vmatprep.subr.bf16.mxu1 %v308_v0  ;;  %v307_v6 = vld [vmem:[%s378_s0 + $0x14] ss:$8 sps:$4 sm:$0xff]   ;;  %v297_v7 = vld [vmem:[%s377_s1 + $0x20] sm:$0xff]   ;;  %v298_v8 = vld [vmem:[%s377_s1 + $0x28] sm:$0xff]  }
   0x4   :  { %252 = vmatprep.mubr.msk.bf16.mxu0 %vm121_vm0, %v304_v5  ;;  %253 = vmatprep.mubr.msk.bf16.mxu1 %vm121_vm0, %v307_v6  ;;  %v300_v10 = vld [vmem:[%s377_s1 + $0x38] sm:$0xff]   ;;  %v301_v11 = vld [vmem:[%s377_s1 + $0x40] sm:$0xff]  }
   0x5   :  { %v302_v12 = vld [vmem:[%s378_s0] ss:$8 sps:$4 sm:$0xff]   ;;  %v305_v13 = vld [vmem:[%s378_s0 + $0x10] ss:$8 sps:$4 sm:$0xff]  }
   0x6   :  { %131 = vmatpush1.bf16.msra.mxu0 %v294_v2  ;;  %284 = vmatpush1.bf16.msra.mxu1 %v294_v2  ;;  %v254_v14 = vld [vmem:[%s379_s2] ss:$0 sm:$0xff] }
   0x7   :  { %132 = vmatprep.subr.bf16.mxu0 %v308_v0  ;;  %276 = vmatprep.subr.bf16.mxu1 %v308_v0 }
   0xa   :  { %133 = vmatpush1.bf16.msra.mxu0 %v295_v3  ;;  %285 = vmatpush1.bf16.msra.mxu1 %v295_v3 }
   0xb   :  { %134 = vmatprep.subr.bf16.mxu0 %v308_v0  ;;  %277 = vmatprep.subr.bf16.mxu1 %v308_v0 }
   0xe   :  { %135 = vmatpush1.bf16.msra.mxu0 %v296_v4  ;;  %286 = vmatpush1.bf16.msra.mxu1 %v296_v4 }
   0xf   :  { %136 = vmatprep.subr.bf16.mxu0 %v308_v0  ;;  %278 = vmatprep.subr.bf16.mxu1 %v308_v0 }
  0x12   :  { %137 = vmatpush1.bf16.msra.mxu0 %v297_v7  ;;  %287 = vmatpush1.bf16.msra.mxu1 %v297_v7 }
  0x13   :  { %138 = vmatprep.subr.bf16.mxu0 %v308_v0  ;;  %279 = vmatprep.subr.bf16.mxu1 %v308_v0 }
  0x16   :  { %139 = vmatpush1.bf16.msra.mxu0 %v298_v8  ;;  %288 = vmatpush1.bf16.msra.mxu1 %v298_v8 }
  0x17   :  { %140 = vmatprep.subr.bf16.mxu0 %v308_v0  ;;  %280 = vmatprep.subr.bf16.mxu1 %v308_v0 }
  0x1a   :  { %141 = vmatpush1.bf16.msra.mxu0 %v299_v9  ;;  %289 = vmatpush1.bf16.msra.mxu1 %v299_v9 }
  0x1b   :  { %142 = vmatprep.subr.bf16.mxu0 %v308_v0  ;;  %281 = vmatprep.subr.bf16.mxu1 %v308_v0 }
  0x1e   :  { %143 = vmatpush1.bf16.msra.mxu0 %v300_v10  ;;  %290 = vmatpush1.bf16.msra.mxu1 %v300_v10 }
  0x1f   :  { %144 = vmatprep.subr.bf16.mxu0 %v308_v0  ;;  %282 = vmatprep.subr.bf16.mxu1 %v308_v0 }
  0x22   :  { %145 = vmatpush1.bf16.msra.mxu0 %v301_v11  ;;  %291 = vmatpush1.bf16.msra.mxu1 %v301_v11 }
  0x25   :  { %161 = vmatmul.mubr.bf16.vlgmr.msra.gmra.mrb[0].mxu0 %v302_v12  ;;  %169 = vmatmul.mubr.bf16.vlgmr.msra.gmra.mrb[0].mxu1 %v305_v13 }
  0xf8   :  { %v162_v15 = vpop.f32.mrb[0].mxu0  ;;  %v170_v16 = vpop.f32.mrb[0].mxu1 }
  0xf9   :  { %v199_v17 = vadd.f32 %v254_v14, %v162_v15  ;;  %v201_v18 = vadd.f32 %v254_v14, %v170_v16  ;;  %v164_v19 = vpop.f32.mrb[1].mxu0  ;;  %v172_v20 = vpop.f32.mrb[1].mxu1 }
  0xfa   :  { %v165_v21 = vpop.f32.mrb[2].mxu0  ;;  %v173_v22 = vpop.f32.mrb[2].mxu1 }
  0xfb   :  { %v207_v23 = vmul.f32 0.01, %v199_v17  ;;  %v209_v24 = vmul.f32 0.01, %v201_v18  ;;  %v200_v25 = vadd.f32 %v254_v14, %v165_v21  ;;  %v202_v26 = vadd.f32 %v254_v14, %v173_v22  ;;  %v167_v27 = vpop.f32.mrb[3].mxu0  ;;  %v175_v28 = vpop.f32.mrb[3].mxu1 }
  0xfc   :  { %vm203_vm1 = vcmp.ge.f32.partialorder %v199_v17, 0.0  ;;  %vm205_vm2 = vcmp.ge.f32.partialorder %v201_v18, 0.0 }
  0xfd   :  { %vm204_vm3 = vcmp.ge.f32.partialorder %v200_v25, 0.0  ;;  %v208_v29 = vmul.f32 0.01, %v200_v25  ;;  %vm206_vm4 = vcmp.ge.f32.partialorder %v202_v26, 0.0  ;;  %v210_v30 = vmul.f32 0.01, %v202_v26 }
  0xfe   :  { %v211_v31 = vsel %vm203_vm1, %v199_v17, %v207_v23  ;;  %v213_v32 = vsel %vm205_vm2, %v201_v18, %v209_v24 }
  0xff   :  { %v212_v33 = vsel %vm204_vm3, %v200_v25, %v208_v29  ;;  %v214_v34 = vsel %vm206_vm4, %v202_v26, %v210_v30 }
 0x100   :  { %v266_v35 = vpack.c.bf16 %v212_v33, %v211_v31  ;;  %v271_v36 = vpack.c.bf16 %v214_v34, %v213_v32 }
 0x102   :  { %267 = vst [vmem:[%s380_s3] sm:$0xff] %v266_v35   ;;  %273 = vst [vmem:[%s380_s3 + $0x8] sm:$0xff] %v271_v36  }

// kernel: _lambda_.33
= control target key start
LH: loop header
LB: loop body
LE: loop exit
PB: predicated region body
PF: predicated region fallthrough
CT: control target
= control target key end

     0   :  { %v332_v0 = vmov 0   ;;  %vm124_vm0 = vcmask 130048   ;;  %s412_s1 = inlined_call_operand.vmem [shape: bf16[144,128], index: 1, kind: input, shape index: {}]   ;;  %s413_s0 = inlined_call_operand.vmem [shape: bf16[32,144], index: 0, kind: input, shape index: {}]   ;;  %s414_s3 = inlined_call_operand.vmem [shape: bf16[32,128], index: 3, kind: input, shape index: {}]   ;;  %s415_s2 = inlined_call_operand.vmem [shape: f32[1,128], index: 2, kind: input, shape index: {}]   ;;  %s416_s4 = inlined_call_operand.vmem [shape: bf16[32,128], index: 4, kind: output, shape index: {}]  }
   0x1   :  { %131 = vmatprep.subr.bf16.mxu0 %v332_v0  ;;  %298 = vmatprep.subr.bf16.mxu1 %v332_v0  ;;  %v317_v1 = vld [vmem:[%s412_s1] sm:$0xff]   ;;  %v318_v2 = vld [vmem:[%s412_s1 + $0x8] sm:$0xff]   ;;  %v319_v3 = vld [vmem:[%s412_s1 + $0x10] sm:$0xff]  }
   0x2   :  { %132 = vmatpush1.bf16.msra.mxu0 %v317_v1  ;;  %307 = vmatpush1.bf16.msra.mxu1 %v317_v1  ;;  %v320_v4 = vld [vmem:[%s412_s1 + $0x18] sm:$0xff]   ;;  %v328_v5 = vld [vmem:[%s413_s0 + $0x4] ss:$8 sps:$4 sm:$0xff]   ;;  %v323_v9 = vld [vmem:[%s412_s1 + $0x30] sm:$0xff]  }
   0x3   :  { %133 = vmatprep.subr.bf16.mxu0 %v332_v0  ;;  %299 = vmatprep.subr.bf16.mxu1 %v332_v0  ;;  %v331_v6 = vld [vmem:[%s413_s0 + $0x14] ss:$8 sps:$4 sm:$0xff]   ;;  %v321_v7 = vld [vmem:[%s412_s1 + $0x20] sm:$0xff]   ;;  %v322_v8 = vld [vmem:[%s412_s1 + $0x28] sm:$0xff]  }
   0x4   :  { %267 = vmatprep.mubr.msk.bf16.mxu0 %vm124_vm0, %v328_v5  ;;  %268 = vmatprep.mubr.msk.bf16.mxu1 %vm124_vm0, %v331_v6  ;;  %v324_v10 = vld [vmem:[%s412_s1 + $0x38] sm:$0xff]   ;;  %v325_v11 = vld [vmem:[%s412_s1 + $0x40] sm:$0xff]   ;;  %v296_v15 = vld [vmem:[%s414_s3 + $0x8] sm:$0xff]  }
   0x5   :  { %v326_v12 = vld [vmem:[%s413_s0] ss:$8 sps:$4 sm:$0xff]   ;;  %v329_v13 = vld [vmem:[%s413_s0 + $0x10] ss:$8 sps:$4 sm:$0xff]   ;;  %v284_v18 = vunpack.c.l.bf16 %v296_v15  ;;  %v285_v28 = vunpack.c.h.bf16 %v296_v15 }
   0x6   :  { %134 = vmatpush1.bf16.msra.mxu0 %v318_v2  ;;  %308 = vmatpush1.bf16.msra.mxu1 %v318_v2  ;;  %v279_v14 = vld [vmem:[%s414_s3] sm:$0xff]  }
   0x7   :  { %135 = vmatprep.subr.bf16.mxu0 %v332_v0  ;;  %300 = vmatprep.subr.bf16.mxu1 %v332_v0  ;;  %v269_v16 = vld [vmem:[%s415_s2] ss:$0 sm:$0xff]  ;;  %v280_v17 = vunpack.c.l.bf16 %v279_v14  ;;  %v281_v26 = vunpack.c.h.bf16 %v279_v14 }
   0xa   :  { %136 = vmatpush1.bf16.msra.mxu0 %v319_v3  ;;  %309 = vmatpush1.bf16.msra.mxu1 %v319_v3 }
   0xb   :  { %137 = vmatprep.subr.bf16.mxu0 %v332_v0  ;;  %301 = vmatprep.subr.bf16.mxu1 %v332_v0 }
   0xe   :  { %138 = vmatpush1.bf16.msra.mxu0 %v320_v4  ;;  %310 = vmatpush1.bf16.msra.mxu1 %v320_v4 }
   0xf   :  { %139 = vmatprep.subr.bf16.mxu0 %v332_v0  ;;  %302 = vmatprep.subr.bf16.mxu1 %v332_v0 }
  0x12   :  { %140 = vmatpush1.bf16.msra.mxu0 %v321_v7  ;;  %311 = vmatpush1.bf16.msra.mxu1 %v321_v7 }
  0x13   :  { %141 = vmatprep.subr.bf16.mxu0 %v332_v0  ;;  %303 = vmatprep.subr.bf16.mxu1 %v332_v0 }
  0x16   :  { %142 = vmatpush1.bf16.msra.mxu0 %v322_v8  ;;  %312 = vmatpush1.bf16.msra.mxu1 %v322_v8 }
  0x17   :  { %143 = vmatprep.subr.bf16.mxu0 %v332_v0  ;;  %304 = vmatprep.subr.bf16.mxu1 %v332_v0 }
  0x1a   :  { %144 = vmatpush1.bf16.msra.mxu0 %v323_v9  ;;  %313 = vmatpush1.bf16.msra.mxu1 %v323_v9 }
  0x1b   :  { %145 = vmatprep.subr.bf16.mxu0 %v332_v0  ;;  %305 = vmatprep.subr.bf16.mxu1 %v332_v0 }
  0x1e   :  { %146 = vmatpush1.bf16.msra.mxu0 %v324_v10  ;;  %314 = vmatpush1.bf16.msra.mxu1 %v324_v10 }
  0x1f   :  { %147 = vmatprep.subr.bf16.mxu0 %v332_v0  ;;  %306 = vmatprep.subr.bf16.mxu1 %v332_v0 }
  0x22   :  { %148 = vmatpush1.bf16.msra.mxu0 %v325_v11  ;;  %315 = vmatpush1.bf16.msra.mxu1 %v325_v11 }
  0x25   :  { %164 = vmatmul.mubr.bf16.vlgmr.msra.gmra.mrb[0].mxu0 %v326_v12  ;;  %172 = vmatmul.mubr.bf16.vlgmr.msra.gmra.mrb[0].mxu1 %v329_v13 }
  0xf8   :  { %v165_v19 = vpop.f32.mrb[0].mxu0  ;;  %v173_v20 = vpop.f32.mrb[0].mxu1 }
  0xf9   :  { %v202_v21 = vadd.f32 %v269_v16, %v165_v19  ;;  %v204_v22 = vadd.f32 %v269_v16, %v173_v20  ;;  %v167_v23 = vpop.f32.mrb[1].mxu0  ;;  %v175_v24 = vpop.f32.mrb[1].mxu1 }
  0xfa   :  { %v168_v25 = vpop.f32.mrb[2].mxu0  ;;  %v176_v27 = vpop.f32.mrb[2].mxu1 }
  0xfb   :  { %v214_v29 = vadd.f32 %v280_v17, %v202_v21  ;;  %v216_v30 = vadd.f32 %v284_v18, %v204_v22  ;;  %v203_v31 = vadd.f32 %v269_v16, %v168_v25  ;;  %v205_v32 = vadd.f32 %v269_v16, %v176_v27  ;;  %v170_v33 = vpop.f32.mrb[3].mxu0  ;;  %v178_v34 = vpop.f32.mrb[3].mxu1 }
  0xfd   :  { %v222_v35 = vmul.f32 0.01, %v214_v29  ;;  %v224_v36 = vmul.f32 0.01, %v216_v30  ;;  %v215_v37 = vadd.f32 %v281_v26, %v203_v31  ;;  %v217_v38 = vadd.f32 %v285_v28, %v205_v32 }
  0xfe   :  { %vm218_vm1 = vcmp.ge.f32.partialorder %v214_v29, 0.0  ;;  %vm220_vm2 = vcmp.ge.f32.partialorder %v216_v30, 0.0 }
  0xff   :  { %vm219_vm3 = vcmp.ge.f32.partialorder %v215_v37, 0.0  ;;  %v223_v39 = vmul.f32 0.01, %v215_v37  ;;  %vm221_vm4 = vcmp.ge.f32.partialorder %v217_v38, 0.0  ;;  %v225_v40 = vmul.f32 0.01, %v217_v38 }
 0x100   :  { %v226_v41 = vsel %vm218_vm1, %v214_v29, %v222_v35  ;;  %v228_v42 = vsel %vm220_vm2, %v216_v30, %v224_v36 }
 0x101   :  { %v227_v43 = vsel %vm219_vm3, %v215_v37, %v223_v39  ;;  %v229_v44 = vsel %vm221_vm4, %v217_v38, %v225_v40 }
 0x102   :  { %v289_v45 = vpack.c.bf16 %v227_v43, %v226_v41  ;;  %v294_v46 = vpack.c.bf16 %v229_v44, %v228_v42 }
 0x104   :  { %290 = vst [vmem:[%s416_s4] sm:$0xff] %v289_v45   ;;  %297 = vst [vmem:[%s416_s4 + $0x8] sm:$0xff] %v294_v46  }

// kernel: _lambda_.36
= control target key start
LH: loop header
LB: loop body
LE: loop exit
PB: predicated region body
PF: predicated region fallthrough
CT: control target
= control target key end

     0   :  { %vm57_vm0 = vcmask 261120   ;;  %s258_s1 = inlined_call_operand.vmem [shape: bf16[32,128], index: 1, kind: input, shape index: {}]   ;;  %s259_s0 = inlined_call_operand.vmem [shape: bf16[32,32], index: 0, kind: input, shape index: {}]   ;;  %s260_s2 = inlined_call_operand.vmem [shape: f32[1,128], index: 2, kind: input, shape index: {}]   ;;  %s261_s3 = inlined_call_operand.vmem [shape: bf16[32,128], index: 3, kind: output, shape index: {}]  }
   0x1   :  { %v213_v0 = vld [vmem:[%s258_s1] sm:$0xff]   ;;  %v214_v1 = vld [vmem:[%s258_s1 + $0x8] sm:$0xff]  }
   0x2   :  { %205 = vmatprep.subr.bf16.mxu0 %v213_v0  ;;  %v215_v2 = vld [vmem:[%s259_s0] sm:$0xff]   ;;  %v216_v3 = vld [vmem:[%s259_s0 + $0x8] sm:$0xff]  }
   0x3   :  { %206 = vmatpush3.bf16.msra.mxu0 %v213_v0  ;;  %209 = vmatprep.mubr.msk.bf16.mxu0 %vm57_vm0, %v215_v2  ;;  %v181_v4 = vld [vmem:[%s260_s2] ss:$0 sm:$0xff] }
   0x4   :  { %207 = vmatprep.subr.bf16.mxu0 %v214_v1 }
   0x7   :  { %208 = vmatpush3.bf16.msra.mxu0 %v214_v1 }
   0xa   :  { %210 = vmatmul.mubr.msk.bf16.vlgmr.msra.gmra.mrb[0].mxu0 %vm57_vm0, %v216_v3 }
  0xdd   :  { %v211_v5 = vpop.f32.mrb[0].mxu0 }
  0xde   :  { %v137_v6 = vadd.f32 %v211_v5, %v181_v4  ;;  %v98_v7 = vpop.f32.mrb[1].mxu0 }
  0xdf   :  { %v135_v8 = vadd.f32 %v181_v4, %v98_v7  ;;  %v212_v9 = vpop.f32.mrb[2].mxu0 }
  0xe0   :  { %v145_v10 = vmul.f32 0.01, %v137_v6  ;;  %v138_v11 = vadd.f32 %v212_v9, %v181_v4  ;;  %v101_v12 = vpop.f32.mrb[3].mxu0  ;;  %vm141_vm1 = vcmp.ge.f32.partialorder %v137_v6, 0.0 }
  0xe1   :  { %v143_v13 = vmul.f32 0.01, %v135_v8  ;;  %v136_v14 = vadd.f32 %v181_v4, %v101_v12  ;;  %vm139_vm2 = vcmp.ge.f32.partialorder %v135_v8, 0.0 }
  0xe2   :  { %vm142_vm3 = vcmp.ge.f32.partialorder %v138_v11, 0.0  ;;  %v146_v15 = vmul.f32 0.01, %v138_v11  ;;  %v149_v17 = vsel %vm141_vm1, %v137_v6, %v145_v10 }
  0xe3   :  { %vm140_vm4 = vcmp.ge.f32.partialorder %v136_v14, 0.0  ;;  %v144_v16 = vmul.f32 0.01, %v136_v14  ;;  %v147_v19 = vsel %vm139_vm2, %v135_v8, %v143_v13 }
  0xe4   :  { %v150_v18 = vsel %vm142_vm3, %v138_v11, %v146_v15 }
  0xe5   :  { %v198_v20 = vpack.c.bf16 %v150_v18, %v149_v17  ;;  %v148_v21 = vsel %vm140_vm4, %v136_v14, %v144_v16 }
  0xe6   :  { %v193_v22 = vpack.c.bf16 %v148_v21, %v147_v19 }
  0xe7   :  { %200 = vst [vmem:[%s261_s3 + $0x8] sm:$0xff] %v198_v20  }
  0xe8   :  { %194 = vst [vmem:[%s261_s3] sm:$0xff] %v193_v22  }

// kernel: _lambda_.41
= control target key start
LH: loop header
LB: loop body
LE: loop exit
PB: predicated region body
PF: predicated region fallthrough
CT: control target
= control target key end

     0   :  { %vm69_vm0 = vcmask 457728   ;;  %vm76_vm1 = vcmask 1043456   ;;  %s291_s1 = inlined_call_operand.vmem [shape: bf16[56,128], index: 1, kind: input, shape index: {}]   ;;  %s292_s0 = inlined_call_operand.vmem [shape: bf16[32,56], index: 0, kind: input, shape index: {}]   ;;  %s293_s2 = inlined_call_operand.vmem [shape: f32[1,128], index: 2, kind: input, shape index: {}]   ;;  %s294_s3 = inlined_call_operand.vmem [shape: bf16[32,128], index: 3, kind: output, shape index: {}]  }
   0x1   :  { %v238_v0 = vld [vmem:[%s291_s1] sm:$0xff]   ;;  %v239_v1 = vld [vmem:[%s291_s1 + $0x8] sm:$0xff]   ;;  %v240_v2 = vld [vmem:[%s291_s1 + $0x10] sm:$0xff]  }
   0x2   :  { %225 = vmatprep.subr.bf16.mxu0 %v238_v0  ;;  %v242_v3 = vld [vmem:[%s292_s0] sm:$0xff]   ;;  %v241_v4 = vld [vmem:[%s291_s1 + $0x18] ss:$0 sps:$4 sm:$0xff]   ;;  %v243_v6 = vld [vmem:[%s292_s0 + $0x8] sm:$0xff]  }
   0x3   :  { %226 = vmatpush3.bf16.msra.mxu0 %v238_v0  ;;  %233 = vmatprep.mubr.msk.bf16.mxu0 %vm69_vm0, %v242_v3  ;;  %v78_v5 = vsel %vm76_vm1, %v241_v4, 0  ;;  %v199_v7 = vld [vmem:[%s293_s2] ss:$0 sm:$0xff] }
   0x4   :  { %227 = vmatprep.subr.bf16.mxu0 %v239_v1 }
   0x7   :  { %228 = vmatpush3.bf16.msra.mxu0 %v239_v1 }
   0x8   :  { %229 = vmatprep.subr.bf16.mxu0 %v240_v2 }
   0xb   :  { %230 = vmatpush3.bf16.msra.mxu0 %v240_v2 }
   0xc   :  { %237 = vmatprep.subr.msk.bf16.mxu0 %vm76_vm1, %v241_v4 }
   0xf   :  { %232 = vmatpush3.bf16.msra.mxu0 %v78_v5 }
  0x12   :  { %234 = vmatmul.mubr.msk.bf16.vlgmr.msra.gmra.mrb[0].mxu0 %vm69_vm0, %v243_v6 }
  0xe5   :  { %v235_v8 = vpop.f32.mrb[0].mxu0 }
  0xe6   :  { %v153_v9 = vadd.f32 %v235_v8, %v199_v7  ;;  %v114_v10 = vpop.f32.mrb[1].mxu0 }
  0xe7   :  { %v151_v11 = vadd.f32 %v199_v7, %v114_v10  ;;  %v236_v12 = vpop.f32.mrb[2].mxu0 }
  0xe8   :  { %v161_v13 = vmul.f32 0.01, %v153_v9  ;;  %v154_v14 = vadd.f32 %v236_v12, %v199_v7  ;;  %v117_v15 = vpop.f32.mrb[3].mxu0  ;;  %vm157_vm2 = vcmp.ge.f32.partialorder %v153_v9, 0.0 }
  0xe9   :  { %v159_v16 = vmul.f32 0.01, %v151_v11  ;;  %v152_v17 = vadd.f32 %v199_v7, %v117_v15  ;;  %vm155_vm3 = vcmp.ge.f32.partialorder %v151_v11, 0.0 }
  0xea   :  { %vm158_vm4 = vcmp.ge.f32.partialorder %v154_v14, 0.0  ;;  %v162_v18 = vmul.f32 0.01, %v154_v14  ;;  %v165_v20 = vsel %vm157_vm2, %v153_v9, %v161_v13 }
  0xeb   :  { %vm156_vm5 = vcmp.ge.f32.partialorder %v152_v17, 0.0  ;;  %v160_v19 = vmul.f32 0.01, %v152_v17  ;;  %v163_v22 = vsel %vm155_vm3, %v151_v11, %v159_v16 }
  0xec   :  { %v166_v21 = vsel %vm158_vm4, %v154_v14, %v162_v18 }
  0xed   :  { %v216_v23 = vpack.c.bf16 %v166_v21, %v165_v20  ;;  %v164_v24 = vsel %vm156_vm5, %v152_v17, %v160_v19 }
  0xee   :  { %v211_v25 = vpack.c.bf16 %v164_v24, %v163_v22 }
  0xef   :  { %218 = vst [vmem:[%s294_s3 + $0x8] sm:$0xff] %v216_v23  }
  0xf0   :  { %212 = vst [vmem:[%s294_s3] sm:$0xff] %v211_v25  }

// kernel: _lambda_.42
= control target key start
LH: loop header
LB: loop body
LE: loop exit
PB: predicated region body
PF: predicated region fallthrough
CT: control target
= control target key end

     0   :  { %vm49_vm0 = vcmask 130048   ;;  %s230_s1 = inlined_call_operand.vmem [shape: bf16[16,128], index: 1, kind: input, shape index: {}]   ;;  %s231_s0 = inlined_call_operand.vmem [shape: bf16[32,16], index: 0, kind: input, shape index: {}]   ;;  %s232_s2 = inlined_call_operand.vmem [shape: f32[1,128], index: 2, kind: input, shape index: {}]   ;;  %s233_s3 = inlined_call_operand.vmem [shape: bf16[32,128], index: 3, kind: output, shape index: {}]  }
   0x1   :  { %v189_v0 = vld [vmem:[%s230_s1] sm:$0xff]   ;;  %v191_v2 = vld [vmem:[%s231_s0 + $0x8] sm:$0xff]  }
   0x2   :  { %v190_v1 = vld [vmem:[%s231_s0] sm:$0xff]   ;;  %183 = vmatprep.subr.bf16.mxu0 %v189_v0 }
   0x3   :  { %184 = vmatpush3.bf16.msra.mxu0 %v189_v0  ;;  %185 = vmatprep.mubr.msk.bf16.mxu0 %vm49_vm0, %v190_v1  ;;  %v160_v4 = vld [vmem:[%s232_s2] ss:$0 sm:$0xff] }
   0x6   :  { %186 = vmatmul.mubr.msk.bf16.vlgmr.msra.gmra.mrb[0].mxu0 %vm49_vm0, %v191_v2 }
  0xd9   :  { %v187_v3 = vpop.f32.mrb[0].mxu0 }
  0xda   :  { %v90_v5 = vpop.f32.mrb[1].mxu0  ;;  %v129_v7 = vadd.f32 %v187_v3, %v160_v4 }
  0xdb   :  { %v188_v6 = vpop.f32.mrb[2].mxu0  ;;  %v127_v10 = vadd.f32 %v160_v4, %v90_v5 }
  0xdc   :  { %v130_v8 = vadd.f32 %v188_v6, %v160_v4  ;;  %v93_v9 = vpop.f32.mrb[3].mxu0 }
  0xdd   :  { %v128_v11 = vadd.f32 %v160_v4, %v93_v9 }
  0xde   :  { %v177_v12 = vpack.c.bf16 %v130_v8, %v129_v7 }
  0xdf   :  { %v172_v13 = vpack.c.bf16 %v128_v11, %v127_v10 }
  0xe0   :  { %179 = vst [vmem:[%s233_s3 + $0x8] sm:$0xff] %v177_v12  }
  0xe1   :  { %173 = vst [vmem:[%s233_s3] sm:$0xff] %v172_v13  }

// kernel: _lambda_.43
= control target key start
LH: loop header
LB: loop body
LE: loop exit
PB: predicated region body
PF: predicated region fallthrough
CT: control target
= control target key end

     0   :  { %vm57_vm0 = vcmask 261120   ;;  %s246_s1 = inlined_call_operand.vmem [shape: bf16[32,128], index: 1, kind: input, shape index: {}]   ;;  %s247_s0 = inlined_call_operand.vmem [shape: bf16[32,32], index: 0, kind: input, shape index: {}]   ;;  %s248_s2 = inlined_call_operand.vmem [shape: f32[1,128], index: 2, kind: input, shape index: {}]   ;;  %s249_s3 = inlined_call_operand.vmem [shape: bf16[32,128], index: 3, kind: output, shape index: {}]  }
   0x1   :  { %v201_v0 = vld [vmem:[%s246_s1] sm:$0xff]   ;;  %v202_v1 = vld [vmem:[%s246_s1 + $0x8] sm:$0xff]  }
   0x2   :  { %193 = vmatprep.subr.bf16.mxu0 %v201_v0  ;;  %v203_v2 = vld [vmem:[%s247_s0] sm:$0xff]   ;;  %v204_v3 = vld [vmem:[%s247_s0 + $0x8] sm:$0xff]  }
   0x3   :  { %194 = vmatpush3.bf16.msra.mxu0 %v201_v0  ;;  %197 = vmatprep.mubr.msk.bf16.mxu0 %vm57_vm0, %v203_v2  ;;  %v169_v5 = vld [vmem:[%s248_s2] ss:$0 sm:$0xff] }
   0x4   :  { %195 = vmatprep.subr.bf16.mxu0 %v202_v1 }
   0x7   :  { %196 = vmatpush3.bf16.msra.mxu0 %v202_v1 }
   0xa   :  { %198 = vmatmul.mubr.msk.bf16.vlgmr.msra.gmra.mrb[0].mxu0 %vm57_vm0, %v204_v3 }
  0xdd   :  { %v199_v4 = vpop.f32.mrb[0].mxu0 }
  0xde   :  { %v98_v6 = vpop.f32.mrb[1].mxu0  ;;  %v137_v8 = vadd.f32 %v199_v4, %v169_v5 }
  0xdf   :  { %v200_v7 = vpop.f32.mrb[2].mxu0  ;;  %v135_v11 = vadd.f32 %v169_v5, %v98_v6 }
  0xe0   :  { %v138_v9 = vadd.f32 %v200_v7, %v169_v5  ;;  %v101_v10 = vpop.f32.mrb[3].mxu0 }
  0xe1   :  { %v136_v12 = vadd.f32 %v169_v5, %v101_v10 }
  0xe2   :  { %v186_v13 = vpack.c.bf16 %v138_v9, %v137_v8 }
  0xe3   :  { %v181_v14 = vpack.c.bf16 %v136_v12, %v135_v11 }
  0xe4   :  { %188 = vst [vmem:[%s249_s3 + $0x8] sm:$0xff] %v186_v13  }
  0xe5   :  { %182 = vst [vmem:[%s249_s3] sm:$0xff] %v181_v14  }

// kernel: _lambda_.45
= control target key start
LH: loop header
LB: loop body
LE: loop exit
PB: predicated region body
PF: predicated region fallthrough
CT: control target
= control target key end

     0   :  { %vm73_vm0 = vcmask 523264   ;;  %s278_s1 = inlined_call_operand.vmem [shape: bf16[64,128], index: 1, kind: input, shape index: {}]   ;;  %s279_s0 = inlined_call_operand.vmem [shape: bf16[32,64], index: 0, kind: input, shape index: {}]   ;;  %s280_s2 = inlined_call_operand.vmem [shape: f32[1,128], index: 2, kind: input, shape index: {}]   ;;  %s281_s3 = inlined_call_operand.vmem [shape: bf16[32,128], index: 3, kind: output, shape index: {}]  }
   0x1   :  { %v225_v0 = vld [vmem:[%s278_s1] sm:$0xff]   ;;  %v226_v1 = vld [vmem:[%s278_s1 + $0x8] sm:$0xff]   ;;  %v227_v2 = vld [vmem:[%s278_s1 + $0x10] sm:$0xff]  }
   0x2   :  { %213 = vmatprep.subr.bf16.mxu0 %v225_v0  ;;  %v229_v3 = vld [vmem:[%s279_s0] sm:$0xff]   ;;  %v228_v4 = vld [vmem:[%s278_s1 + $0x18] sm:$0xff]   ;;  %v230_v5 = vld [vmem:[%s279_s0 + $0x8] sm:$0xff]  }
   0x3   :  { %214 = vmatpush3.bf16.msra.mxu0 %v225_v0  ;;  %221 = vmatprep.mubr.msk.bf16.mxu0 %vm73_vm0, %v229_v3  ;;  %v187_v7 = vld [vmem:[%s280_s2] ss:$0 sm:$0xff] }
   0x4   :  { %215 = vmatprep.subr.bf16.mxu0 %v226_v1 }
   0x7   :  { %216 = vmatpush3.bf16.msra.mxu0 %v226_v1 }
   0x8   :  { %217 = vmatprep.subr.bf16.mxu0 %v227_v2 }
   0xb   :  { %218 = vmatpush3.bf16.msra.mxu0 %v227_v2 }
   0xc   :  { %219 = vmatprep.subr.bf16.mxu0 %v228_v4 }
   0xf   :  { %220 = vmatpush3.bf16.msra.mxu0 %v228_v4 }
  0x12   :  { %222 = vmatmul.mubr.msk.bf16.vlgmr.msra.gmra.mrb[0].mxu0 %vm73_vm0, %v230_v5 }
  0xe5   :  { %v223_v6 = vpop.f32.mrb[0].mxu0 }
  0xe6   :  { %v114_v8 = vpop.f32.mrb[1].mxu0  ;;  %v153_v10 = vadd.f32 %v223_v6, %v187_v7 }
  0xe7   :  { %v224_v9 = vpop.f32.mrb[2].mxu0  ;;  %v151_v13 = vadd.f32 %v187_v7, %v114_v8 }
  0xe8   :  { %v154_v11 = vadd.f32 %v224_v9, %v187_v7  ;;  %v117_v12 = vpop.f32.mrb[3].mxu0 }
  0xe9   :  { %v152_v14 = vadd.f32 %v187_v7, %v117_v12 }
  0xea   :  { %v204_v15 = vpack.c.bf16 %v154_v11, %v153_v10 }
  0xeb   :  { %v199_v16 = vpack.c.bf16 %v152_v14, %v151_v13 }
  0xec   :  { %206 = vst [vmem:[%s281_s3 + $0x8] sm:$0xff] %v204_v15  }
  0xed   :  { %200 = vst [vmem:[%s281_s3] sm:$0xff] %v199_v16  }

</bundles_post_ra>
